<compile_context>
chip_gen: v7x
topology: tpu7x:2x2x1
jax: 0.10.0
libtpu: 0.0.40
codegen_flags: <defaults>
</compile_context>

<pallas_src>
import functools

import jax
import jax.numpy as jnp
from jax.experimental import pallas as pl
from jax.experimental.pallas import tpu as pltpu

BN_EPS = 1e-5
_VMEM_LIMIT = 64 * 1024 * 1024  # fits all generations (v7x has 64 MiB / TensorCore)


def _cparams(n_grid_axes):
    return pltpu.CompilerParams(
        dimension_semantics=("parallel",) * n_grid_axes,
        vmem_limit_bytes=_VMEM_LIMIT,
    )


def _row_tile(p, target=2048):
    """Largest multiple-of-8 divisor of p that is <= target (else p itself)."""
    if p <= target:
        return p
    for d in range(target - target % 8, 7, -8):
        if p % d == 0:
            return d
    return p  # TODO(synk): pad P to a multiple of 8 for ragged row counts.


# ---------------------------------------------------------------------------
# Kernel A: 1x1 conv (row-tiled matmul) + partial BN stats
# ---------------------------------------------------------------------------
def _conv1x1_stats_kernel(x_ref, w_ref, y_ref, st_ref, *, mm_dtype):
    x = x_ref[...].astype(mm_dtype)
    w = w_ref[...].astype(mm_dtype)
    y = jnp.dot(x, w, preferred_element_type=jnp.float32)        # (tm, Cmid) f32
    y_ref[...] = y
    s = jnp.sum(y, axis=0, keepdims=True)                         # (1, Cmid)
    ss = jnp.sum(y * y, axis=0, keepdims=True)                    # (1, Cmid)
    st_ref[...] = jnp.concatenate([s, ss], axis=0)[None]          # (1, 2, Cmid)


def _conv1x1_with_stats(x2d, w1, mm_dtype):
    p, cin = x2d.shape
    cmid = w1.shape[1]
    tm = _row_tile(p)
    nt = p // tm
    cost = pl.CostEstimate(
        flops=2 * p * cin * cmid,
        transcendentals=0,
        bytes_accessed=4 * (p * cin + cin * cmid + p * cmid + nt * 2 * cmid),
    )
    return pl.pallas_call(
        functools.partial(_conv1x1_stats_kernel, mm_dtype=mm_dtype),
        grid=(nt,),
        in_specs=[
            pl.BlockSpec((tm, cin), lambda i: (i, 0)),
            pl.BlockSpec((cin, cmid), lambda i: (0, 0)),
        ],
        out_specs=[
            pl.BlockSpec((tm, cmid), lambda i: (i, 0)),
            pl.BlockSpec((1, 2, cmid), lambda i: (i, 0, 0)),
        ],
        out_shape=[
            jax.ShapeDtypeStruct((p, cmid), jnp.float32),
            jax.ShapeDtypeStruct((nt, 2, cmid), jnp.float32),
        ],
        compiler_params=_cparams(1),
        cost_estimate=cost,
    )(x2d, w1)


# ---------------------------------------------------------------------------
# Kernel B: fused BN1-affine + SiLU + 3x3 conv (9 shifted MXU matmuls) + BN2 stats
# ---------------------------------------------------------------------------
def _conv3x3_stats_kernel(y1_ref, sc_ref, sh_ref, w_ref, y2_ref, st_ref, pad_ref,
                          *, hh, ww, mm_dtype):
    hw = hh * ww
    cout = w_ref.shape[-1]

    y1 = y1_ref[0]                                   # (HW, Cmid) f32
    a1 = y1 * sc_ref[...] + sh_ref[...]              # BN1 folded into affine
    a1 = a1 * jax.nn.sigmoid(a1)                     # SiLU (f32 on VPU/EUP)

    # Zero-padded flat buffer: pad[ww+1 + q] = a1[q] for q in [0, HW), zeros at borders.
    pad_ref[...] = jnp.zeros(pad_ref.shape, pad_ref.dtype)
    pad_ref[ww + 1: ww + 1 + hw, :] = a1

    rows = jax.lax.broadcasted_iota(jnp.int32, (hw, 1), 0)
    cols = rows % ww                                 # column index of each flat row

    acc = jnp.zeros((hw, cout), jnp.float32)
    for t in range(9):                               # unrolled 3x3 taps
        dy, dx = t // 3, t % 3
        off = (dy - 1) * ww + (dx - 1)
        start = ww + 1 + off
        tap = pad_ref[start: start + hw, :]          # = a1 shifted by `off` rows, zero-filled
        if dx != 1:                                  # mask columns that crossed the image edge
            xs = cols + (dx - 1)
            valid = (xs >= 0) & (xs < ww)
            tap = jnp.where(valid, tap, jnp.zeros_like(tap))
        wt = w_ref[t].astype(mm_dtype)               # (Cmid, Cout)
        acc = acc + jnp.dot(tap.astype(mm_dtype), wt,
                            preferred_element_type=jnp.float32)

    y2_ref[...] = acc[None]                          # (1, HW, Cout)
    s = jnp.sum(acc, axis=0, keepdims=True)
    ss = jnp.sum(acc * acc, axis=0, keepdims=True)
    st_ref[...] = jnp.concatenate([s, ss], axis=0)[None]   # (1, 2, Cout)


def _conv3x3_with_stats(y1_3d, scale1, shift1, w2f, hh, ww, mm_dtype):
    n, hw, cmid = y1_3d.shape
    cout = w2f.shape[-1]
    cost = pl.CostEstimate(
        flops=2 * n * hw * 9 * cmid * cout,
        transcendentals=n * hw * cmid,
        bytes_accessed=4 * (n * hw * cmid + 9 * cmid * cout + n * hw * cout + n * 2 * cout),
    )
    return pl.pallas_call(
        functools.partial(_conv3x3_stats_kernel, hh=hh, ww=ww, mm_dtype=mm_dtype),
        grid=(n,),
        in_specs=[
            pl.BlockSpec((1, hw, cmid), lambda b: (b, 0, 0)),
            pl.BlockSpec((1, cmid), lambda b: (0, 0)),
            pl.BlockSpec((1, cmid), lambda b: (0, 0)),
            pl.BlockSpec((9, cmid, cout), lambda b: (0, 0, 0)),
        ],
        out_specs=[
            pl.BlockSpec((1, hw, cout), lambda b: (b, 0, 0)),
            pl.BlockSpec((1, 2, cout), lambda b: (b, 0, 0)),
        ],
        out_shape=[
            jax.ShapeDtypeStruct((n, hw, cout), jnp.float32),
            jax.ShapeDtypeStruct((n, 2, cout), jnp.float32),
        ],
        scratch_shapes=[pltpu.VMEM((hw + 2 * (ww + 1), cmid), jnp.float32)],
        compiler_params=_cparams(1),
        cost_estimate=cost,
    )(y1_3d, scale1, shift1, w2f)


# ---------------------------------------------------------------------------
# Kernel C: BN2-affine + SiLU (+ residual), output aliased onto the old x buffer
# ---------------------------------------------------------------------------
def _bn_silu_kernel(y_ref, sc_ref, sh_ref, o_ref):
    yn = y_ref[...] * sc_ref[...] + sh_ref[...]
    o_ref[...] = (yn * jax.nn.sigmoid(yn)).astype(o_ref.dtype)


def _bn_silu_residual_kernel(y_ref, sc_ref, sh_ref, res_ref, o_ref):
    yn = y_ref[...] * sc_ref[...] + sh_ref[...]
    o_ref[...] = (yn * jax.nn.sigmoid(yn) + res_ref[...]).astype(o_ref.dtype)


def _bn_silu_apply(y2d, scale, shift, residual=None):
    p, c = y2d.shape
    tm = _row_tile(p)
    nt = p // tm
    row_spec = pl.BlockSpec((tm, c), lambda i: (i, 0))
    vec_spec = pl.BlockSpec((1, c), lambda i: (0, 0))
    if residual is not None:
        kernel = _bn_silu_residual_kernel
        operands = (y2d, scale, shift, residual)
        in_specs = [row_spec, vec_spec, vec_spec, row_spec]
        aliases = {3: 0}                              # write new x over old x buffer
        nbytes = 4 * (3 * p * c + 2 * c)
    else:
        kernel = _bn_silu_kernel
        operands = (y2d, scale, shift)
        in_specs = [row_spec, vec_spec, vec_spec]
        aliases = {0: 0}                              # reuse the y2 buffer
        nbytes = 4 * (2 * p * c + 2 * c)
    return pl.pallas_call(
        kernel,
        grid=(nt,),
        in_specs=in_specs,
        out_specs=row_spec,
        out_shape=jax.ShapeDtypeStruct((p, c), jnp.float32),
        input_output_aliases=aliases,
        compiler_params=_cparams(1),
        cost_estimate=pl.CostEstimate(flops=3 * p * c, transcendentals=p * c,
                                      bytes_accessed=nbytes),
    )(*operands)


# ---------------------------------------------------------------------------
# XLA glue: stats reduction (tiny), BN fold, layout plumbing, parameters
# ---------------------------------------------------------------------------
def _fold_bn(stats_part, count, gamma, beta):
    # stats_part: (num_blocks, 2, C) partial [sum, sum_sq]; reduce in f32 (tiny).
    sums = jnp.sum(stats_part, axis=0)                 # (2, C)
    mean = sums[0] / count
    var = jnp.maximum(sums[1] / count - mean * mean, 0.0)
    inv = jax.lax.rsqrt(var + BN_EPS)
    scale = gamma * inv                                # (1, C)
    shift = beta - mean[None, :] * scale               # (1, C)
    return scale, shift


def residual_block_forward(x_nchw, params, use_residual=True, mm_dtype=jnp.bfloat16):
    # NCHW in/out (PyTorch convention); channels-last (P, C) / (N, HW, C) internally.
    n, c, h, w = x_nchw.shape
    hw = h * w
    p = n * hw
    x2d = jnp.transpose(x_nchw, (0, 2, 3, 1)).reshape(p, c).astype(jnp.float32)
    for (w1, g1, b1, w2, g2, b2) in params:
        cmid = w1.shape[1]
        # [A] 1x1 conv + partial BN1 stats
        y1, st1 = _conv1x1_with_stats(x2d, w1, mm_dtype)
        scale1, shift1 = _fold_bn(st1, p, g1, b1)
        # [B] BN1-apply + SiLU fused with in-kernel 3x3 conv + partial BN2 stats
        y2, st2 = _conv3x3_with_stats(y1.reshape(n, hw, cmid), scale1, shift1,
                                      w2.reshape(9, cmid, c), h, w, mm_dtype)
        scale2, shift2 = _fold_bn(st2, p, g2, b2)
        # [C] BN2-apply + SiLU (+ residual), aliased over the previous x buffer
        x2d = _bn_silu_apply(y2.reshape(p, c), scale2, shift2,
                             residual=x2d if use_residual else None)
    return jnp.transpose(x2d.reshape(n, h, w, c), (0, 3, 1, 2))


def init_params(key, channels, num_repeats):
    """Deterministic synthetic parameters (shapes match the PyTorch module)."""
    cmid = channels // 2
    params = []
    for _ in range(num_repeats):
        key, k1, k2, k3, k4, k5, k6 = jax.random.split(key, 7)
        w1 = 0.1 * jax.random.normal(k1, (channels, cmid), jnp.float32)        # 1x1, (Cin, Cmid)
        w2 = 0.1 * jax.random.normal(k2, (3, 3, cmid, channels), jnp.float32)  # 3x3, HWIO
        g1 = 1.0 + 0.1 * jax.random.normal(k3, (1, cmid), jnp.float32)
        b1 = 0.1 * jax.random.normal(k4, (1, cmid), jnp.float32)
        g2 = 1.0 + 0.1 * jax.random.normal(k5, (1, channels), jnp.float32)
        b2 = 0.1 * jax.random.normal(k6, (1, channels), jnp.float32)
        params.append((w1, g1, b1, w2, g2, b2))
    return params


# ---------------------------------------------------------------------------
# Pure-JAX reference (correctness check only)
# ---------------------------------------------------------------------------
def reference_forward(x_nchw, params, use_residual=True):
    x = jnp.transpose(x_nchw, (0, 2, 3, 1)).astype(jnp.float32)

    def bn_silu(y, g, b):
        m = jnp.mean(y, axis=(0, 1, 2), keepdims=True)
        v = jnp.mean(jnp.square(y - m), axis=(0, 1, 2), keepdims=True)
        yn = (y - m) * jax.lax.rsqrt(v + BN_EPS) * g.reshape(1, 1, 1, -1) + b.reshape(1, 1, 1, -1)
        return yn * jax.nn.sigmoid(yn)

    dn = ("NHWC", "HWIO", "NHWC")
    for (w1, g1, b1, w2, g2, b2) in params:
        y1 = jax.lax.conv_general_dilated(x, w1.reshape(1, 1, *w1.shape), (1, 1), "VALID",
                                          dimension_numbers=dn)
        a1 = bn_silu(y1, g1, b1)
        y2 = jax.lax.conv_general_dilated(a1, w2, (1, 1), "SAME", dimension_numbers=dn)
        a2 = bn_silu(y2, g2, b2)
        x = x + a2 if use_residual else a2
    return jnp.transpose(x, (0, 3, 1, 2))


if __name__ == "__main__":
    key = jax.random.PRNGKey(0)
    N, C, H, W = 2, 4, 16, 16         # channels=4 -> hidden channels//2 = 2
    num_repeats = 2

    kx, kp = jax.random.split(key)
    x = jax.random.normal(kx, (N, C, H, W), jnp.float32)
    params = init_params(kp, C, num_repeats)

    ref_res = reference_forward(x, params, use_residual=True)
    ref_nores = reference_forward(x, params, use_residual=False)

    # f32-operand MXU path: tight numerical check against the pure-JAX reference.
    fwd_f32 = jax.jit(functools.partial(residual_block_forward,
                                        use_residual=True, mm_dtype=jnp.float32))
    out = jax.block_until_ready(fwd_f32(x, params))
    assert out.shape == (N, C, H, W), out.shape
    err = float(jnp.max(jnp.abs(out - ref_res)))
    assert err < 1e-3, err

    fwd_f32_nr = jax.jit(functools.partial(residual_block_forward,
                                           use_residual=False, mm_dtype=jnp.float32))
    out_nr = jax.block_until_ready(fwd_f32_nr(x, params))
    err_nr = float(jnp.max(jnp.abs(out_nr - ref_nores)))
    assert err_nr < 1e-3, err_nr

    # bf16-operand MXU path (default / performance config): loose check only,
    # expected deviation is bf16 operand rounding (stats/accumulation stay f32).
    fwd_bf16 = jax.jit(functools.partial(residual_block_forward, use_residual=True))
    out_bf16 = jax.block_until_ready(fwd_bf16(x, params))
    err_bf16 = float(jnp.max(jnp.abs(out_bf16 - ref_res)))
    assert err_bf16 < 0.3, err_bf16

    print("KERNEL_OK")
</pallas_src>

<mosaic_0001>
module attributes {stable_mosaic.version = 11 : i64} {
  func.func @_conv1x1_stats_kernel(%arg0: i32, %arg1: memref<512x4xf32, #tpu.memory_space<vmem>>, %arg2: memref<4x2xf32, #tpu.memory_space<vmem>>, %arg3: memref<512x2xf32, #tpu.memory_space<vmem>>, %arg4: memref<1x2x2xf32, #tpu.memory_space<vmem>>) attributes {dimension_semantics = [#tpu.dimension_semantics<parallel>], iteration_bounds = array<i64: 1>, scalar_prefetch = 0 : i64, scratch_operands = 0 : i64, tpu.core_type = #tpu.core_type<tc>, window_params = [{transform_indices = @transform_0, window_bounds = array<i64: 512, 4>}, {pipeline_mode = #tpu.pipeline_mode<synchronous>, transform_indices = @transform_1, window_bounds = array<i64: 4, 2>}, {transform_indices = @transform_2, window_bounds = array<i64: 512, 2>}, {transform_indices = @transform_3, window_bounds = array<i64: 1, 2, 2>}]} {
    %c0 = arith.constant 0 : index
    %c0_0 = arith.constant 0 : index
    %0 = vector.load %arg1[%c0, %c0_0] : memref<512x4xf32, #tpu.memory_space<vmem>>, vector<512x4xf32>
    %c0_1 = arith.constant 0 : index
    %c0_2 = arith.constant 0 : index
    %1 = vector.load %arg2[%c0_1, %c0_2] : memref<4x2xf32, #tpu.memory_space<vmem>>, vector<4x2xf32>
    %cst = arith.constant dense<0.000000e+00> : vector<512x2xf32>
    %2 = tpu.matmul %0, %1, %cst {dimension_numbers = #tpu.dot_dimension_numbers<[1], [0], [0], [1], [0, 0, 1, 1], [], []>} : vector<512x4xf32>, vector<4x2xf32>, vector<512x2xf32> -> vector<512x2xf32>
    %c0_3 = arith.constant 0 : index
    %c0_4 = arith.constant 0 : index
    %3 = vector.load %arg3[%c0_3, %c0_4] : memref<512x2xf32, #tpu.memory_space<vmem>>, vector<512x2xf32>
    tpu.vector_store %arg3[%c0_3, %c0_4], %2 {strides = array<i32>} : memref<512x2xf32, #tpu.memory_space<vmem>>, vector<512x2xf32>,
    %cst_5 = arith.constant dense<0.000000e+00> : vector<2xf32>
    %4 = vector.multi_reduction <add>, %2, %cst_5 [0] : vector<512x2xf32> to vector<2xf32>
    %5 = vector.shape_cast %4 : vector<2xf32> to vector<1x2xf32>
    %6 = arith.mulf %2, %2 : vector<512x2xf32>
    %cst_6 = arith.constant dense<0.000000e+00> : vector<2xf32>
    %7 = vector.multi_reduction <add>, %6, %cst_6 [0] : vector<512x2xf32> to vector<2xf32>
    %8 = vector.shape_cast %7 : vector<2xf32> to vector<1x2xf32>
    %9 = tpu.concatenate %5, %8 in 0 : vector<1x2xf32>, vector<1x2xf32> -> vector<2x2xf32>
    %10 = vector.shape_cast %9 : vector<2x2xf32> to vector<1x2x2xf32>
    %c0_7 = arith.constant 0 : index
    %c0_8 = arith.constant 0 : index
    %c0_9 = arith.constant 0 : index
    %11 = vector.load %arg4[%c0_7, %c0_8, %c0_9] : memref<1x2x2xf32, #tpu.memory_space<vmem>>, vector<1x2x2xf32>
    tpu.vector_store %arg4[%c0_7, %c0_8, %c0_9], %10 {strides = array<i32>} : memref<1x2x2xf32, #tpu.memory_space<vmem>>, vector<1x2x2xf32>,
    return
  }
  func.func @transform_0(%arg0: i32) -> (i32, i32) {
    %c0_i32 = arith.constant 0 : i32
    %c0_i32_0 = arith.constant 0 : i32
    return %arg0, %c0_i32 : i32, i32
  }
  func.func @transform_1(%arg0: i32) -> (i32, i32) {
    %c0_i32 = arith.constant 0 : i32
    %c0_i32_0 = arith.constant 0 : i32
    %c0_i32_1 = arith.constant 0 : i32
    return %c0_i32, %c0_i32_0 : i32, i32
  }
  func.func @transform_2(%arg0: i32) -> (i32, i32) {
    %c0_i32 = arith.constant 0 : i32
    %c0_i32_0 = arith.constant 0 : i32
    return %arg0, %c0_i32 : i32, i32
  }
  func.func @transform_3(%arg0: i32) -> (i32, i32, i32) {
    %c0_i32 = arith.constant 0 : i32
    %c0_i32_0 = arith.constant 0 : i32
    %c0_i32_1 = arith.constant 0 : i32
    return %arg0, %c0_i32, %c0_i32_0 : i32, i32, i32
  }
}

module attributes {stable_mosaic.version = 11 : i64} {
  func.func @_bn_silu_residual_kernel(%arg0: i32, %arg1: memref<512x4xf32, #tpu.memory_space<vmem>>, %arg2: memref<1x4xf32, #tpu.memory_space<vmem>>, %arg3: memref<1x4xf32, #tpu.memory_space<vmem>>, %arg4: memref<512x4xf32, #tpu.memory_space<vmem>>, %arg5: memref<512x4xf32, #tpu.memory_space<vmem>>) attributes {dimension_semantics = [#tpu.dimension_semantics<parallel>], iteration_bounds = array<i64: 1>, scalar_prefetch = 0 : i64, scratch_operands = 0 : i64, tpu.core_type = #tpu.core_type<tc>, window_params = [{transform_indices = @transform_0, window_bounds = array<i64: 512, 4>}, {pipeline_mode = #tpu.pipeline_mode<synchronous>, transform_indices = @transform_1, window_bounds = array<i64: 1, 4>}, {pipeline_mode = #tpu.pipeline_mode<synchronous>, transform_indices = @transform_2, window_bounds = array<i64: 1, 4>}, {transform_indices = @transform_3, window_bounds = array<i64: 512, 4>}, {transform_indices = @transform_4, window_bounds = array<i64: 512, 4>}]} {
    %c0 = arith.constant 0 : index
    %c0_0 = arith.constant 0 : index
    %0 = vector.load %arg1[%c0, %c0_0] : memref<512x4xf32, #tpu.memory_space<vmem>>, vector<512x4xf32>
    %c0_1 = arith.constant 0 : index
    %c0_2 = arith.constant 0 : index
    %1 = vector.load %arg2[%c0_1, %c0_2] : memref<1x4xf32, #tpu.memory_space<vmem>>, vector<1x4xf32>
    %2 = vector.broadcast %1 : vector<1x4xf32> to vector<512x4xf32>
    %3 = arith.mulf %0, %2 : vector<512x4xf32>
    %c0_3 = arith.constant 0 : index
    %c0_4 = arith.constant 0 : index
    %4 = vector.load %arg3[%c0_3, %c0_4] : memref<1x4xf32, #tpu.memory_space<vmem>>, vector<1x4xf32>
    %5 = vector.broadcast %4 : vector<1x4xf32> to vector<512x4xf32>
    %6 = arith.addf %3, %5 : vector<512x4xf32>
    %7 = arith.negf %6 : vector<512x4xf32>
    %8 = math.exp %7 : vector<512x4xf32>
    %cst = arith.constant 1.000000e+00 : f32
    %9 = vector.broadcast %cst : f32 to vector<512x4xf32>
    %10 = arith.addf %9, %8 : vector<512x4xf32>
    %11 = arith.divf %9, %10 : vector<512x4xf32>
    %12 = arith.mulf %6, %11 : vector<512x4xf32>
    %c0_5 = arith.constant 0 : index
    %c0_6 = arith.constant 0 : index
    %13 = vector.load %arg4[%c0_5, %c0_6] : memref<512x4xf32, #tpu.memory_space<vmem>>, vector<512x4xf32>
    %14 = arith.addf %12, %13 : vector<512x4xf32>
    %c0_7 = arith.constant 0 : index
    %c0_8 = arith.constant 0 : index
    %15 = vector.load %arg5[%c0_7, %c0_8] : memref<512x4xf32, #tpu.memory_space<vmem>>, vector<512x4xf32>
    tpu.vector_store %arg5[%c0_7, %c0_8], %14 {strides = array<i32>} : memref<512x4xf32, #tpu.memory_space<vmem>>, vector<512x4xf32>,
    return
  }
  func.func @transform_0(%arg0: i32) -> (i32, i32) {
    %c0_i32 = arith.constant 0 : i32
    %c0_i32_0 = arith.constant 0 : i32
    return %arg0, %c0_i32 : i32, i32
  }
  func.func @transform_1(%arg0: i32) -> (i32, i32) {
    %c0_i32 = arith.constant 0 : i32
    %c0_i32_0 = arith.constant 0 : i32
    %c0_i32_1 = arith.constant 0 : i32
    return %c0_i32, %c0_i32_0 : i32, i32
  }
  func.func @transform_2(%arg0: i32) -> (i32, i32) {
    %c0_i32 = arith.constant 0 : i32
    %c0_i32_0 = arith.constant 0 : i32
    %c0_i32_1 = arith.constant 0 : i32
    return %c0_i32, %c0_i32_0 : i32, i32
  }
  func.func @transform_3(%arg0: i32) -> (i32, i32) {
    %c0_i32 = arith.constant 0 : i32
    %c0_i32_0 = arith.constant 0 : i32
    return %arg0, %c0_i32 : i32, i32
  }
  func.func @transform_4(%arg0: i32) -> (i32, i32) {
    %c0_i32 = arith.constant 0 : i32
    %c0_i32_0 = arith.constant 0 : i32
    return %arg0, %c0_i32 : i32, i32
  }
}

module attributes {stable_mosaic.version = 11 : i64} {
  func.func @_conv3x3_stats_kernel(%arg0: i32, %arg1: memref<1x256x2xf32, #tpu.memory_space<vmem>>, %arg2: memref<1x2xf32, #tpu.memory_space<vmem>>, %arg3: memref<1x2xf32, #tpu.memory_space<vmem>>, %arg4: memref<9x2x4xf32, #tpu.memory_space<vmem>>, %arg5: memref<1x256x4xf32, #tpu.memory_space<vmem>>, %arg6: memref<1x2x4xf32, #tpu.memory_space<vmem>>, %arg7: memref<290x2xf32, #tpu.memory_space<vmem>>) attributes {dimension_semantics = [#tpu.dimension_semantics<parallel>], iteration_bounds = array<i64: 2>, scalar_prefetch = 0 : i64, scratch_operands = 1 : i64, tpu.core_type = #tpu.core_type<tc>, window_params = [{transform_indices = @transform_0, window_bounds = array<i64: 1, 256, 2>}, {pipeline_mode = #tpu.pipeline_mode<synchronous>, transform_indices = @transform_1, window_bounds = array<i64: 1, 2>}, {pipeline_mode = #tpu.pipeline_mode<synchronous>, transform_indices = @transform_2, window_bounds = array<i64: 1, 2>}, {pipeline_mode = #tpu.pipeline_mode<synchronous>, transform_indices = @transform_3, window_bounds = array<i64: 9, 2, 4>}, {transform_indices = @transform_4, window_bounds = array<i64: 1, 256, 4>}, {transform_indices = @transform_5, window_bounds = array<i64: 1, 2, 4>}]} {
    %c0 = arith.constant 0 : index
    %c0_0 = arith.constant 0 : index
    %c0_1 = arith.constant 0 : index
    %0 = vector.load %arg1[%c0, %c0_0, %c0_1] : memref<1x256x2xf32, #tpu.memory_space<vmem>>, vector<1x256x2xf32>
    %1 = vector.shape_cast %0 : vector<1x256x2xf32> to vector<256x2xf32>
    %c0_2 = arith.constant 0 : index
    %c0_3 = arith.constant 0 : index
    %2 = vector.load %arg2[%c0_2, %c0_3] : memref<1x2xf32, #tpu.memory_space<vmem>>, vector<1x2xf32>
    %3 = vector.broadcast %2 : vector<1x2xf32> to vector<256x2xf32>
    %4 = arith.mulf %1, %3 : vector<256x2xf32>
    %c0_4 = arith.constant 0 : index
    %c0_5 = arith.constant 0 : index
    %5 = vector.load %arg3[%c0_4, %c0_5] : memref<1x2xf32, #tpu.memory_space<vmem>>, vector<1x2xf32>
    %6 = vector.broadcast %5 : vector<1x2xf32> to vector<256x2xf32>
    %7 = arith.addf %4, %6 : vector<256x2xf32>
    %8 = arith.negf %7 : vector<256x2xf32>
    %9 = math.exp %8 : vector<256x2xf32>
    %cst = arith.constant 1.000000e+00 : f32
    %10 = vector.broadcast %cst : f32 to vector<256x2xf32>
    %11 = arith.addf %10, %9 : vector<256x2xf32>
    %12 = arith.divf %10, %11 : vector<256x2xf32>
    %13 = arith.mulf %7, %12 : vector<256x2xf32>
    %cst_6 = arith.constant 0.000000e+00 : f32
    %14 = vector.broadcast %cst_6 : f32 to vector<290x2xf32>
    %c0_7 = arith.constant 0 : index
    %c0_8 = arith.constant 0 : index
    %15 = vector.load %arg7[%c0_7, %c0_8] : memref<290x2xf32, #tpu.memory_space<vmem>>, vector<290x2xf32>
    tpu.vector_store %arg7[%c0_7, %c0_8], %14 {strides = array<i32>} : memref<290x2xf32, #tpu.memory_space<vmem>>, vector<290x2xf32>,
    %c17 = arith.constant 17 : index
    %c0_9 = arith.constant 0 : index
    %16 = vector.load %arg7[%c17, %c0_9] : memref<290x2xf32, #tpu.memory_space<vmem>>, vector<256x2xf32>
    tpu.vector_store %arg7[%c17, %c0_9], %13 {strides = array<i32>} : memref<290x2xf32, #tpu.memory_space<vmem>>, vector<256x2xf32>,
    %17 = tpu.iota {dimensions = array<i32: 0>} : vector<256x1xi32>
    %c16_i32 = arith.constant 16 : i32
    %c0_i32 = arith.constant 0 : i32
    %18 = arith.cmpi eq, %c16_i32, %c0_i32 : i32
    %c1_i32 = arith.constant 1 : i32
    %19 = arith.select %18, %c1_i32, %c16_i32 : i32
    %20 = vector.broadcast %19 : i32 to vector<256x1xi32>
    %21 = arith.remsi %17, %20 : vector<256x1xi32>
    %c0_i32_10 = arith.constant 0 : i32
    %22 = vector.broadcast %c0_i32_10 : i32 to vector<256x1xi32>
    %23 = arith.cmpi ne, %21, %22 : vector<256x1xi32>
    %c0_i32_11 = arith.constant 0 : i32
    %24 = vector.broadcast %c0_i32_11 : i32 to vector<256x1xi32>
    %25 = arith.cmpi slt, %21, %24 : vector<256x1xi32>
    %c0_i32_12 = arith.constant 0 : i32
    %26 = arith.cmpi slt, %19, %c0_i32_12 : i32
    %27 = vector.broadcast %26 : i1 to vector<256x1xi1>
    %28 = vector.broadcast %27 : vector<256x1xi1> to vector<256x1xi1>
    %29 = arith.xori %25, %28 : vector<256x1xi1>
    %30 = arith.andi %29, %23 : vector<256x1xi1>
    %31 = vector.broadcast %19 : i32 to vector<256x1xi32>
    %32 = arith.addi %21, %31 : vector<256x1xi32>
    %33 = arith.select %30, %32, %21 : vector<256x1xi1>, vector<256x1xi32>
    %cst_13 = arith.constant 0.000000e+00 : f32
    %34 = vector.broadcast %cst_13 : f32 to vector<256x4xf32>
    %c0_14 = arith.constant 0 : index
    %c0_15 = arith.constant 0 : index
    %35 = vector.load %arg7[%c0_14, %c0_15] : memref<290x2xf32, #tpu.memory_space<vmem>>, vector<256x2xf32>
    %c-1_i32 = arith.constant -1 : i32
    %36 = vector.broadcast %c-1_i32 : i32 to vector<256x1xi32>
    %37 = arith.addi %33, %36 : vector<256x1xi32>
    %c0_i32_16 = arith.constant 0 : i32
    %38 = vector.broadcast %c0_i32_16 : i32 to vector<256x1xi32>
    %39 = arith.cmpi sge, %37, %38 : vector<256x1xi32>
    %c16_i32_17 = arith.constant 16 : i32
    %40 = vector.broadcast %c16_i32_17 : i32 to vector<256x1xi32>
    %41 = arith.cmpi slt, %37, %40 : vector<256x1xi32>
    %42 = arith.andi %39, %41 : vector<256x1xi1>
    %cst_18 = arith.constant 0.000000e+00 : f32
    %43 = vector.broadcast %cst_18 : f32 to vector<256x2xf32>
    %44 = vector.shape_cast %42 : vector<256x1xi1> to vector<256x1xi1>
    %45 = vector.broadcast %44 : vector<256x1xi1> to vector<256x2xi1>
    %46 = arith.select %45, %35, %43 : vector<256x2xi1>, vector<256x2xf32>
    %c0_19 = arith.constant 0 : index
    %c0_20 = arith.constant 0 : index
    %c0_21 = arith.constant 0 : index
    %47 = vector.load %arg4[%c0_19, %c0_20, %c0_21] : memref<9x2x4xf32, #tpu.memory_space<vmem>>, vector<1x2x4xf32>
    %48 = vector.shape_cast %47 : vector<1x2x4xf32> to vector<2x4xf32>
    %cst_22 = arith.constant dense<0.000000e+00> : vector<256x4xf32>
    %49 = tpu.matmul %46, %48, %cst_22 {dimension_numbers = #tpu.dot_dimension_numbers<[1], [0], [0], [1], [0, 0, 1, 1], [], []>} : vector<256x2xf32>, vector<2x4xf32>, vector<256x4xf32> -> vector<256x4xf32>
    %50 = arith.addf %34, %49 : vector<256x4xf32>
    %c1 = arith.constant 1 : index
    %c0_23 = arith.constant 0 : index
    %51 = vector.load %arg7[%c1, %c0_23] : memref<290x2xf32, #tpu.memory_space<vmem>>, vector<256x2xf32>
    %c1_24 = arith.constant 1 : index
    %c0_25 = arith.constant 0 : index
    %c0_26 = arith.constant 0 : index
    %52 = vector.load %arg4[%c1_24, %c0_25, %c0_26] : memref<9x2x4xf32, #tpu.memory_space<vmem>>, vector<1x2x4xf32>
    %53 = vector.shape_cast %52 : vector<1x2x4xf32> to vector<2x4xf32>
    %cst_27 = arith.constant dense<0.000000e+00> : vector<256x4xf32>
    %54 = tpu.matmul %51, %53, %cst_27 {dimension_numbers = #tpu.dot_dimension_numbers<[1], [0], [0], [1], [0, 0, 1, 1], [], []>} : vector<256x2xf32>, vector<2x4xf32>, vector<256x4xf32> -> vector<256x4xf32>
    %55 = arith.addf %50, %54 : vector<256x4xf32>
    %c2 = arith.constant 2 : index
    %c0_28 = arith.constant 0 : index
    %56 = vector.load %arg7[%c2, %c0_28] : memref<290x2xf32, #tpu.memory_space<vmem>>, vector<256x2xf32>
    %c1_i32_29 = arith.constant 1 : i32
    %57 = vector.broadcast %c1_i32_29 : i32 to vector<256x1xi32>
    %58 = arith.addi %33, %57 : vector<256x1xi32>
    %c0_i32_30 = arith.constant 0 : i32
    %59 = vector.broadcast %c0_i32_30 : i32 to vector<256x1xi32>
    %60 = arith.cmpi sge, %58, %59 : vector<256x1xi32>
    %c16_i32_31 = arith.constant 16 : i32
    %61 = vector.broadcast %c16_i32_31 : i32 to vector<256x1xi32>
    %62 = arith.cmpi slt, %58, %61 : vector<256x1xi32>
    %63 = arith.andi %60, %62 : vector<256x1xi1>
    %cst_32 = arith.constant 0.000000e+00 : f32
    %64 = vector.broadcast %cst_32 : f32 to vector<256x2xf32>
    %65 = vector.shape_cast %63 : vector<256x1xi1> to vector<256x1xi1>
    %66 = vector.broadcast %65 : vector<256x1xi1> to vector<256x2xi1>
    %67 = arith.select %66, %56, %64 : vector<256x2xi1>, vector<256x2xf32>
    %c2_33 = arith.constant 2 : index
    %c0_34 = arith.constant 0 : index
    %c0_35 = arith.constant 0 : index
    %68 = vector.load %arg4[%c2_33, %c0_34, %c0_35] : memref<9x2x4xf32, #tpu.memory_space<vmem>>, vector<1x2x4xf32>
    %69 = vector.shape_cast %68 : vector<1x2x4xf32> to vector<2x4xf32>
    %cst_36 = arith.constant dense<0.000000e+00> : vector<256x4xf32>
    %70 = tpu.matmul %67, %69, %cst_36 {dimension_numbers = #tpu.dot_dimension_numbers<[1], [0], [0], [1], [0, 0, 1, 1], [], []>} : vector<256x2xf32>, vector<2x4xf32>, vector<256x4xf32> -> vector<256x4xf32>
    %71 = arith.addf %55, %70 : vector<256x4xf32>
    %c16 = arith.constant 16 : index
    %c0_37 = arith.constant 0 : index
    %72 = vector.load %arg7[%c16, %c0_37] : memref<290x2xf32, #tpu.memory_space<vmem>>, vector<256x2xf32>
    %c-1_i32_38 = arith.constant -1 : i32
    %73 = vector.broadcast %c-1_i32_38 : i32 to vector<256x1xi32>
    %74 = arith.addi %33, %73 : vector<256x1xi32>
    %c0_i32_39 = arith.constant 0 : i32
    %75 = vector.broadcast %c0_i32_39 : i32 to vector<256x1xi32>
    %76 = arith.cmpi sge, %74, %75 : vector<256x1xi32>
    %c16_i32_40 = arith.constant 16 : i32
    %77 = vector.broadcast %c16_i32_40 : i32 to vector<256x1xi32>
    %78 = arith.cmpi slt, %74, %77 : vector<256x1xi32>
    %79 = arith.andi %76, %78 : vector<256x1xi1>
    %cst_41 = arith.constant 0.000000e+00 : f32
    %80 = vector.broadcast %cst_41 : f32 to vector<256x2xf32>
    %81 = vector.shape_cast %79 : vector<256x1xi1> to vector<256x1xi1>
    %82 = vector.broadcast %81 : vector<256x1xi1> to vector<256x2xi1>
    %83 = arith.select %82, %72, %80 : vector<256x2xi1>, vector<256x2xf32>
    %c3 = arith.constant 3 : index
    %c0_42 = arith.constant 0 : index
    %c0_43 = arith.constant 0 : index
    %84 = vector.load %arg4[%c3, %c0_42, %c0_43] : memref<9x2x4xf32, #tpu.memory_space<vmem>>, vector<1x2x4xf32>
    %85 = vector.shape_cast %84 : vector<1x2x4xf32> to vector<2x4xf32>
    %cst_44 = arith.constant dense<0.000000e+00> : vector<256x4xf32>
    %86 = tpu.matmul %83, %85, %cst_44 {dimension_numbers = #tpu.dot_dimension_numbers<[1], [0], [0], [1], [0, 0, 1, 1], [], []>} : vector<256x2xf32>, vector<2x4xf32>, vector<256x4xf32> -> vector<256x4xf32>
    %87 = arith.addf %71, %86 : vector<256x4xf32>
    %c17_45 = arith.constant 17 : index
    %c0_46 = arith.constant 0 : index
    %88 = vector.load %arg7[%c17_45, %c0_46] : memref<290x2xf32, #tpu.memory_space<vmem>>, vector<256x2xf32>
    %c4 = arith.constant 4 : index
    %c0_47 = arith.constant 0 : index
    %c0_48 = arith.constant 0 : index
    %89 = vector.load %arg4[%c4, %c0_47, %c0_48] : memref<9x2x4xf32, #tpu.memory_space<vmem>>, vector<1x2x4xf32>
    %90 = vector.shape_cast %89 : vector<1x2x4xf32> to vector<2x4xf32>
    %cst_49 = arith.constant dense<0.000000e+00> : vector<256x4xf32>
    %91 = tpu.matmul %88, %90, %cst_49 {dimension_numbers = #tpu.dot_dimension_numbers<[1], [0], [0], [1], [0, 0, 1, 1], [], []>} : vector<256x2xf32>, vector<2x4xf32>, vector<256x4xf32> -> vector<256x4xf32>
    %92 = arith.addf %87, %91 : vector<256x4xf32>
    %c18 = arith.constant 18 : index
    %c0_50 = arith.constant 0 : index
    %93 = vector.load %arg7[%c18, %c0_50] : memref<290x2xf32, #tpu.memory_space<vmem>>, vector<256x2xf32>
    %c1_i32_51 = arith.constant 1 : i32
    %94 = vector.broadcast %c1_i32_51 : i32 to vector<256x1xi32>
    %95 = arith.addi %33, %94 : vector<256x1xi32>
    %c0_i32_52 = arith.constant 0 : i32
    %96 = vector.broadcast %c0_i32_52 : i32 to vector<256x1xi32>
    %97 = arith.cmpi sge, %95, %96 : vector<256x1xi32>
    %c16_i32_53 = arith.constant 16 : i32
    %98 = vector.broadcast %c16_i32_53 : i32 to vector<256x1xi32>
    %99 = arith.cmpi slt, %95, %98 : vector<256x1xi32>
    %100 = arith.andi %97, %99 : vector<256x1xi1>
    %cst_54 = arith.constant 0.000000e+00 : f32
    %101 = vector.broadcast %cst_54 : f32 to vector<256x2xf32>
    %102 = vector.shape_cast %100 : vector<256x1xi1> to vector<256x1xi1>
    %103 = vector.broadcast %102 : vector<256x1xi1> to vector<256x2xi1>
    %104 = arith.select %103, %93, %101 : vector<256x2xi1>, vector<256x2xf32>
    %c5 = arith.constant 5 : index
    %c0_55 = arith.constant 0 : index
    %c0_56 = arith.constant 0 : index
    %105 = vector.load %arg4[%c5, %c0_55, %c0_56] : memref<9x2x4xf32, #tpu.memory_space<vmem>>, vector<1x2x4xf32>
    %106 = vector.shape_cast %105 : vector<1x2x4xf32> to vector<2x4xf32>
    %cst_57 = arith.constant dense<0.000000e+00> : vector<256x4xf32>
    %107 = tpu.matmul %104, %106, %cst_57 {dimension_numbers = #tpu.dot_dimension_numbers<[1], [0], [0], [1], [0, 0, 1, 1], [], []>} : vector<256x2xf32>, vector<2x4xf32>, vector<256x4xf32> -> vector<256x4xf32>
    %108 = arith.addf %92, %107 : vector<256x4xf32>
    %c32 = arith.constant 32 : index
    %c0_58 = arith.constant 0 : index
    %109 = vector.load %arg7[%c32, %c0_58] : memref<290x2xf32, #tpu.memory_space<vmem>>, vector<256x2xf32>
    %c-1_i32_59 = arith.constant -1 : i32
    %110 = vector.broadcast %c-1_i32_59 : i32 to vector<256x1xi32>
    %111 = arith.addi %33, %110 : vector<256x1xi32>
    %c0_i32_60 = arith.constant 0 : i32
    %112 = vector.broadcast %c0_i32_60 : i32 to vector<256x1xi32>
    %113 = arith.cmpi sge, %111, %112 : vector<256x1xi32>
    %c16_i32_61 = arith.constant 16 : i32
    %114 = vector.broadcast %c16_i32_61 : i32 to vector<256x1xi32>
    %115 = arith.cmpi slt, %111, %114 : vector<256x1xi32>
    %116 = arith.andi %113, %115 : vector<256x1xi1>
    %cst_62 = arith.constant 0.000000e+00 : f32
    %117 = vector.broadcast %cst_62 : f32 to vector<256x2xf32>
    %118 = vector.shape_cast %116 : vector<256x1xi1> to vector<256x1xi1>
    %119 = vector.broadcast %118 : vector<256x1xi1> to vector<256x2xi1>
    %120 = arith.select %119, %109, %117 : vector<256x2xi1>, vector<256x2xf32>
    %c6 = arith.constant 6 : index
    %c0_63 = arith.constant 0 : index
    %c0_64 = arith.constant 0 : index
    %121 = vector.load %arg4[%c6, %c0_63, %c0_64] : memref<9x2x4xf32, #tpu.memory_space<vmem>>, vector<1x2x4xf32>
    %122 = vector.shape_cast %121 : vector<1x2x4xf32> to vector<2x4xf32>
    %cst_65 = arith.constant dense<0.000000e+00> : vector<256x4xf32>
    %123 = tpu.matmul %120, %122, %cst_65 {dimension_numbers = #tpu.dot_dimension_numbers<[1], [0], [0], [1], [0, 0, 1, 1], [], []>} : vector<256x2xf32>, vector<2x4xf32>, vector<256x4xf32> -> vector<256x4xf32>
    %124 = arith.addf %108, %123 : vector<256x4xf32>
    %c33 = arith.constant 33 : index
    %c0_66 = arith.constant 0 : index
    %125 = vector.load %arg7[%c33, %c0_66] : memref<290x2xf32, #tpu.memory_space<vmem>>, vector<256x2xf32>
    %c7 = arith.constant 7 : index
    %c0_67 = arith.constant 0 : index
    %c0_68 = arith.constant 0 : index
    %126 = vector.load %arg4[%c7, %c0_67, %c0_68] : memref<9x2x4xf32, #tpu.memory_space<vmem>>, vector<1x2x4xf32>
    %127 = vector.shape_cast %126 : vector<1x2x4xf32> to vector<2x4xf32>
    %cst_69 = arith.constant dense<0.000000e+00> : vector<256x4xf32>
    %128 = tpu.matmul %125, %127, %cst_69 {dimension_numbers = #tpu.dot_dimension_numbers<[1], [0], [0], [1], [0, 0, 1, 1], [], []>} : vector<256x2xf32>, vector<2x4xf32>, vector<256x4xf32> -> vector<256x4xf32>
    %129 = arith.addf %124, %128 : vector<256x4xf32>
    %c34 = arith.constant 34 : index
    %c0_70 = arith.constant 0 : index
    %130 = vector.load %arg7[%c34, %c0_70] : memref<290x2xf32, #tpu.memory_space<vmem>>, vector<256x2xf32>
    %c1_i32_71 = arith.constant 1 : i32
    %131 = vector.broadcast %c1_i32_71 : i32 to vector<256x1xi32>
    %132 = arith.addi %33, %131 : vector<256x1xi32>
    %c0_i32_72 = arith.constant 0 : i32
    %133 = vector.broadcast %c0_i32_72 : i32 to vector<256x1xi32>
    %134 = arith.cmpi sge, %132, %133 : vector<256x1xi32>
    %c16_i32_73 = arith.constant 16 : i32
    %135 = vector.broadcast %c16_i32_73 : i32 to vector<256x1xi32>
    %136 = arith.cmpi slt, %132, %135 : vector<256x1xi32>
    %137 = arith.andi %134, %136 : vector<256x1xi1>
    %cst_74 = arith.constant 0.000000e+00 : f32
    %138 = vector.broadcast %cst_74 : f32 to vector<256x2xf32>
    %139 = vector.shape_cast %137 : vector<256x1xi1> to vector<256x1xi1>
    %140 = vector.broadcast %139 : vector<256x1xi1> to vector<256x2xi1>
    %141 = arith.select %140, %130, %138 : vector<256x2xi1>, vector<256x2xf32>
    %c8 = arith.constant 8 : index
    %c0_75 = arith.constant 0 : index
    %c0_76 = arith.constant 0 : index
    %142 = vector.load %arg4[%c8, %c0_75, %c0_76] : memref<9x2x4xf32, #tpu.memory_space<vmem>>, vector<1x2x4xf32>
    %143 = vector.shape_cast %142 : vector<1x2x4xf32> to vector<2x4xf32>
    %cst_77 = arith.constant dense<0.000000e+00> : vector<256x4xf32>
    %144 = tpu.matmul %141, %143, %cst_77 {dimension_numbers = #tpu.dot_dimension_numbers<[1], [0], [0], [1], [0, 0, 1, 1], [], []>} : vector<256x2xf32>, vector<2x4xf32>, vector<256x4xf32> -> vector<256x4xf32>
    %145 = arith.addf %129, %144 : vector<256x4xf32>
    %146 = vector.shape_cast %145 : vector<256x4xf32> to vector<1x256x4xf32>
    %c0_78 = arith.constant 0 : index
    %c0_79 = arith.constant 0 : index
    %c0_80 = arith.constant 0 : index
    %147 = vector.load %arg5[%c0_78, %c0_79, %c0_80] : memref<1x256x4xf32, #tpu.memory_space<vmem>>, vector<1x256x4xf32>
    tpu.vector_store %arg5[%c0_78, %c0_79, %c0_80], %146 {strides = array<i32>} : memref<1x256x4xf32, #tpu.memory_space<vmem>>, vector<1x256x4xf32>,
    %cst_81 = arith.constant dense<0.000000e+00> : vector<4xf32>
    %148 = vector.multi_reduction <add>, %145, %cst_81 [0] : vector<256x4xf32> to vector<4xf32>
    %149 = vector.shape_cast %148 : vector<4xf32> to vector<1x4xf32>
    %150 = arith.mulf %145, %145 : vector<256x4xf32>
    %cst_82 = arith.constant dense<0.000000e+00> : vector<4xf32>
    %151 = vector.multi_reduction <add>, %150, %cst_82 [0] : vector<256x4xf32> to vector<4xf32>
    %152 = vector.shape_cast %151 : vector<4xf32> to vector<1x4xf32>
    %153 = tpu.concatenate %149, %152 in 0 : vector<1x4xf32>, vector<1x4xf32> -> vector<2x4xf32>
    %154 = vector.shape_cast %153 : vector<2x4xf32> to vector<1x2x4xf32>
    %c0_83 = arith.constant 0 : index
    %c0_84 = arith.constant 0 : index
    %c0_85 = arith.constant 0 : index
    %155 = vector.load %arg6[%c0_83, %c0_84, %c0_85] : memref<1x2x4xf32, #tpu.memory_space<vmem>>, vector<1x2x4xf32>
    tpu.vector_store %arg6[%c0_83, %c0_84, %c0_85], %154 {strides = array<i32>} : memref<1x2x4xf32, #tpu.memory_space<vmem>>, vector<1x2x4xf32>,
    return
  }
  func.func @transform_0(%arg0: i32) -> (i32, i32, i32) {
    %c0_i32 = arith.constant 0 : i32
    %c0_i32_0 = arith.constant 0 : i32
    %c0_i32_1 = arith.constant 0 : i32
    return %arg0, %c0_i32, %c0_i32_0 : i32, i32, i32
  }
  func.func @transform_1(%arg0: i32) -> (i32, i32) {
    %c0_i32 = arith.constant 0 : i32
    %c0_i32_0 = arith.constant 0 : i32
    %c0_i32_1 = arith.constant 0 : i32
    return %c0_i32, %c0_i32_0 : i32, i32
  }
  func.func @transform_2(%arg0: i32) -> (i32, i32) {
    %c0_i32 = arith.constant 0 : i32
    %c0_i32_0 = arith.constant 0 : i32
    %c0_i32_1 = arith.constant 0 : i32
    return %c0_i32, %c0_i32_0 : i32, i32
  }
  func.func @transform_3(%arg0: i32) -> (i32, i32, i32) {
    %c0_i32 = arith.constant 0 : i32
    %c0_i32_0 = arith.constant 0 : i32
    %c0_i32_1 = arith.constant 0 : i32
    %c0_i32_2 = arith.constant 0 : i32
    return %c0_i32, %c0_i32_0, %c0_i32_1 : i32, i32, i32
  }
  func.func @transform_4(%arg0: i32) -> (i32, i32, i32) {
    %c0_i32 = arith.constant 0 : i32
    %c0_i32_0 = arith.constant 0 : i32
    %c0_i32_1 = arith.constant 0 : i32
    return %arg0, %c0_i32, %c0_i32_0 : i32, i32, i32
  }
  func.func @transform_5(%arg0: i32) -> (i32, i32, i32) {
    %c0_i32 = arith.constant 0 : i32
    %c0_i32_0 = arith.constant 0 : i32
    %c0_i32_1 = arith.constant 0 : i32
    return %arg0, %c0_i32, %c0_i32_0 : i32, i32, i32
  }
}

</mosaic_0001>

<bundles_post_ra>
// kernel: residual_block_forward.8
= control target key start
LH: loop header
LB: loop body
LE: loop exit
PB: predicated region body
PF: predicated region fallthrough
CT: control target
= control target key end

     0   :  { %9 = vsyncpa [#allocation3], 0  ;;  %s1970_s0 = inlined_call_operand.hbm [shape: f32[512,4], index: 0, kind: input, shape index: {}]   ;;  %s1971_s1 = inlined_call_operand.hbm [shape: f32[1,4], index: 1, kind: input, shape index: {}]   ;;  %s1972_s2 = inlined_call_operand.hbm [shape: f32[1,4], index: 2, kind: input, shape index: {}]   ;;  %s1973_s3 = inlined_call_operand.hbm [shape: f32[512,4], index: 3, kind: input, shape index: {}, may-alias: {3,4}]   ;;  %s1974_s4 = inlined_call_operand.hbm [shape: f32[512,4], index: 4, kind: output, shape index: {}, may-alias: {3,4}]  }
   0x1   :  { %10 = vsyncpa [#allocation6], 0 }
   0x2   :  { %11 = vsyncpa [#allocation9], 0 }
   0x3   :  { %12 = vsyncpa [#allocation4], 0  ;;  %s1384_s15 = smov [#allocation5]   ;;  %s1385_s17 = smov [#allocation2]  }
   0x4   :  { %s31_s16 = sshll.u32 %s1384_s15, 4  ;;  %s18_s18 = sshll.u32 %s1385_s17, 4  ;;  %s32_s16 = int_to_ptr.vmem [resolvable:$true] %s31_s16  ;;  %s1416_s18 = int_to_ptr.vmem [resolvable:$true] %s18_s18 }
   0x5   :  { %s1266_s21 = scalar_lea.hbm %s1971_s1, 16 }
   0x6   :  { %p1267_p0 = scmp.ne.s32.totalorder %s1971_s1, %s1266_s21  ;;  %p1270_p1 = scmp.lt.u32.totalorder %s1266_s21, %s1971_s1 }
   0x8   :  { %p1272_p2 = pnand %p1270_p1, %p1267_p0 }
   0xa   :  { %1275 = shalt.err (!%p1272_p2)
}
   0xb   :  { %s1276_s26 = scalar_lea.vmem %s32_s16, 16  ;;  %s1280_s27 = scalar_lea.vmem %s32_s16, 32 }
   0xc   :  { %p1277_p3 = scmp.ne.s32.totalorder %s32_s16, %s1276_s26  ;;  %p1281_p4 = scmp.lt.s32.totalorder %s32_s16, %s32_s16 }
   0xd   :  { %p1282_p5 = scmp.lt.s32.totalorder %s1280_s27, %s1276_s26 }
   0xf   :  { %p1283_p6 = por %p1282_p5, %p1281_p4 }
  0x11   :  { %p1284_p7 = pnand %p1283_p6, %p1277_p3 }
  0x13   :  { %1287 = shalt.err (!%p1284_p7)
}
  0x14   :  { %34 = dma.hbm_to_vmem [thread:$0]  %s1971_s1, 16, %s32_s16, [#allocation6]  }
  0x15   :  { %s1288_s6 = scalar_lea.hbm %s1970_s0, 8192 }
  0x16   :  { %p1289_p8 = scmp.ne.s32.totalorder %s1970_s0, %s1288_s6  ;;  %p1292_p9 = scmp.lt.u32.totalorder %s1288_s6, %s1970_s0 }
  0x18   :  { %p1294_p10 = pnand %p1292_p9, %p1289_p8 }
  0x1a   :  { %1297 = shalt.err (!%p1294_p10)
}
  0x1b   :  { %s1298_s11 = scalar_lea.vmem %s1416_s18, 8192  ;;  %p1303_p12 = scmp.lt.s32.totalorder %s1416_s18, %s1416_s18 }
  0x1c   :  { %p1299_p11 = scmp.ne.s32.totalorder %s1416_s18, %s1298_s11  ;;  %p1304_p13 = scmp.lt.s32.totalorder %s1298_s11, %s1298_s11 }
  0x1e   :  { %p1305_p0 = por %p1304_p13, %p1303_p12 }
  0x20   :  { %p1306_p1 = pnand %p1305_p0, %p1299_p11 }
  0x22   :  { %1309 = shalt.err (!%p1306_p1)
}
  0x23   :  { %s1386_s1 = smov 128   ;;  %s1387_s12 = smov 8  }
  0x24   :  { %24 = dma.hbm_to_vmem [thread:$0]  %s1970_s0, 8192, %s1416_s18, [#allocation3], %s1386_s1, %s1386_s1, %s1387_s12  }
  0x25   :  { %s1388_s15 = smov [#allocation7]   ;;  %s1389_s17 = smov [#allocation8]  }
  0x26   :  { %s41_s16 = sshll.u32 %s1388_s15, 4  ;;  %s50_s19 = sshll.u32 %s1389_s17, 4  ;;  %s42_s16 = int_to_ptr.vmem [resolvable:$true] %s41_s16  ;;  %s1450_s19 = int_to_ptr.vmem [resolvable:$true] %s50_s19 }
  0x27   :  { %s1310_s22 = scalar_lea.hbm %s1972_s2, 16 }
  0x28   :  { %p1311_p2 = scmp.ne.s32.totalorder %s1972_s2, %s1310_s22  ;;  %p1314_p3 = scmp.lt.u32.totalorder %s1310_s22, %s1972_s2 }
  0x2a   :  { %p1316_p4 = pnand %p1314_p3, %p1311_p2 }
  0x2c   :  { %1319 = shalt.err (!%p1316_p4)
}
  0x2d   :  { %s1320_s0 = scalar_lea.vmem %s42_s16, 16  ;;  %s1324_s18 = scalar_lea.vmem %s42_s16, 32 }
  0x2e   :  { %p1321_p5 = scmp.ne.s32.totalorder %s42_s16, %s1320_s0  ;;  %p1325_p6 = scmp.lt.s32.totalorder %s42_s16, %s42_s16 }
  0x2f   :  { %p1326_p7 = scmp.lt.s32.totalorder %s1324_s18, %s1320_s0 }
  0x31   :  { %p1327_p8 = por %p1326_p7, %p1325_p6 }
  0x33   :  { %p1328_p9 = pnand %p1327_p8, %p1321_p5 }
  0x35   :  { %1331 = shalt.err (!%p1328_p9)
}
  0x36   :  { %44 = dma.hbm_to_vmem [thread:$0]  %s1972_s2, 16, %s42_s16, [#allocation6]  }
  0x37   :  { %s1332_s5 = scalar_lea.hbm %s1973_s3, 8192 }
  0x38   :  { %p1333_p10 = scmp.ne.s32.totalorder %s1973_s3, %s1332_s5  ;;  %p1336_p11 = scmp.lt.u32.totalorder %s1332_s5, %s1973_s3 }
  0x3a   :  { %p1338_p12 = pnand %p1336_p11, %p1333_p10 }
  0x3c   :  { %1341 = shalt.err (!%p1338_p12)
}
  0x3d   :  { %s1342_s10 = scalar_lea.vmem %s1450_s19, 8192  ;;  %p1347_p0 = scmp.lt.s32.totalorder %s1450_s19, %s1450_s19 }
  0x3e   :  { %p1343_p13 = scmp.ne.s32.totalorder %s1450_s19, %s1342_s10  ;;  %p1348_p1 = scmp.lt.s32.totalorder %s1342_s10, %s1342_s10 }
  0x40   :  { %p1349_p2 = por %p1348_p1, %p1347_p0 }
  0x42   :  { %p1350_p3 = pnand %p1349_p2, %p1343_p13 }
  0x44   :  { %1353 = shalt.err (!%p1350_p3)
}
  0x45   :  { %56 = dma.hbm_to_vmem [thread:$0]  %s1973_s3, 8192, %s1450_s19, [#allocation9], %s1386_s1, %s1386_s1, %s1387_s12  }
  0x46   :  { %1376 = dma.done.wait [#allocation3], 8192  }
  0x47   :  { %1377 = vsyncadd [#allocation3], 4294959104 }
  0x48   :  { %1378 = dma.done.wait [#allocation6], 32  }
  0x49   :  { %1379 = vsyncadd [#allocation6], 4294967264 }
  0x4a   :  { %1380 = dma.done.wait [#allocation9], 8192  }
  0x4b   :  { %1381 = vsyncadd [#allocation9], 4294959104  ;;  %v69_v0 = vld [vmem:[#allocation2] sm:$0xff]  ;;  %v70_v4 = vld [vmem:[#allocation2 + $0x8] sm:$0xff]  ;;  %vm851_vm0 = vcmask 31744   ;;  %s1390_s3 = smov [#allocation10]  }
  0x4c   :  { %v1484_v1 = vld [vmem:[#allocation5] ss:$0 sm:$0xff]  ;;  %v1486_v2 = vld [vmem:[#allocation7] ss:$0 sm:$0xff]  ;;  %v71_v6 = vld [vmem:[#allocation2 + $0x10] sm:$0xff]  ;;  %s921_s13 = sshll.u32 %s1390_s3, 4  ;;  %s922_s13 = int_to_ptr.vmem [resolvable:$true] %s921_s13 }
  0x4d   :  { %v140_v3 = vmul.f32 %v1484_v1, %v69_v0  ;;  %v141_v5 = vmul.f32 %v1484_v1, %v70_v4  ;;  %v72_v7 = vld [vmem:[#allocation2 + $0x18] sm:$0xff]  ;;  %v142_v9 = vmul.f32 %v1484_v1, %v71_v6  ;;  %v73_v11 = vld [vmem:[#allocation2 + $0x20] sm:$0xff]  ;;  %v74_v14 = vld [vmem:[#allocation2 + $0x28] sm:$0xff]  ;;  %s1354_s14 = scalar_lea.vmem %s922_s13, 8192  ;;  %p1359_p5 = scmp.lt.s32.totalorder %s922_s13, %s922_s13 }
  0x4e   :  { %v143_v10 = vmul.f32 %v1484_v1, %v72_v7  ;;  %v144_v13 = vmul.f32 %v1484_v1, %v73_v11  ;;  %v75_v15 = vld [vmem:[#allocation2 + $0x30] sm:$0xff]  ;;  %v145_v19 = vmul.f32 %v1484_v1, %v74_v14  ;;  %v76_v20 = vld [vmem:[#allocation2 + $0x38] sm:$0xff]  ;;  %v77_v25 = vld [vmem:[#allocation2 + $0x40] sm:$0xff]  ;;  %p1355_p4 = scmp.ne.s32.totalorder %s922_s13, %s1354_s14  ;;  %p1360_p6 = scmp.lt.s32.totalorder %s1354_s14, %s1354_s14 }
  0x4f   :  { %v1491_v8 = vadd.f32 %v1486_v2, %v140_v3  ;;  %v1496_v12 = vadd.f32 %v1486_v2, %v141_v5  ;;  %v1501_v17 = vadd.f32 %v1486_v2, %v142_v9  ;;  %v146_v23 = vmul.f32 %v1484_v1, %v75_v15  ;;  %v78_v26 = vld [vmem:[#allocation2 + $0x48] sm:$0xff]  ;;  %v79_v30 = vld [vmem:[#allocation2 + $0x50] sm:$0xff]  ;;  %v80_v34 = vld [vmem:[#allocation2 + $0x58] sm:$0xff] }
  0x50   :  { %v1504_v18 = vadd.f32 %v1486_v2, %v143_v10  ;;  %v1509_v22 = vadd.f32 %v1486_v2, %v144_v13  ;;  %v147_v24 = vmul.f32 %v1484_v1, %v76_v20  ;;  %v1516_v29 = vadd.f32 %v1486_v2, %v145_v19  ;;  %v81_v38 = vld [vmem:[#allocation2 + $0x60] sm:$0xff]  ;;  %v82_v39 = vld [vmem:[#allocation2 + $0x68] sm:$0xff]  ;;  %v83_v49 = vld [vmem:[#allocation2 + $0x70] sm:$0xff]  ;;  %p1361_p7 = por %p1360_p6, %p1359_p5 }
  0x51   :  { %v937_v16 = vmul.f32 -1.442695, %v1491_v8  ;;  %v938_v21 = vmul.f32 -1.442695, %v1496_v12  ;;  %v939_v27 = vmul.f32 -1.442695, %v1501_v17  ;;  %v1520_v32 = vadd.f32 %v1486_v2, %v146_v23 }
  0x52   :  { %v940_v28 = vmul.f32 -1.442695, %v1504_v18  ;;  %v941_v31 = vmul.f32 -1.442695, %v1509_v22  ;;  %v1523_v33 = vadd.f32 %v1486_v2, %v147_v24  ;;  %v942_v35 = vmul.f32 -1.442695, %v1516_v29  ;;  %p1362_p8 = pnand %p1361_p7, %p1355_p4 }
  0x53   :  { %1008 = vpow2.f32 %v937_v16  ;;  %v148_v36 = vmul.f32 %v1484_v1, %v77_v25  ;;  %v149_v37 = vmul.f32 %v1484_v1, %v78_v26  ;;  %v943_v40 = vmul.f32 -1.442695, %v1520_v32  ;;  %v84_v55 = vld [vmem:[#allocation2 + $0x78] sm:$0xff]  ;;  %v85_v58 = vld [vmem:[#allocation2 + $0x80] sm:$0xff]  ;;  %v86_v63 = vld [vmem:[#allocation2 + $0x88] sm:$0xff] }
  0x54   :  { %1010 = vpow2.f32 %v938_v21  ;;  %v944_v41 = vmul.f32 -1.442695, %v1523_v33  ;;  %v150_v42 = vmul.f32 %v1484_v1, %v79_v30  ;;  %v151_v45 = vmul.f32 %v1484_v1, %v80_v34  ;;  %v87_v5 = vld [vmem:[#allocation2 + $0x90] sm:$0xff]  ;;  %v88_v10 = vld [vmem:[#allocation2 + $0x98] sm:$0xff]  ;;  %v89_v16 = vld [vmem:[#allocation2 + $0xa0] sm:$0xff] }
  0x55   :  { %1012 = vpow2.f32 %v939_v27  ;;  %v1532_v43 = vadd.f32 %v1486_v2, %v148_v36  ;;  %v1535_v44 = vadd.f32 %v1486_v2, %v149_v37  ;;  %v152_v47 = vmul.f32 %v1484_v1, %v81_v38  ;;  %v90_v24 = vld [vmem:[#allocation2 + $0xa8] sm:$0xff]  ;;  %v91_v36 = vld [vmem:[#allocation2 + $0xb0] sm:$0xff] }
  0x56   :  { %1014 = vpow2.f32 %v940_v28  ;;  %v1539_v46 = vadd.f32 %v1486_v2, %v150_v42  ;;  %v153_v48 = vmul.f32 %v1484_v1, %v82_v39  ;;  %v1546_v52 = vadd.f32 %v1486_v2, %v151_v45 }
  0x57   :  { %1016 = vpow2.f32 %v941_v31  ;;  %v945_v50 = vmul.f32 -1.442695, %v1532_v43  ;;  %v946_v51 = vmul.f32 -1.442695, %v1535_v44  ;;  %v1550_v54 = vadd.f32 %v1486_v2, %v152_v47 }
  0x58   :  { %1018 = vpow2.f32 %v942_v35  ;;  %v947_v53 = vmul.f32 -1.442695, %v1539_v46  ;;  %v948_v56 = vmul.f32 -1.442695, %v1546_v52  ;;  %v154_v57 = vmul.f32 %v1484_v1, %v83_v49 }
  0x59   :  { %1020 = vpow2.f32 %v943_v40  ;;  %v949_v59 = vmul.f32 -1.442695, %v1550_v54  ;;  %v1556_v60 = vadd.f32 %v1486_v2, %v153_v48  ;;  %v155_v62 = vmul.f32 %v1484_v1, %v84_v55 }
  0x5a   :  { %1022 = vpow2.f32 %v944_v41  ;;  %v156_v4 = vmul.f32 %v1484_v1, %v85_v58  ;;  %v1561_v9 = vadd.f32 %v1486_v2, %v154_v57  ;;  %v157_v15 = vmul.f32 %v1484_v1, %v86_v63 }
  0x5b   :  { %1024 = vpow2.f32 %v945_v50  ;;  %v1564_v14 = vmul.f32 -1.442695, %v1556_v60  ;;  %v1568_v21 = vadd.f32 %v1486_v2, %v155_v62  ;;  %v158_v23 = vmul.f32 %v1484_v1, %v87_v5 }
  0x5c   :  { %1026 = vpow2.f32 %v946_v51  ;;  %v1572_v27 = vadd.f32 %v1486_v2, %v156_v4  ;;  %v159_v28 = vmul.f32 %v1484_v1, %v88_v10  ;;  %v1576_v34 = vmul.f32 -1.442695, %v1561_v9 }
  0x5d   :  { %v1009_v61 = vpop.eup %1008  ;;  %1028 = vpow2.f32 %v947_v53  ;;  %v160_v35 = vmul.f32 %v1484_v1, %v89_v16  ;;  %v1580_v39 = vadd.f32 %v1486_v2, %v157_v15  ;;  %v161_v40 = vmul.f32 %v1484_v1, %v90_v24  ;;  %v92_v53 = vld [vmem:[#allocation2 + $0xb8] sm:$0xff] }
  0x5e   :  { %v1011_v0 = vpop.eup %1010  ;;  %v467_v3 = vadd.f32 1.0, %v1009_v61  ;;  %1030 = vpow2.f32 %v948_v56  ;;  %v952_v45 = vmul.f32 -1.442695, %v1568_v21  ;;  %v1585_v47 = vadd.f32 %v1486_v2, %v158_v23  ;;  %v724_v23 = vld [vmem:[#allocation8 + $0x8] sm:$0xff] }
  0x5f   :  { %v1013_v6 = vpop.eup %1012  ;;  %v468_v7 = vadd.f32 1.0, %v1011_v0  ;;  %1032 = vpow2.f32 %v949_v59  ;;  %v1588_v50 = vadd.f32 %v1486_v2, %v159_v28  ;;  %v162_v51 = vmul.f32 %v1484_v1, %v91_v36  ;;  %v93_v0 = vld [vmem:[#allocation2 + $0xc0] sm:$0xff] }
  0x60   :  { %v1015_v11 = vpop.eup %1014  ;;  %1034 = vrcp.f32 %v467_v3  ;;  %v469_v13 = vadd.f32 1.0, %v1013_v6  ;;  %v953_v57 = vmul.f32 -1.442695, %v1572_v27  ;;  %v1593_v58 = vadd.f32 %v1486_v2, %v160_v35 }
  0x61   :  { %v1017_v19 = vpop.eup %1016  ;;  %1036 = vrcp.f32 %v468_v7  ;;  %v470_v20 = vadd.f32 1.0, %v1015_v11  ;;  %v954_v62 = vmul.f32 -1.442695, %v1580_v39  ;;  %v1597_v63 = vadd.f32 %v1486_v2, %v161_v40  ;;  %v94_v7 = vld [vmem:[#allocation2 + $0xc8] sm:$0xff] }
  0x62   :  { %v1019_v25 = vpop.eup %1018  ;;  %1038 = vrcp.f32 %v469_v13  ;;  %v471_v26 = vadd.f32 1.0, %v1017_v19  ;;  %v955_v5 = vmul.f32 -1.442695, %v1585_v47  ;;  %v163_v6 = vmul.f32 %v1484_v1, %v92_v53  ;;  %v723_v11 = vld [vmem:[#allocation8] sm:$0xff] }
  0x63   :  { %v1021_v30 = vpop.eup %1020  ;;  %1040 = vrcp.f32 %v470_v20  ;;  %v472_v31 = vadd.f32 1.0, %v1019_v25  ;;  %v956_v15 = vmul.f32 -1.442695, %v1588_v50  ;;  %v1603_v16 = vadd.f32 %v1486_v2, %v162_v51 }
  0x64   :  { %v1023_v37 = vpop.eup %1022  ;;  %1042 = vrcp.f32 %v471_v26  ;;  %v473_v38 = vadd.f32 1.0, %v1021_v30  ;;  %v957_v24 = vmul.f32 -1.442695, %v1593_v58  ;;  %v164_v25 = vmul.f32 %v1484_v1, %v93_v0  ;;  %v725_v30 = vld [vmem:[#allocation8 + $0x10] sm:$0xff] }
  0x65   :  { %v1025_v41 = vpop.eup %1024  ;;  %1044 = vrcp.f32 %v472_v31  ;;  %v474_v42 = vadd.f32 1.0, %v1023_v37  ;;  %v958_v31 = vmul.f32 -1.442695, %v1597_v63  ;;  %v165_v35 = vmul.f32 %v1484_v1, %v94_v7 }
  0x66   :  { %v1027_v48 = vpop.eup %1026  ;;  %1046 = vrcp.f32 %v473_v38  ;;  %v475_v49 = vadd.f32 1.0, %v1025_v41  ;;  %v1614_v40 = vadd.f32 %v1486_v2, %v163_v6 }
  0x67   :  { %v1029_v55 = vpop.eup %1028  ;;  %1048 = vrcp.f32 %v474_v42  ;;  %v476_v56 = vadd.f32 1.0, %v1027_v48  ;;  %v727_v48 = vld [vmem:[#allocation8 + $0x20] sm:$0xff]  ;;  %v1627_v0 = vadd.f32 %v1486_v2, %v165_v35 }
  0x68   :  { %v1031_v59 = vpop.eup %1030  ;;  %1050 = vrcp.f32 %v475_v49  ;;  %v477_v61 = vadd.f32 1.0, %v1029_v55  ;;  %v959_v49 = vmul.f32 -1.442695, %v1603_v16  ;;  %v728_v55 = vld [vmem:[#allocation8 + $0x28] sm:$0xff]  ;;  %v960_v6 = vmul.f32 -1.442695, %v1614_v40 }
  0x69   :  { %v1033_v3 = vpop.eup %1032  ;;  %1052 = vrcp.f32 %v476_v56  ;;  %v478_v4 = vadd.f32 1.0, %v1031_v59  ;;  %v95_v56 = vld [vmem:[#allocation2 + $0xd0] sm:$0xff] }
  0x6a   :  { %v1035_v10 = vpop.eup %1034  ;;  %1054 = vrcp.f32 %v477_v61  ;;  %v479_v13 = vadd.f32 1.0, %v1033_v3  ;;  %v729_v61 = vld [vmem:[#allocation8 + $0x30] sm:$0xff] }
  0x6b   :  { %v1037_v19 = vpop.eup %1036  ;;  %v659_v20 = vmul.f32 %v1035_v10, %v1491_v8  ;;  %1056 = vrcp.f32 %v478_v4  ;;  %v726_v8 = vld [vmem:[#allocation8 + $0x18] sm:$0xff] }
  0x6c   :  { %v1039_v26 = vpop.eup %1038  ;;  %v660_v28 = vmul.f32 %v1037_v19, %v1496_v12  ;;  %1058 = vrcp.f32 %v479_v13  ;;  %v730_v4 = vld [vmem:[#allocation8 + $0x38] sm:$0xff] }
  0x6d   :  { %v1041_v36 = vpop.eup %1040  ;;  %v787_v37 = vadd.f32 %v723_v11, %v659_v20  ;;  %v661_v38 = vmul.f32 %v1039_v26, %v1501_v17  ;;  %1060 = vpow2.f32 %v1564_v14  ;;  %v1622_v14 = vadd.f32 %v1486_v2, %v164_v25  ;;  %v96_v13 = vld [vmem:[#allocation2 + $0xd8] sm:$0xff] }
  0x6e   :  { %v1043_v41 = vpop.eup %1042  ;;  %v788_v42 = vadd.f32 %v724_v23, %v660_v28  ;;  %v662_v12 = vmul.f32 %v1041_v36, %v1504_v18  ;;  %1062 = vpow2.f32 %v1576_v34  ;;  %v166_v11 = vmul.f32 %v1484_v1, %v95_v56  ;;  %v734_v36 = vld [vmem:[#allocation8 + $0x58] sm:$0xff] }
  0x6f   :  { %v1045_v51 = vpop.eup %1044  ;;  %852 = vst.msk [vmem:[#allocation10] sm:$0xff] %vm851_vm0, %v787_v37  ;;  %v789_v53 = vadd.f32 %v725_v30, %v661_v38  ;;  %v663_v17 = vmul.f32 %v1043_v41, %v1509_v22  ;;  %1064 = vpow2.f32 %v952_v45  ;;  %v961_v23 = vmul.f32 -1.442695, %v1622_v14  ;;  %v97_v37 = vld [vmem:[#allocation2 + $0xe0] sm:$0xff] }
  0x70   :  { %v1047_v59 = vpop.eup %1046  ;;  %853 = vst.msk [vmem:[#allocation10 + $0x8] sm:$0xff] %vm851_vm0, %v788_v42  ;;  %v790_v18 = vadd.f32 %v726_v8, %v662_v12  ;;  %v664_v34 = vmul.f32 %v1045_v51, %v1516_v29  ;;  %1066 = vpow2.f32 %v953_v57  ;;  %v731_v57 = vld [vmem:[#allocation8 + $0x40] sm:$0xff]  ;;  %v962_v28 = vmul.f32 -1.442695, %v1627_v0 }
  0x71   :  { %v1049_v3 = vpop.eup %1048  ;;  %854 = vst.msk [vmem:[#allocation10 + $0x10] sm:$0xff] %vm851_vm0, %v789_v53  ;;  %v791_v22 = vadd.f32 %v727_v48, %v663_v17  ;;  %v665_v45 = vmul.f32 %v1047_v59, %v1520_v32  ;;  %1068 = vpow2.f32 %v954_v62  ;;  %v732_v62 = vld [vmem:[#allocation8 + $0x48] sm:$0xff]  ;;  %v1647_v41 = vadd.f32 %v1486_v2, %v166_v11  ;;  %v100_v17 = vld [vmem:[#allocation2 + $0xf8] sm:$0xff] }
  0x72   :  { %v1051_v7 = vpop.eup %1050  ;;  %855 = vst.msk [vmem:[#allocation10 + $0x18] sm:$0xff] %vm851_vm0, %v790_v18  ;;  %v792_v10 = vadd.f32 %v728_v55, %v664_v34  ;;  %v666_v29 = vmul.f32 %v1049_v3, %v1523_v33  ;;  %1070 = vpow2.f32 %v955_v5  ;;  %v733_v5 = vld [vmem:[#allocation8 + $0x50] sm:$0xff]  ;;  %v98_v12 = vld [vmem:[#allocation2 + $0xe8] sm:$0xff]  ;;  %v101_v18 = vld [vmem:[#allocation2 + $0x100] sm:$0xff] }
  0x73   :  { %v1053_v19 = vpop.eup %1052  ;;  %856 = vst.msk [vmem:[#allocation10 + $0x20] sm:$0xff] %vm851_vm0, %v791_v22  ;;  %v793_v20 = vadd.f32 %v729_v61, %v665_v45  ;;  %v667_v32 = vmul.f32 %v1051_v7, %v1532_v43  ;;  %1072 = vpow2.f32 %v956_v15  ;;  %v167_v15 = vmul.f32 %v1484_v1, %v96_v13  ;;  %v102_v45 = vld [vmem:[#allocation2 + $0x108] sm:$0xff] }
  0x74   :  { %v1055_v25 = vpop.eup %1054  ;;  %857 = vst.msk [vmem:[#allocation10 + $0x28] sm:$0xff] %vm851_vm0, %v792_v10  ;;  %v794_v26 = vadd.f32 %v730_v4, %v666_v29  ;;  %v668_v33 = vmul.f32 %v1053_v19, %v1535_v44  ;;  %1074 = vpow2.f32 %v957_v24  ;;  %v735_v24 = vld [vmem:[#allocation8 + $0x60] sm:$0xff]  ;;  %v1659_v3 = vmul.f32 -1.442695, %v1647_v41  ;;  %v103_v29 = vld [vmem:[#allocation2 + $0x110] sm:$0xff] }
  0x75   :  { %v1057_v30 = vpop.eup %1056  ;;  %858 = vst.msk [vmem:[#allocation10 + $0x30] sm:$0xff] %vm851_vm0, %v793_v20  ;;  %v795_v35 = vadd.f32 %v731_v57, %v667_v32  ;;  %v669_v43 = vmul.f32 %v1055_v25, %v1539_v46  ;;  %1076 = vpow2.f32 %v958_v31  ;;  %v169_v22 = vmul.f32 %v1484_v1, %v98_v12 }
  0x76   :  { %v1059_v38 = vpop.eup %1058  ;;  %859 = vst.msk [vmem:[#allocation10 + $0x38] sm:$0xff] %vm851_vm0, %v794_v26  ;;  %v796_v8 = vadd.f32 %v732_v62, %v668_v33  ;;  %v670_v44 = vmul.f32 %v1057_v30, %v1546_v52  ;;  %1078 = vpow2.f32 %v959_v49  ;;  %v168_v52 = vmul.f32 %v1484_v1, %v97_v37  ;;  %v99_v49 = vld [vmem:[#allocation2 + $0xf0] sm:$0xff] }
  0x77   :  { %v1061_v42 = vpop.eup %1060  ;;  %860 = vst.msk [vmem:[#allocation10 + $0x40] sm:$0xff] %vm851_vm0, %v795_v35  ;;  %v797_v46 = vadd.f32 %v733_v5, %v669_v43  ;;  %v671_v31 = vmul.f32 %v1059_v38, %v1550_v54  ;;  %1080 = vpow2.f32 %v960_v6  ;;  %v1655_v54 = vadd.f32 %v1486_v2, %v167_v15 }
  0x78   :  { %v1063_v48 = vpop.eup %1062  ;;  %861 = vst.msk [vmem:[#allocation10 + $0x48] sm:$0xff] %vm851_vm0, %v796_v8  ;;  %v798_v51 = vadd.f32 %v734_v36, %v670_v44  ;;  %v480_v53 = vadd.f32 1.0, %v1061_v42  ;;  %1082 = vpow2.f32 %v961_v23  ;;  %v170_v7 = vmul.f32 %v1484_v1, %v99_v49 }
  0x79   :  { %v1065_v55 = vpop.eup %1064  ;;  %862 = vst.msk [vmem:[#allocation10 + $0x50] sm:$0xff] %vm851_vm0, %v797_v46  ;;  %v799_v56 = vadd.f32 %v735_v24, %v671_v31  ;;  %v481_v59 = vadd.f32 1.0, %v1063_v48  ;;  %1084 = vpow2.f32 %v962_v28  ;;  %v171_v10 = vmul.f32 %v1484_v1, %v100_v17  ;;  %v104_v28 = vld [vmem:[#allocation2 + $0x118] sm:$0xff]  ;;  %v105_v31 = vld [vmem:[#allocation2 + $0x120] sm:$0xff] }
  0x7a   :  { %v1067_v34 = vpop.eup %1066  ;;  %863 = vst.msk [vmem:[#allocation10 + $0x58] sm:$0xff] %vm851_vm0, %v798_v51  ;;  %1086 = vrcp.f32 %v480_v53  ;;  %v482_v61 = vadd.f32 1.0, %v1065_v55  ;;  %v1666_v13 = vadd.f32 %v1486_v2, %v168_v52  ;;  %v172_v19 = vmul.f32 %v1484_v1, %v101_v18  ;;  %v736_v18 = vld [vmem:[#allocation8 + $0x68] sm:$0xff] }
  0x7b   :  { %v1069_v4 = vpop.eup %1068  ;;  %864 = vst.msk [vmem:[#allocation10 + $0x60] sm:$0xff] %vm851_vm0, %v799_v56  ;;  %1088 = vrcp.f32 %v481_v59  ;;  %v483_v6 = vadd.f32 1.0, %v1067_v34  ;;  %v1670_v62 = vmul.f32 -1.442695, %v1655_v54  ;;  %v173_v23 = vmul.f32 %v1484_v1, %v102_v45  ;;  %v106_v56 = vld [vmem:[#allocation2 + $0x128] sm:$0xff]  ;;  %v107_v45 = vld [vmem:[#allocation2 + $0x130] sm:$0xff] }
  0x7c   :  { %v1071_v57 = vpop.eup %1070  ;;  %1090 = vrcp.f32 %v482_v61  ;;  %v484_v11 = vadd.f32 1.0, %v1069_v4  ;;  %v1674_v33 = vadd.f32 %v1486_v2, %v169_v22  ;;  %v174_v5 = vmul.f32 %v1484_v1, %v103_v29 }
  0x7d   :  { %v1073_v20 = vpop.eup %1072  ;;  %1092 = vrcp.f32 %v483_v6  ;;  %v485_v32 = vadd.f32 1.0, %v1071_v57  ;;  %v1678_v43 = vadd.f32 %v1486_v2, %v170_v7  ;;  %v1681_v36 = vadd.f32 %v1486_v2, %v171_v10  ;;  %v737_v7 = vld [vmem:[#allocation8 + $0x70] sm:$0xff] }
  0x7e   :  { %v1075_v25 = vpop.eup %1074  ;;  %1094 = vrcp.f32 %v484_v11  ;;  %v486_v26 = vadd.f32 1.0, %v1073_v20  ;;  %v965_v38 = vmul.f32 -1.442695, %v1666_v13  ;;  %v1685_v8 = vadd.f32 %v1486_v2, %v172_v19  ;;  %v738_v19 = vld [vmem:[#allocation8 + $0x78] sm:$0xff] }
  0x7f   :  { %v1077_v30 = vpop.eup %1076  ;;  %1096 = vrcp.f32 %v485_v32  ;;  %v487_v35 = vadd.f32 1.0, %v1075_v25  ;;  %v1688_v42 = vadd.f32 %v1486_v2, %v173_v23  ;;  %v175_v46 = vmul.f32 %v1484_v1, %v104_v28 }
  0x80   :  { %v1079_v15 = vpop.eup %1078  ;;  %1098 = vrcp.f32 %v486_v26  ;;  %v488_v37 = vadd.f32 1.0, %v1077_v30  ;;  %v966_v51 = vmul.f32 -1.442695, %v1674_v33  ;;  %v1693_v53 = vadd.f32 %v1486_v2, %v174_v5  ;;  %v739_v26 = vld [vmem:[#allocation8 + $0x80] sm:$0xff] }
  0x81   :  { %v1081_v44 = vpop.eup %1080  ;;  %1100 = vrcp.f32 %v487_v35  ;;  %v489_v24 = vadd.f32 1.0, %v1079_v15  ;;  %v967_v17 = vmul.f32 -1.442695, %v1678_v43  ;;  %v968_v55 = vmul.f32 -1.442695, %v1681_v36 }
  0x82   :  { %v1083_v12 = vpop.eup %1082  ;;  %1102 = vrcp.f32 %v488_v37  ;;  %v490_v48 = vadd.f32 1.0, %v1081_v44  ;;  %v969_v61 = vmul.f32 -1.442695, %v1685_v8  ;;  %v176_v22 = vmul.f32 %v1484_v1, %v105_v31 }
  0x83   :  { %v1085_v52 = vpop.eup %1084  ;;  %1104 = vrcp.f32 %v489_v24  ;;  %v491_v49 = vadd.f32 1.0, %v1083_v12  ;;  %v970_v10 = vmul.f32 -1.442695, %v1688_v42  ;;  %v1702_v29 = vadd.f32 %v1486_v2, %v175_v46  ;;  %v741_v24 = vld [vmem:[#allocation8 + $0x90] sm:$0xff]  ;;  %v742_v12 = vld [vmem:[#allocation8 + $0x98] sm:$0xff] }
  0x84   :  { %v1087_v59 = vpop.eup %1086  ;;  %1106 = vrcp.f32 %v490_v48  ;;  %v492_v34 = vadd.f32 1.0, %v1085_v52  ;;  %v971_v20 = vmul.f32 -1.442695, %v1693_v53  ;;  %v177_v32 = vmul.f32 %v1484_v1, %v106_v56  ;;  %v108_v46 = vld [vmem:[#allocation2 + $0x138] sm:$0xff] }
  0x85   :  { %v1089_v4 = vpop.eup %1088  ;;  %v672_v6 = vmul.f32 %v1087_v59, %v1556_v60  ;;  %1108 = vrcp.f32 %v491_v49  ;;  %v178_v5 = vmul.f32 %v1484_v1, %v107_v45  ;;  %v1713_v15 = vadd.f32 %v1486_v2, %v176_v22  ;;  %v743_v49 = vld [vmem:[#allocation8 + $0xa0] sm:$0xff] }
  0x86   :  { %v1091_v57 = vpop.eup %1090  ;;  %v673_v11 = vmul.f32 %v1089_v4, %v1561_v9  ;;  %1110 = vrcp.f32 %v492_v34  ;;  %v740_v9 = vld [vmem:[#allocation8 + $0x88] sm:$0xff]  ;;  %v1721_v48 = vadd.f32 %v1486_v2, %v177_v32  ;;  %v179_v34 = vmul.f32 %v1484_v1, %v108_v46  ;;  %v747_v32 = vld [vmem:[#allocation8 + $0xc0] sm:$0xff] }
  0x87   :  { %v1093_v23 = vpop.eup %1092  ;;  %v800_v25 = vadd.f32 %v736_v18, %v672_v6  ;;  %v674_v60 = vmul.f32 %v1091_v57, %v1568_v21  ;;  %1112 = vpow2.f32 %v1659_v3  ;;  %v972_v3 = vmul.f32 -1.442695, %v1702_v29  ;;  %v744_v18 = vld [vmem:[#allocation8 + $0xa8] sm:$0xff]  ;;  %v746_v57 = vld [vmem:[#allocation8 + $0xb8] sm:$0xff] }
  0x88   :  { %v1095_v28 = vpop.eup %1094  ;;  %v801_v30 = vadd.f32 %v737_v7, %v673_v11  ;;  %v675_v35 = vmul.f32 %v1093_v23, %v1572_v27  ;;  %1114 = vpow2.f32 %v1670_v62  ;;  %v1726_v56 = vadd.f32 %v1486_v2, %v178_v5  ;;  %v109_v23 = vld [vmem:[#allocation2 + $0x140] sm:$0xff]  ;;  %v110_v5 = vld [vmem:[#allocation2 + $0x148] sm:$0xff] }
  0x89   :  { %v1097_v37 = vpop.eup %1096  ;;  %865 = vst.msk [vmem:[#allocation10 + $0x68] sm:$0xff] %vm851_vm0, %v800_v25  ;;  %v802_v44 = vadd.f32 %v738_v19, %v674_v60  ;;  %v676_v21 = vmul.f32 %v1095_v28, %v1580_v39  ;;  %1116 = vpow2.f32 %v965_v38  ;;  %v973_v4 = vmul.f32 -1.442695, %v1713_v15 }
  0x8a   :  { %v1099_v31 = vpop.eup %1098  ;;  %866 = vst.msk [vmem:[#allocation10 + $0x70] sm:$0xff] %vm851_vm0, %v801_v30  ;;  %v803_v27 = vadd.f32 %v739_v26, %v675_v35  ;;  %v677_v62 = vmul.f32 %v1097_v37, %v1585_v47  ;;  %1118 = vpow2.f32 %v966_v51  ;;  %v1743_v26 = vadd.f32 %v1486_v2, %v179_v34  ;;  %v111_v30 = vld [vmem:[#allocation2 + $0x150] sm:$0xff] }
  0x8b   :  { %v1101_v52 = vpop.eup %1100  ;;  %867 = vst.msk [vmem:[#allocation10 + $0x78] sm:$0xff] %vm851_vm0, %v802_v44  ;;  %v804_v39 = vadd.f32 %v740_v9, %v676_v21  ;;  %v678_v38 = vmul.f32 %v1099_v31, %v1588_v50  ;;  %1120 = vpow2.f32 %v967_v17  ;;  %v745_v17 = vld [vmem:[#allocation8 + $0xb0] sm:$0xff]  ;;  %v113_v21 = vld [vmem:[#allocation2 + $0x160] sm:$0xff]  ;;  %v114_v31 = vld [vmem:[#allocation2 + $0x168] sm:$0xff] }
  0x8c   :  { %v1103_v59 = vpop.eup %1102  ;;  %868 = vst.msk [vmem:[#allocation10 + $0x80] sm:$0xff] %vm851_vm0, %v803_v27  ;;  %v805_v47 = vadd.f32 %v741_v24, %v677_v62  ;;  %v679_v51 = vmul.f32 %v1101_v52, %v1593_v58  ;;  %1122 = vpow2.f32 %v968_v55  ;;  %v974_v55 = vmul.f32 -1.442695, %v1721_v48  ;;  %v112_v44 = vld [vmem:[#allocation2 + $0x158] sm:$0xff] }
  0x8d   :  { %v1105_v22 = vpop.eup %1104  ;;  %869 = vst.msk [vmem:[#allocation10 + $0x88] sm:$0xff] %vm851_vm0, %v804_v39  ;;  %v806_v45 = vadd.f32 %v742_v12, %v678_v38  ;;  %v680_v50 = vmul.f32 %v1103_v59, %v1597_v63  ;;  %1124 = vpow2.f32 %v969_v61  ;;  %v975_v61 = vmul.f32 -1.442695, %v1726_v56  ;;  %v115_v39 = vld [vmem:[#allocation2 + $0x170] sm:$0xff] }
  0x8e   :  { %v1107_v6 = vpop.eup %1106  ;;  %870 = vst.msk [vmem:[#allocation10 + $0x90] sm:$0xff] %vm851_vm0, %v805_v47  ;;  %v807_v7 = vadd.f32 %v743_v49, %v679_v51  ;;  %v681_v58 = vmul.f32 %v1105_v22, %v1603_v16  ;;  %1126 = vpow2.f32 %v970_v10  ;;  %v748_v10 = vld [vmem:[#allocation8 + $0xc8] sm:$0xff]  ;;  %v1753_v12 = vmul.f32 -1.442695, %v1743_v26  ;;  %v116_v51 = vld [vmem:[#allocation2 + $0x178] sm:$0xff] }
  0x8f   :  { %v1109_v11 = vpop.eup %1108  ;;  %871 = vst.msk [vmem:[#allocation10 + $0x98] sm:$0xff] %vm851_vm0, %v806_v45  ;;  %v808_v19 = vadd.f32 %v744_v18, %v680_v50  ;;  %v682_v63 = vmul.f32 %v1107_v6, %v1614_v40  ;;  %1128 = vpow2.f32 %v971_v20  ;;  %v182_v52 = vmul.f32 %v1484_v1, %v111_v30 }
  0x90   :  { %v1111_v25 = vpop.eup %1110  ;;  %872 = vst.msk [vmem:[#allocation10 + $0xa0] sm:$0xff] %vm851_vm0, %v807_v7  ;;  %v809_v60 = vadd.f32 %v745_v17, %v681_v58  ;;  %v683_v16 = vmul.f32 %v1109_v11, %v1622_v14  ;;  %1130 = vpow2.f32 %v972_v3  ;;  %v180_v14 = vmul.f32 %v1484_v1, %v109_v23 }
  0x91   :  { %v1113_v28 = vpop.eup %1112  ;;  %873 = vst.msk [vmem:[#allocation10 + $0xa8] sm:$0xff] %vm851_vm0, %v808_v19  ;;  %v810_v40 = vadd.f32 %v746_v57, %v682_v63  ;;  %v684_v20 = vmul.f32 %v1111_v25, %v1627_v0  ;;  %1132 = vpow2.f32 %v973_v4  ;;  %v181_v0 = vmul.f32 %v1484_v1, %v110_v5 }
  0x92   :  { %v1115_v35 = vpop.eup %1114  ;;  %874 = vst.msk [vmem:[#allocation10 + $0xb0] sm:$0xff] %vm851_vm0, %v809_v60  ;;  %v811_v9 = vadd.f32 %v747_v32, %v683_v16  ;;  %v493_v37 = vadd.f32 1.0, %v1113_v28  ;;  %1134 = vpow2.f32 %v974_v55  ;;  %v183_v59 = vmul.f32 %v1484_v1, %v112_v44 }
  0x93   :  { %v1117_v24 = vpop.eup %1116  ;;  %875 = vst.msk [vmem:[#allocation10 + $0xb8] sm:$0xff] %vm851_vm0, %v810_v40  ;;  %v812_v3 = vadd.f32 %v748_v10, %v684_v20  ;;  %v494_v46 = vadd.f32 1.0, %v1115_v35  ;;  %1136 = vpow2.f32 %v975_v61  ;;  %v184_v47 = vmul.f32 %v1484_v1, %v113_v21  ;;  %v117_v40 = vld [vmem:[#allocation2 + $0x180] sm:$0xff] }
  0x94   :  { %v1119_v27 = vpop.eup %1118  ;;  %876 = vst.msk [vmem:[#allocation10 + $0xc0] sm:$0xff] %vm851_vm0, %v811_v9  ;;  %1138 = vrcp.f32 %v493_v37  ;;  %v495_v62 = vadd.f32 1.0, %v1117_v24  ;;  %v1760_v22 = vadd.f32 %v1486_v2, %v180_v14  ;;  %v185_v45 = vmul.f32 %v1484_v1, %v114_v31  ;;  %v118_v37 = vld [vmem:[#allocation2 + $0x188] sm:$0xff] }
  0x95   :  { %v1121_v38 = vpop.eup %1120  ;;  %877 = vst.msk [vmem:[#allocation10 + $0xc8] sm:$0xff] %vm851_vm0, %v812_v3  ;;  %1140 = vrcp.f32 %v494_v46  ;;  %v496_v49 = vadd.f32 1.0, %v1119_v27  ;;  %v1764_v4 = vadd.f32 %v1486_v2, %v181_v0  ;;  %v186_v6 = vmul.f32 %v1484_v1, %v115_v39  ;;  %v119_v3 = vld [vmem:[#allocation2 + $0x190] sm:$0xff] }
  0x96   :  { %v1123_v18 = vpop.eup %1122  ;;  %1142 = vrcp.f32 %v495_v62  ;;  %v497_v34 = vadd.f32 1.0, %v1121_v38  ;;  %v1768_v57 = vadd.f32 %v1486_v2, %v182_v52  ;;  %v187_v55 = vmul.f32 %v1484_v1, %v116_v51  ;;  %v749_v0 = vld [vmem:[#allocation8 + $0xd0] sm:$0xff] }
  0x97   :  { %v1125_v50 = vpop.eup %1124  ;;  %1144 = vrcp.f32 %v496_v49  ;;  %v498_v17 = vadd.f32 1.0, %v1123_v18  ;;  %v1772_v63 = vadd.f32 %v1486_v2, %v183_v59  ;;  %v1775_v32 = vadd.f32 %v1486_v2, %v184_v47  ;;  %v120_v52 = vld [vmem:[#allocation2 + $0x198] sm:$0xff] }
  0x98   :  { %v1127_v7 = vpop.eup %1126  ;;  %1146 = vrcp.f32 %v497_v34  ;;  %v499_v58 = vadd.f32 1.0, %v1125_v50  ;;  %v977_v25 = vmul.f32 -1.442695, %v1760_v22  ;;  %v1779_v60 = vadd.f32 %v1486_v2, %v185_v45  ;;  %v750_v49 = vld [vmem:[#allocation8 + $0xd8] sm:$0xff]  ;;  %v751_v34 = vld [vmem:[#allocation8 + $0xe0] sm:$0xff] }
  0x99   :  { %v1129_v11 = vpop.eup %1128  ;;  %1148 = vrcp.f32 %v498_v17  ;;  %v500_v19 = vadd.f32 1.0, %v1127_v7  ;;  %v978_v5 = vmul.f32 -1.442695, %v1764_v4  ;;  %v1783_v28 = vadd.f32 %v1486_v2, %v186_v6 }
  0x9a   :  { %v1131_v61 = vpop.eup %1130  ;;  %1150 = vrcp.f32 %v499_v58  ;;  %v501_v23 = vadd.f32 1.0, %v1129_v11  ;;  %v979_v35 = vmul.f32 -1.442695, %v1768_v57  ;;  %v1787_v9 = vadd.f32 %v1486_v2, %v187_v55 }
  0x9b   :  { %v1133_v16 = vpop.eup %1132  ;;  %1152 = vrcp.f32 %v500_v19  ;;  %v502_v10 = vadd.f32 1.0, %v1131_v61  ;;  %v980_v21 = vmul.f32 -1.442695, %v1772_v63  ;;  %v981_v24 = vmul.f32 -1.442695, %v1775_v32 }
  0x9c   :  { %v1135_v20 = vpop.eup %1134  ;;  %1154 = vrcp.f32 %v501_v23  ;;  %v503_v30 = vadd.f32 1.0, %v1133_v16  ;;  %v982_v27 = vmul.f32 -1.442695, %v1779_v60  ;;  %v188_v62 = vmul.f32 %v1484_v1, %v117_v40 }
  0x9d   :  { %v1137_v14 = vpop.eup %1136  ;;  %1156 = vrcp.f32 %v502_v10  ;;  %v504_v44 = vadd.f32 1.0, %v1135_v20  ;;  %v983_v59 = vmul.f32 -1.442695, %v1783_v28  ;;  %v189_v47 = vmul.f32 %v1484_v1, %v118_v37  ;;  %v754_v10 = vld [vmem:[#allocation8 + $0xf8] sm:$0xff]  ;;  %v756_v37 = vld [vmem:[#allocation8 + $0x108] sm:$0xff] }
  0x9e   :  { %v1139_v46 = vpop.eup %1138  ;;  %1158 = vrcp.f32 %v503_v30  ;;  %v505_v31 = vadd.f32 1.0, %v1137_v14  ;;  %v984_v45 = vmul.f32 -1.442695, %v1787_v9  ;;  %v190_v50 = vmul.f32 %v1484_v1, %v119_v3  ;;  %v757_v3 = vld [vmem:[#allocation8 + $0x110] sm:$0xff] }
  0x9f   :  { %v1141_v39 = vpop.eup %1140  ;;  %v685_v38 = vmul.f32 %v1139_v46, %v1647_v41  ;;  %1160 = vrcp.f32 %v504_v44  ;;  %v752_v41 = vld [vmem:[#allocation8 + $0xe8] sm:$0xff]  ;;  %v191_v58 = vmul.f32 %v1484_v1, %v120_v52  ;;  %v1804_v61 = vadd.f32 %v1486_v2, %v188_v62 }
  0xa0   :  { %v1143_v51 = vpop.eup %1142  ;;  %v686_v18 = vmul.f32 %v1141_v39, %v1655_v54  ;;  %1162 = vrcp.f32 %v505_v31  ;;  %v753_v54 = vld [vmem:[#allocation8 + $0xf0] sm:$0xff] }
  0xa1   :  { %v1145_v17 = vpop.eup %1144  ;;  %v813_v6 = vadd.f32 %v749_v0, %v685_v38  ;;  %v687_v7 = vmul.f32 %v1143_v51, %v1666_v13  ;;  %1164 = vpow2.f32 %v1753_v12  ;;  %v1808_v12 = vld [vmem:[#allocation7] ss:$0 sm:$0xff]  ;;  %v985_v46 = vmul.f32 -1.442695, %v1804_v61  ;;  %v759_v38 = vld [vmem:[#allocation8 + $0x120] sm:$0xff] }
  0xa2   :  { %v1147_v55 = vpop.eup %1146  ;;  %v814_v11 = vadd.f32 %v750_v49, %v686_v18  ;;  %v688_v19 = vmul.f32 %v1145_v17, %v1674_v33  ;;  %1166 = vpow2.f32 %v977_v25  ;;  %v1811_v1 = vadd.f32 %v1808_v12, %v189_v47  ;;  %v755_v25 = vld [vmem:[#allocation8 + $0x100] sm:$0xff]  ;;  %v761_v17 = vld [vmem:[#allocation8 + $0x130] sm:$0xff] }
  0xa3   :  { %v1149_v23 = vpop.eup %1148  ;;  %878 = vst.msk [vmem:[#allocation10 + $0xd0] sm:$0xff] %vm851_vm0, %v813_v6  ;;  %v815_v16 = vadd.f32 %v751_v34, %v687_v7  ;;  %v689_v13 = vmul.f32 %v1147_v55, %v1678_v43  ;;  %1168 = vpow2.f32 %v978_v5  ;;  %v1816_v20 = vadd.f32 %v1808_v12, %v190_v50  ;;  %v121_v49 = vld [vmem:[#allocation2 + $0x1a0] sm:$0xff]  ;;  %v122_v34 = vld [vmem:[#allocation2 + $0x1a8] sm:$0xff]  ;;  %v123_v6 = vld [vmem:[#allocation2 + $0x1b0] sm:$0xff] }
  0xa4   :  { %v1151_v40 = vpop.eup %1150  ;;  %879 = vst.msk [vmem:[#allocation10 + $0xd8] sm:$0xff] %vm851_vm0, %v814_v11  ;;  %v816_v33 = vadd.f32 %v752_v41, %v688_v19  ;;  %v690_v2 = vmul.f32 %v1149_v23, %v1681_v36  ;;  %1170 = vpow2.f32 %v979_v35  ;;  %v1821_v14 = vadd.f32 %v1808_v12, %v191_v58  ;;  %v124_v55 = vld [vmem:[#allocation2 + $0x1b8] sm:$0xff]  ;;  %v125_v23 = vld [vmem:[#allocation2 + $0x1c0] sm:$0xff] }
  0xa5   :  { %v1153_v30 = vpop.eup %1152  ;;  %880 = vst.msk [vmem:[#allocation10 + $0xe0] sm:$0xff] %vm851_vm0, %v815_v16  ;;  %v817_v43 = vadd.f32 %v753_v54, %v689_v13  ;;  %v691_v5 = vmul.f32 %v1151_v40, %v1685_v8  ;;  %1172 = vpow2.f32 %v980_v21  ;;  %v758_v21 = vld [vmem:[#allocation8 + $0x118] sm:$0xff]  ;;  %v986_v62 = vmul.f32 -1.442695, %v1811_v1  ;;  %v126_v40 = vld [vmem:[#allocation2 + $0x1c8] sm:$0xff] }
  0xa6   :  { %v1155_v44 = vpop.eup %1154  ;;  %881 = vst.msk [vmem:[#allocation10 + $0xe8] sm:$0xff] %vm851_vm0, %v816_v33  ;;  %v818_v36 = vadd.f32 %v754_v10, %v690_v2  ;;  %v692_v35 = vmul.f32 %v1153_v30, %v1688_v42  ;;  %1174 = vpow2.f32 %v981_v24  ;;  %v987_v24 = vmul.f32 -1.442695, %v1816_v20  ;;  %v127_v30 = vld [vmem:[#allocation2 + $0x1d0] sm:$0xff] }
  0xa7   :  { %v1157_v0 = vpop.eup %1156  ;;  %882 = vst.msk [vmem:[#allocation10 + $0xf0] sm:$0xff] %vm851_vm0, %v817_v43  ;;  %v819_v31 = vadd.f32 %v755_v25, %v691_v5  ;;  %v693_v8 = vmul.f32 %v1155_v44, %v1693_v53  ;;  %1176 = vpow2.f32 %v982_v27  ;;  %v760_v27 = vld [vmem:[#allocation8 + $0x128] sm:$0xff]  ;;  %v988_v18 = vmul.f32 -1.442695, %v1821_v14 }
  0xa8   :  { %v1159_v52 = vpop.eup %1158  ;;  %883 = vst.msk [vmem:[#allocation10 + $0xf8] sm:$0xff] %vm851_vm0, %v818_v36  ;;  %v820_v39 = vadd.f32 %v756_v37, %v692_v35  ;;  %v694_v42 = vmul.f32 %v1157_v0, %v1702_v29  ;;  %1178 = vpow2.f32 %v983_v59  ;;  %v128_v36 = vld [vmem:[#allocation2 + $0x1d8] sm:$0xff] }
  0xa9   :  { %v1161_v47 = vpop.eup %1160  ;;  %884 = vst.msk [vmem:[#allocation10 + $0x100] sm:$0xff] %vm851_vm0, %v819_v31  ;;  %v821_v51 = vadd.f32 %v757_v3, %v693_v8  ;;  %v695_v53 = vmul.f32 %v1159_v52, %v1713_v15  ;;  %1180 = vpow2.f32 %v984_v45  ;;  %v1839_v45 = vld [vmem:[#allocation5] ss:$0 sm:$0xff] }
  0xaa   :  { %v1163_v50 = vpop.eup %1162  ;;  %885 = vst.msk [vmem:[#allocation10 + $0x108] sm:$0xff] %vm851_vm0, %v820_v39  ;;  %v822_v29 = vadd.f32 %v758_v21, %v694_v42  ;;  %v696_v59 = vmul.f32 %v1161_v47, %v1721_v48  ;;  %1182 = vpow2.f32 %v985_v46  ;;  %v192_v58 = vmul.f32 %v1839_v45, %v121_v49 }
  0xab   :  { %v1165_v7 = vpop.eup %1164  ;;  %886 = vst.msk [vmem:[#allocation10 + $0x110] sm:$0xff] %vm851_vm0, %v821_v51  ;;  %v823_v41 = vadd.f32 %v759_v38, %v695_v53  ;;  %v697_v15 = vmul.f32 %v1163_v50, %v1726_v56  ;;  %1184 = vpow2.f32 %v986_v62  ;;  %v193_v54 = vmul.f32 %v1839_v45, %v122_v34  ;;  %v129_v50 = vld [vmem:[#allocation2 + $0x1e0] sm:$0xff] }
  0xac   :  { %v1167_v11 = vpop.eup %1166  ;;  %887 = vst.msk [vmem:[#allocation10 + $0x118] sm:$0xff] %vm851_vm0, %v822_v29  ;;  %v824_v19 = vadd.f32 %v760_v27, %v696_v59  ;;  %v506_v48 = vadd.f32 1.0, %v1165_v7  ;;  %1186 = vpow2.f32 %v987_v24  ;;  %v194_v10 = vmul.f32 %v1839_v45, %v123_v6  ;;  %v130_v7 = vld [vmem:[#allocation2 + $0x1e8] sm:$0xff] }
  0xad   :  { %v1169_v16 = vpop.eup %1168  ;;  %888 = vst.msk [vmem:[#allocation10 + $0x120] sm:$0xff] %vm851_vm0, %v823_v41  ;;  %v825_v13 = vadd.f32 %v761_v17, %v697_v15  ;;  %v507_v56 = vadd.f32 1.0, %v1167_v11  ;;  %1188 = vpow2.f32 %v988_v18  ;;  %v195_v25 = vmul.f32 %v1839_v45, %v124_v55  ;;  %v131_v11 = vld [vmem:[#allocation2 + $0x1f0] sm:$0xff] }
  0xae   :  { %v1171_v33 = vpop.eup %1170  ;;  %889 = vst.msk [vmem:[#allocation10 + $0x128] sm:$0xff] %vm851_vm0, %v824_v19  ;;  %1190 = vrcp.f32 %v506_v48  ;;  %v508_v2 = vadd.f32 1.0, %v1169_v16  ;;  %v1850_v37 = vadd.f32 %v1808_v12, %v192_v58  ;;  %v196_v44 = vmul.f32 %v1839_v45, %v125_v23  ;;  %v132_v16 = vld [vmem:[#allocation2 + $0x1f8] sm:$0xff] }
  0xaf   :  { %v1173_v43 = vpop.eup %1172  ;;  %890 = vst.msk [vmem:[#allocation10 + $0x130] sm:$0xff] %vm851_vm0, %v825_v13  ;;  %1192 = vrcp.f32 %v507_v56  ;;  %v509_v5 = vadd.f32 1.0, %v1171_v33  ;;  %v1854_v46 = vadd.f32 %v1808_v12, %v193_v54  ;;  %v197_v0 = vmul.f32 %v1839_v45, %v126_v40  ;;  %v762_v56 = vld [vmem:[#allocation8 + $0x138] sm:$0xff] }
  0xb0   :  { %v1175_v35 = vpop.eup %1174  ;;  %1194 = vrcp.f32 %v508_v2  ;;  %v510_v3 = vadd.f32 1.0, %v1173_v43  ;;  %v1858_v21 = vadd.f32 %v1808_v12, %v194_v10  ;;  %v198_v62 = vmul.f32 %v1839_v45, %v127_v30  ;;  %v763_v30 = vld [vmem:[#allocation8 + $0x140] sm:$0xff] }
  0xb1   :  { %v1177_v31 = vpop.eup %1176  ;;  %1196 = vrcp.f32 %v509_v5  ;;  %v511_v8 = vadd.f32 1.0, %v1175_v35  ;;  %v1862_v42 = vadd.f32 %v1808_v12, %v195_v25  ;;  %v199_v38 = vmul.f32 %v1839_v45, %v128_v36  ;;  %v764_v35 = vld [vmem:[#allocation8 + $0x148] sm:$0xff] }
  0xb2   :  { %v1179_v52 = vpop.eup %1178  ;;  %1198 = vrcp.f32 %v510_v3  ;;  %v512_v39 = vadd.f32 1.0, %v1177_v31  ;;  %v989_v47 = vmul.f32 -1.442695, %v1850_v37  ;;  %v1867_v51 = vadd.f32 %v1808_v12, %v196_v44 }
  0xb3   :  { %v1181_v24 = vpop.eup %1180  ;;  %1200 = vrcp.f32 %v511_v8  ;;  %v513_v49 = vadd.f32 1.0, %v1179_v52  ;;  %v990_v18 = vmul.f32 -1.442695, %v1854_v46  ;;  %v1871_v34 = vadd.f32 %v1808_v12, %v197_v0 }
  0xb4   :  { %v1183_v53 = vpop.eup %1182  ;;  %1202 = vrcp.f32 %v512_v39  ;;  %v514_v27 = vadd.f32 1.0, %v1181_v24  ;;  %v991_v17 = vmul.f32 -1.442695, %v1858_v21  ;;  %v1875_v6 = vadd.f32 %v1808_v12, %v198_v62 }
  0xb5   :  { %v1185_v29 = vpop.eup %1184  ;;  %1204 = vrcp.f32 %v513_v49  ;;  %v515_v59 = vadd.f32 1.0, %v1183_v53  ;;  %v992_v58 = vmul.f32 -1.442695, %v1862_v42  ;;  %v1879_v55 = vadd.f32 %v1808_v12, %v199_v38 }
  0xb6   :  { %v1187_v41 = vpop.eup %1186  ;;  %1206 = vrcp.f32 %v514_v27  ;;  %v516_v15 = vadd.f32 1.0, %v1185_v29  ;;  %v993_v54 = vmul.f32 -1.442695, %v1867_v51  ;;  %v200_v23 = vmul.f32 %v1839_v45, %v129_v50  ;;  %v767_v27 = vld [vmem:[#allocation8 + $0x160] sm:$0xff]  ;;  %v768_v29 = vld [vmem:[#allocation8 + $0x168] sm:$0xff] }
  0xb7   :  { %v1189_v19 = vpop.eup %1188  ;;  %1208 = vrcp.f32 %v515_v59  ;;  %v517_v48 = vadd.f32 1.0, %v1187_v41  ;;  %v994_v40 = vmul.f32 -1.442695, %v1871_v34  ;;  %v201_v33 = vmul.f32 %v1839_v45, %v130_v7  ;;  %v769_v41 = vld [vmem:[#allocation8 + $0x170] sm:$0xff] }
  0xb8   :  { %v1191_v13 = vpop.eup %1190  ;;  %1210 = vrcp.f32 %v516_v15  ;;  %v518_v10 = vadd.f32 1.0, %v1189_v19  ;;  %v995_v43 = vmul.f32 -1.442695, %v1875_v6  ;;  %v202_v5 = vmul.f32 %v1839_v45, %v131_v11 }
  0xb9   :  { %v1193_v2 = vpop.eup %1192  ;;  %v698_v25 = vmul.f32 %v1191_v13, %v1743_v26  ;;  %1212 = vrcp.f32 %v517_v48  ;;  %v996_v3 = vmul.f32 -1.442695, %v1879_v55  ;;  %v203_v0 = vmul.f32 %v1839_v45, %v132_v16  ;;  %v765_v26 = vld [vmem:[#allocation8 + $0x150] sm:$0xff]  ;;  %v771_v16 = vld [vmem:[#allocation8 + $0x180] sm:$0xff] }
  0xba   :  { %v1195_v44 = vpop.eup %1194  ;;  %v699_v36 = vmul.f32 %v1193_v2, %v1760_v22  ;;  %1214 = vrcp.f32 %v518_v10  ;;  %v1893_v52 = vadd.f32 %v1808_v12, %v200_v23  ;;  %v766_v22 = vld [vmem:[#allocation8 + $0x158] sm:$0xff]  ;;  %v1897_v49 = vadd.f32 %v1808_v12, %v201_v33  ;;  %v772_v10 = vld [vmem:[#allocation8 + $0x188] sm:$0xff] }
  0xbb   :  { %v1197_v31 = vpop.eup %1196  ;;  %v826_v8 = vadd.f32 %v762_v56, %v698_v25  ;;  %v700_v62 = vmul.f32 %v1195_v44, %v1764_v4  ;;  %1216 = vpow2.f32 %v989_v47  ;;  %v1902_v47 = vadd.f32 %v1808_v12, %v202_v5  ;;  %v773_v25 = vld [vmem:[#allocation8 + $0x190] sm:$0xff]  ;;  %v774_v44 = vld [vmem:[#allocation8 + $0x198] sm:$0xff] }
  0xbc   :  { %v1199_v39 = vpop.eup %1198  ;;  %v827_v38 = vadd.f32 %v763_v30, %v699_v36  ;;  %v701_v24 = vmul.f32 %v1197_v31, %v1768_v57  ;;  %1218 = vpow2.f32 %v990_v18  ;;  %v1907_v59 = vadd.f32 %v1808_v12, %v203_v0 }
  0xbd   :  { %v1201_v53 = vpop.eup %1200  ;;  %891 = vst.msk [vmem:[#allocation10 + $0x138] sm:$0xff] %vm851_vm0, %v826_v8  ;;  %v828_v45 = vadd.f32 %v764_v35, %v700_v62  ;;  %v702_v4 = vmul.f32 %v1199_v39, %v1772_v63  ;;  %1220 = vpow2.f32 %v991_v17  ;;  %v997_v15 = vmul.f32 -1.442695, %v1893_v52 }
  0xbe   :  { %v1203_v50 = vpop.eup %1202  ;;  %892 = vst.msk [vmem:[#allocation10 + $0x140] sm:$0xff] %vm851_vm0, %v827_v38  ;;  %v829_v57 = vadd.f32 %v765_v26, %v701_v24  ;;  %v703_v18 = vmul.f32 %v1201_v53, %v1775_v32  ;;  %1222 = vpow2.f32 %v992_v58  ;;  %v770_v58 = vld [vmem:[#allocation8 + $0x178] sm:$0xff]  ;;  %v998_v12 = vmul.f32 -1.442695, %v1897_v49 }
  0xbf   :  { %v1205_v7 = vpop.eup %1204  ;;  %893 = vst.msk [vmem:[#allocation10 + $0x148] sm:$0xff] %vm851_vm0, %v828_v45  ;;  %v830_v63 = vadd.f32 %v766_v22, %v702_v4  ;;  %v704_v17 = vmul.f32 %v1203_v50, %v1779_v60  ;;  %1224 = vpow2.f32 %v993_v54  ;;  %v999_v54 = vmul.f32 -1.442695, %v1902_v47 }
  0xc0   :  { %v1207_v11 = vpop.eup %1206  ;;  %894 = vst.msk [vmem:[#allocation10 + $0x150] sm:$0xff] %vm851_vm0, %v829_v57  ;;  %v831_v19 = vadd.f32 %v767_v27, %v703_v18  ;;  %v705_v32 = vmul.f32 %v1205_v7, %v1783_v28  ;;  %1226 = vpow2.f32 %v994_v40  ;;  %v1000_v40 = vmul.f32 -1.442695, %v1907_v59 }
  0xc1   :  { %v1209_v48 = vpop.eup %1208  ;;  %895 = vst.msk [vmem:[#allocation10 + $0x158] sm:$0xff] %vm851_vm0, %v830_v63  ;;  %v832_v23 = vadd.f32 %v768_v29, %v704_v17  ;;  %v706_v60 = vmul.f32 %v1207_v11, %v1787_v9  ;;  %1228 = vpow2.f32 %v995_v43  ;;  %v775_v11 = vld [vmem:[#allocation8 + $0x1a0] sm:$0xff] }
  0xc2   :  { %v1211_v13 = vpop.eup %1210  ;;  %896 = vst.msk [vmem:[#allocation10 + $0x160] sm:$0xff] %vm851_vm0, %v831_v19  ;;  %v833_v56 = vadd.f32 %v769_v41, %v705_v32  ;;  %v707_v28 = vmul.f32 %v1209_v48, %v1804_v61  ;;  %1230 = vpow2.f32 %v996_v3 }
  0xc3   :  { %v1213_v33 = vpop.eup %1212  ;;  %897 = vst.msk [vmem:[#allocation10 + $0x168] sm:$0xff] %vm851_vm0, %v832_v23  ;;  %v834_v2 = vadd.f32 %v770_v58, %v706_v60  ;;  %v708_v9 = vmul.f32 %v1211_v13, %v1811_v1  ;;  %1232 = vpow2.f32 %v997_v15  ;;  %v776_v58 = vld [vmem:[#allocation8 + $0x1a8] sm:$0xff]  ;;  %v777_v23 = vld [vmem:[#allocation8 + $0x1b0] sm:$0xff]  ;;  %v778_v13 = vld [vmem:[#allocation8 + $0x1b8] sm:$0xff] }
  0xc4   :  { %v1215_v30 = vpop.eup %1214  ;;  %898 = vst.msk [vmem:[#allocation10 + $0x170] sm:$0xff] %vm851_vm0, %v833_v56  ;;  %v835_v43 = vadd.f32 %v771_v16, %v707_v28  ;;  %v709_v5 = vmul.f32 %v1213_v33, %v1816_v20  ;;  %1234 = vpow2.f32 %v998_v12 }
  0xc5   :  { %v1217_v61 = vpop.eup %1216  ;;  %899 = vst.msk [vmem:[#allocation10 + $0x178] sm:$0xff] %vm851_vm0, %v834_v2  ;;  %v836_v36 = vadd.f32 %v772_v10, %v708_v9  ;;  %v710_v35 = vmul.f32 %v1215_v30, %v1821_v14  ;;  %1236 = vpow2.f32 %v999_v54  ;;  %v780_v9 = vld [vmem:[#allocation8 + $0x1c8] sm:$0xff] }
  0xc6   :  { %v1219_v3 = vpop.eup %1218  ;;  %900 = vst.msk [vmem:[#allocation10 + $0x180] sm:$0xff] %vm851_vm0, %v835_v43  ;;  %v837_v1 = vadd.f32 %v773_v25, %v709_v5  ;;  %v519_v0 = vadd.f32 1.0, %v1217_v61  ;;  %1238 = vpow2.f32 %v1000_v40  ;;  %v779_v40 = vld [vmem:[#allocation8 + $0x1c0] sm:$0xff] }
  0xc7   :  { %v1221_v31 = vpop.eup %1220  ;;  %901 = vst.msk [vmem:[#allocation10 + $0x188] sm:$0xff] %vm851_vm0, %v836_v36  ;;  %v838_v8 = vadd.f32 %v774_v44, %v710_v35  ;;  %v520_v20 = vadd.f32 1.0, %v1219_v3  ;;  %v782_v44 = vld [vmem:[#allocation8 + $0x1d8] sm:$0xff]  ;;  %v783_v35 = vld [vmem:[#allocation8 + $0x1e0] sm:$0xff] }
  0xc8   :  { %v1223_v62 = vpop.eup %1222  ;;  %902 = vst.msk [vmem:[#allocation10 + $0x190] sm:$0xff] %vm851_vm0, %v837_v1  ;;  %1240 = vrcp.f32 %v519_v0  ;;  %v521_v26 = vadd.f32 1.0, %v1221_v31  ;;  %v784_v0 = vld [vmem:[#allocation8 + $0x1e8] sm:$0xff] }
  0xc9   :  { %v1225_v39 = vpop.eup %1224  ;;  %903 = vst.msk [vmem:[#allocation10 + $0x198] sm:$0xff] %vm851_vm0, %v838_v8  ;;  %1242 = vrcp.f32 %v520_v20  ;;  %v522_v14 = vadd.f32 1.0, %v1223_v62  ;;  %v785_v20 = vld [vmem:[#allocation8 + $0x1f0] sm:$0xff] }
  0xca   :  { %v1227_v38 = vpop.eup %1226  ;;  %1244 = vrcp.f32 %v521_v26  ;;  %v523_v24 = vadd.f32 1.0, %v1225_v39  ;;  %v786_v39 = vld [vmem:[#allocation8 + $0x1f8] sm:$0xff] }
  0xcb   :  { %v1229_v22 = vpop.eup %1228  ;;  %1246 = vrcp.f32 %v522_v14  ;;  %v524_v53 = vadd.f32 1.0, %v1227_v38 }
  0xcc   :  { %v1231_v45 = vpop.eup %1230  ;;  %1248 = vrcp.f32 %v523_v24  ;;  %v525_v4 = vadd.f32 1.0, %v1229_v22 }
  0xcd   :  { %v1233_v27 = vpop.eup %1232  ;;  %1250 = vrcp.f32 %v524_v53  ;;  %v526_v50 = vadd.f32 1.0, %v1231_v45 }
  0xce   :  { %v1235_v57 = vpop.eup %1234  ;;  %1252 = vrcp.f32 %v525_v4  ;;  %v527_v18 = vadd.f32 1.0, %v1233_v27 }
  0xcf   :  { %v1237_v29 = vpop.eup %1236  ;;  %1254 = vrcp.f32 %v526_v50  ;;  %v528_v7 = vadd.f32 1.0, %v1235_v57 }
  0xd0   :  { %v1239_v63 = vpop.eup %1238  ;;  %1256 = vrcp.f32 %v527_v18  ;;  %v529_v17 = vadd.f32 1.0, %v1237_v29 }
  0xd1   :  { %1258 = vrcp.f32 %v528_v7  ;;  %v530_v41 = vadd.f32 1.0, %v1239_v63 }
  0xd2   :  { %v1241_v15 = vpop.eup %1240  ;;  %1260 = vrcp.f32 %v529_v17 }
  0xd3   :  { %v1243_v19 = vpop.eup %1242  ;;  %v711_v32 = vmul.f32 %v1241_v15, %v1850_v37  ;;  %1262 = vrcp.f32 %v530_v41 }
  0xd4   :  { %v1245_v12 = vpop.eup %1244  ;;  %v712_v48 = vmul.f32 %v1243_v19, %v1854_v46 }
  0xd5   :  { %v1247_v60 = vpop.eup %1246  ;;  %v839_v16 = vadd.f32 %v775_v11, %v711_v32  ;;  %v713_v54 = vmul.f32 %v1245_v12, %v1858_v21  ;;  %v781_v21 = vld [vmem:[#allocation8 + $0x1d0] sm:$0xff] }
  0xd6   :  { %v1249_v56 = vpop.eup %1248  ;;  %v840_v28 = vadd.f32 %v776_v58, %v712_v48  ;;  %v714_v10 = vmul.f32 %v1247_v60, %v1862_v42 }
  0xd7   :  { %v1251_v33 = vpop.eup %1250  ;;  %904 = vst.msk [vmem:[#allocation10 + $0x1a0] sm:$0xff] %vm851_vm0, %v839_v16  ;;  %v841_v37 = vadd.f32 %v777_v23, %v713_v54  ;;  %v715_v2 = vmul.f32 %v1249_v56, %v1867_v51 }
  0xd8   :  { %v1253_v25 = vpop.eup %1252  ;;  %905 = vst.msk [vmem:[#allocation10 + $0x1a8] sm:$0xff] %vm851_vm0, %v840_v28  ;;  %v842_v46 = vadd.f32 %v778_v13, %v714_v10  ;;  %v716_v30 = vmul.f32 %v1251_v33, %v1871_v34 }
  0xd9   :  { %v1255_v43 = vpop.eup %1254  ;;  %906 = vst.msk [vmem:[#allocation10 + $0x1b0] sm:$0xff] %vm851_vm0, %v841_v37  ;;  %v843_v5 = vadd.f32 %v779_v40, %v715_v2  ;;  %v717_v42 = vmul.f32 %v1253_v25, %v1875_v6 }
  0xda   :  { %v1257_v61 = vpop.eup %1256  ;;  %907 = vst.msk [vmem:[#allocation10 + $0x1b8] sm:$0xff] %vm851_vm0, %v842_v46  ;;  %v844_v36 = vadd.f32 %v780_v9, %v716_v30  ;;  %v718_v51 = vmul.f32 %v1255_v43, %v1879_v55 }
  0xdb   :  { %v1259_v3 = vpop.eup %1258  ;;  %908 = vst.msk [vmem:[#allocation10 + $0x1c0] sm:$0xff] %vm851_vm0, %v843_v5  ;;  %v845_v1 = vadd.f32 %v781_v21, %v717_v42  ;;  %v719_v34 = vmul.f32 %v1257_v61, %v1893_v52 }
  0xdc   :  { %v1261_v31 = vpop.eup %1260  ;;  %909 = vst.msk [vmem:[#allocation10 + $0x1c8] sm:$0xff] %vm851_vm0, %v844_v36  ;;  %v846_v8 = vadd.f32 %v782_v44, %v718_v51  ;;  %v720_v6 = vmul.f32 %v1259_v3, %v1897_v49 }
  0xdd   :  { %v1263_v62 = vpop.eup %1262  ;;  %910 = vst.msk [vmem:[#allocation10 + $0x1d0] sm:$0xff] %vm851_vm0, %v845_v1  ;;  %v847_v26 = vadd.f32 %v783_v35, %v719_v34  ;;  %v721_v55 = vmul.f32 %v1261_v31, %v1902_v47 }
  0xde   :  { %911 = vst.msk [vmem:[#allocation10 + $0x1d8] sm:$0xff] %vm851_vm0, %v846_v8  ;;  %v848_v52 = vadd.f32 %v784_v0, %v720_v6  ;;  %v722_v14 = vmul.f32 %v1263_v62, %v1907_v59 }
  0xdf   :  { %912 = vst.msk [vmem:[#allocation10 + $0x1e0] sm:$0xff] %vm851_vm0, %v847_v26  ;;  %v849_v38 = vadd.f32 %v785_v20, %v721_v55 }
  0xe0   :  { %913 = vst.msk [vmem:[#allocation10 + $0x1e8] sm:$0xff] %vm851_vm0, %v848_v52  ;;  %v850_v49 = vadd.f32 %v786_v39, %v722_v14 }
  0xe1   :  { %914 = vst.msk [vmem:[#allocation10 + $0x1f0] sm:$0xff] %vm851_vm0, %v849_v38 }
  0xe2   :  { %915 = vst.msk [vmem:[#allocation10 + $0x1f8] sm:$0xff] %vm851_vm0, %v850_v49 }
  0xe3   :  { %1365 = shalt.err (!%p1362_p8)
}
  0xe4   :  { %s1366_s17 = scalar_lea.hbm %s1974_s4, 8192 }
  0xe5   :  { %p1367_p9 = scmp.ne.s32.totalorder %s1974_s4, %s1366_s17  ;;  %p1370_p10 = scmp.lt.u32.totalorder %s1366_s17, %s1974_s4 }
  0xe7   :  { %p1372_p11 = pnand %p1370_p10, %p1367_p9 }
  0xe9   :  { %1375 = shalt.err (!%p1372_p11)
}
  0xea   :  { %927 = dma.vmem_to_hbm [thread:$0]  %s922_s13, 8192, %s1974_s4, [#allocation4], %s1386_s1, %s1386_s1, %s1387_s12  }
  0xeb   :  { %1382 = dma.done.wait [#allocation4], 8192  }
  0xec   :  { %1383 = vsyncadd [#allocation4], 4294959104 }
  0xed   :  { %931 = vsyncpa [#allocation3], 1 }
  0xee   :  { %932 = vsyncpa [#allocation6], 1 }
  0xef   :  { %933 = vsyncpa [#allocation9], 1 }
  0xf0   :  { %934 = vsyncpa [#allocation4], 1 }

// kernel: residual_block_forward.6
= control target key start
LH: loop header
LB: loop body
LE: loop exit
PB: predicated region body
PF: predicated region fallthrough
CT: control target
= control target key end

     0   :  { %9 = vsyncpa [#allocation3], 0  ;;  %s1979_s0 = inlined_call_operand.hbm [shape: f32[512,4], index: 0, kind: input, shape index: {}]   ;;  %s1980_s1 = inlined_call_operand.hbm [shape: f32[4,2], index: 1, kind: input, shape index: {}]   ;;  %s1981_s2 = inlined_call_operand.hbm [shape: f32[512,2], index: 2, kind: output, shape index: {0}]   ;;  %s1982_s3 = inlined_call_operand.hbm [shape: f32[1,2,2], index: 3, kind: output, shape index: {1}]  }
   0x1   :  { %10 = vsyncpa [#allocation6], 0 }
   0x2   :  { %11 = vsyncpa [#allocation4], 0 }
   0x3   :  { %12 = vsyncpa [#allocation9], 0  ;;  %s1451_s12 = smov [#allocation2]   ;;  %s1355_s16 = scalar_lea.hbm %s1979_s0, 8192 }
   0x4   :  { %s18_s13 = sshll.u32 %s1451_s12, 4  ;;  %p1356_p0 = scmp.ne.s32.totalorder %s1979_s0, %s1355_s16  ;;  %s19_s13 = int_to_ptr.vmem [resolvable:$true] %s18_s13 }
   0x5   :  { %p1359_p1 = scmp.lt.u32.totalorder %s1355_s16, %s1979_s0 }
   0x7   :  { %p1361_p2 = pnand %p1359_p1, %p1356_p0 }
   0x9   :  { %1364 = shalt.err (!%p1361_p2)
}
   0xa   :  { %s1365_s21 = scalar_lea.vmem %s19_s13, 8192  ;;  %p1370_p4 = scmp.lt.s32.totalorder %s19_s13, %s19_s13 }
   0xb   :  { %p1366_p3 = scmp.ne.s32.totalorder %s19_s13, %s1365_s21  ;;  %p1371_p5 = scmp.lt.s32.totalorder %s1365_s21, %s1365_s21 }
   0xd   :  { %p1372_p6 = por %p1371_p5, %p1370_p4 }
   0xf   :  { %p1373_p7 = pnand %p1372_p6, %p1366_p3 }
  0x11   :  { %1376 = shalt.err (!%p1373_p7)
}
  0x12   :  { %s1452_s22 = smov 128   ;;  %s1453_s23 = smov 8  }
  0x13   :  { %24 = dma.hbm_to_vmem [thread:$0]  %s1979_s0, 8192, %s19_s13, [#allocation3], %s1452_s22, %s1452_s22, %s1453_s23  }
  0x14   :  { %s1454_s26 = smov [#allocation5]   ;;  %s1377_s30 = scalar_lea.hbm %s1980_s1, 64 }
  0x15   :  { %s31_s27 = sshll.u32 %s1454_s26, 4  ;;  %p1378_p8 = scmp.ne.s32.totalorder %s1980_s1, %s1377_s30  ;;  %s32_s27 = int_to_ptr.vmem [resolvable:$true] %s31_s27 }
  0x16   :  { %p1381_p9 = scmp.lt.u32.totalorder %s1377_s30, %s1980_s1 }
  0x18   :  { %p1383_p10 = pnand %p1381_p9, %p1378_p8 }
  0x1a   :  { %1386 = shalt.err (!%p1383_p10)
}
  0x1b   :  { %s1387_s8 = scalar_lea.vmem %s32_s27, 64  ;;  %p1392_p12 = scmp.lt.s32.totalorder %s32_s27, %s32_s27 }
  0x1c   :  { %p1388_p11 = scmp.ne.s32.totalorder %s32_s27, %s1387_s8  ;;  %p1393_p13 = scmp.lt.s32.totalorder %s1387_s8, %s1387_s8 }
  0x1e   :  { %p1394_p0 = por %p1393_p13, %p1392_p12 }
  0x20   :  { %p1395_p1 = pnand %p1394_p0, %p1388_p11 }
  0x22   :  { %1398 = shalt.err (!%p1395_p1)
}
  0x23   :  { %34 = dma.hbm_to_vmem [thread:$0]  %s1980_s1, 64, %s32_s27, [#allocation6]  }
  0x24   :  { %1443 = dma.done.wait [#allocation3], 8192  }
  0x25   :  { %1444 = vsyncadd [#allocation3], 4294959104 }
  0x26   :  { %1445 = dma.done.wait [#allocation6], 64  }
  0x27   :  { %1446 = vsyncadd [#allocation6], 4294967232  ;;  %vm299_vm0 = vcmask 1043456   ;;  %vm106_vm1 = vcmask 31744   ;;  %v105_v0 = vld [vmem:[#allocation5] sm:$0xf] }
  0x28   :  { %v41_v1 = vld [vmem:[#allocation2] sm:$0xff]  ;;  %v42_v2 = vld [vmem:[#allocation2 + $0x8] sm:$0xff]  ;;  %1249 = vmatprep.subr.msk.mxu0 %vm299_vm0, %v105_v0  ;;  %v43_v3 = vld [vmem:[#allocation2 + $0x10] sm:$0xff]  ;;  %1347 = vmatprep.subr.msk.mxu1 %vm299_vm0, %v105_v0  ;;  %vm688_vm2 = vcmask 15360   ;;  %s1455_s1 = smov [#allocation7]  }
  0x29   :  { %1251 = vmatprep.mubr.msk.f32.mxu0 %vm106_vm1, %v41_v1  ;;  %1250 = vmatpush3.msk.msra.mxu0 %vm299_vm0, %v105_v0  ;;  %v44_v4 = vld [vmem:[#allocation2 + $0x18] sm:$0xff]  ;;  %v45_v5 = vld [vmem:[#allocation2 + $0x20] sm:$0xff]  ;;  %v46_v6 = vld [vmem:[#allocation2 + $0x28] sm:$0xff]  ;;  %s1092_s10 = sshll.u32 %s1455_s1, 4  ;;  %s1093_s10 = int_to_ptr.vmem [resolvable:$true] %s1092_s10 }
  0x2a   :  { %1252 = vmatmul.mubr.msk.f32.vlgmr.msra.gmra.mrb[0].mxu0 %vm106_vm1, %v42_v2  ;;  %1348 = vmatpush3.msk.msra.mxu1 %vm299_vm0, %v105_v0  ;;  %v47_v7 = vld [vmem:[#allocation2 + $0x30] sm:$0xff]  ;;  %v73_v8 = vld [vmem:[#allocation2 + $0x100] sm:$0xff]  ;;  %v74_v9 = vld [vmem:[#allocation2 + $0x108] sm:$0xff]  ;;  %s1399_s11 = scalar_lea.vmem %s1093_s10, 8192  ;;  %p1404_p3 = scmp.lt.s32.totalorder %s1093_s10, %s1093_s10 }
  0x2b   :  { %1254 = vmatprep.mubr.msk.f32.mxu0 %vm106_vm1, %v43_v3  ;;  %v75_v10 = vld [vmem:[#allocation2 + $0x110] sm:$0xff]  ;;  %v48_v11 = vld [vmem:[#allocation2 + $0x38] sm:$0xff]  ;;  %1299 = vmatprep.mubr.msk.f32.mxu1 %vm106_vm1, %v73_v8  ;;  %v49_v12 = vld [vmem:[#allocation2 + $0x40] sm:$0xff]  ;;  %p1400_p2 = scmp.ne.s32.totalorder %s1093_s10, %s1399_s11  ;;  %p1405_p4 = scmp.lt.s32.totalorder %s1399_s11, %s1399_s11 }
  0x2c   :  { %1300 = vmatmul.mubr.msk.f32.vlgmr.msra.gmra.mrb[0].mxu1 %vm106_vm1, %v74_v9  ;;  %v76_v13 = vld [vmem:[#allocation2 + $0x118] sm:$0xff]  ;;  %v77_v14 = vld [vmem:[#allocation2 + $0x120] sm:$0xff]  ;;  %v50_v15 = vld [vmem:[#allocation2 + $0x48] sm:$0xff] }
  0x2d   :  { %1302 = vmatprep.mubr.msk.f32.mxu1 %vm106_vm1, %v75_v10  ;;  %v51_v16 = vld [vmem:[#allocation2 + $0x50] sm:$0xff]  ;;  %v78_v17 = vld [vmem:[#allocation2 + $0x128] sm:$0xff]  ;;  %v52_v19 = vld [vmem:[#allocation2 + $0x58] sm:$0xff]  ;;  %p1406_p5 = por %p1405_p4, %p1404_p3 }
  0x2e   :  { %1255 = vmatmul.mubr.msk.f32.gmra.mrb[2].mxu0 %vm106_vm1, %v44_v4  ;;  %v79_v18 = vld [vmem:[#allocation2 + $0x130] sm:$0xff]  ;;  %v53_v20 = vld [vmem:[#allocation2 + $0x60] sm:$0xff]  ;;  %v80_v21 = vld [vmem:[#allocation2 + $0x138] sm:$0xff] }
  0x2f   :  { %1257 = vmatprep.mubr.msk.f32.mxu0 %vm106_vm1, %v45_v5  ;;  %v81_v22 = vld [vmem:[#allocation2 + $0x140] sm:$0xff]  ;;  %v54_v23 = vld [vmem:[#allocation2 + $0x68] sm:$0xff]  ;;  %v55_v24 = vld [vmem:[#allocation2 + $0x70] sm:$0xff]  ;;  %p1407_p6 = pnand %p1406_p5, %p1400_p2 }
  0x30   :  { %1303 = vmatmul.mubr.msk.f32.gmra.mrb[2].mxu1 %vm106_vm1, %v76_v13  ;;  %v82_v25 = vld [vmem:[#allocation2 + $0x148] sm:$0xff]  ;;  %v83_v26 = vld [vmem:[#allocation2 + $0x150] sm:$0xff]  ;;  %v56_v27 = vld [vmem:[#allocation2 + $0x78] sm:$0xff] }
  0x31   :  { %1305 = vmatprep.mubr.msk.f32.mxu1 %vm106_vm1, %v77_v14  ;;  %v57_v28 = vld [vmem:[#allocation2 + $0x80] sm:$0xff]  ;;  %v84_v29 = vld [vmem:[#allocation2 + $0x158] sm:$0xff]  ;;  %v58_v31 = vld [vmem:[#allocation2 + $0x88] sm:$0xff] }
  0x32   :  { %1258 = vmatmul.mubr.msk.f32.gmra.mrb[4].mxu0 %vm106_vm1, %v46_v6  ;;  %v85_v30 = vld [vmem:[#allocation2 + $0x160] sm:$0xff]  ;;  %v59_v32 = vld [vmem:[#allocation2 + $0x90] sm:$0xff]  ;;  %v86_v33 = vld [vmem:[#allocation2 + $0x168] sm:$0xff] }
  0x33   :  { %1260 = vmatprep.mubr.msk.f32.mxu0 %vm106_vm1, %v47_v7  ;;  %v87_v34 = vld [vmem:[#allocation2 + $0x170] sm:$0xff]  ;;  %v60_v35 = vld [vmem:[#allocation2 + $0x98] sm:$0xff]  ;;  %v61_v36 = vld [vmem:[#allocation2 + $0xa0] sm:$0xff] }
  0x34   :  { %1306 = vmatmul.mubr.msk.f32.gmra.mrb[4].mxu1 %vm106_vm1, %v78_v17  ;;  %v88_v37 = vld [vmem:[#allocation2 + $0x178] sm:$0xff]  ;;  %v89_v38 = vld [vmem:[#allocation2 + $0x180] sm:$0xff]  ;;  %v62_v39 = vld [vmem:[#allocation2 + $0xa8] sm:$0xff] }
  0x35   :  { %1308 = vmatprep.mubr.msk.f32.mxu1 %vm106_vm1, %v79_v18  ;;  %v63_v40 = vld [vmem:[#allocation2 + $0xb0] sm:$0xff]  ;;  %v90_v41 = vld [vmem:[#allocation2 + $0x188] sm:$0xff]  ;;  %v64_v43 = vld [vmem:[#allocation2 + $0xb8] sm:$0xff] }
  0x36   :  { %1261 = vmatmul.mubr.msk.f32.gmra.mrb[6].mxu0 %vm106_vm1, %v48_v11  ;;  %v91_v42 = vld [vmem:[#allocation2 + $0x190] sm:$0xff]  ;;  %v65_v44 = vld [vmem:[#allocation2 + $0xc0] sm:$0xff]  ;;  %v92_v45 = vld [vmem:[#allocation2 + $0x198] sm:$0xff] }
  0x37   :  { %1263 = vmatprep.mubr.msk.f32.mxu0 %vm106_vm1, %v49_v12  ;;  %v93_v46 = vld [vmem:[#allocation2 + $0x1a0] sm:$0xff]  ;;  %v66_v47 = vld [vmem:[#allocation2 + $0xc8] sm:$0xff]  ;;  %v67_v48 = vld [vmem:[#allocation2 + $0xd0] sm:$0xff] }
  0x38   :  { %1309 = vmatmul.mubr.msk.f32.gmra.mrb[6].mxu1 %vm106_vm1, %v80_v21  ;;  %v94_v49 = vld [vmem:[#allocation2 + $0x1a8] sm:$0xff]  ;;  %v95_v50 = vld [vmem:[#allocation2 + $0x1b0] sm:$0xff]  ;;  %v68_v51 = vld [vmem:[#allocation2 + $0xd8] sm:$0xff] }
  0x39   :  { %1311 = vmatprep.mubr.msk.f32.mxu1 %vm106_vm1, %v81_v22  ;;  %v69_v52 = vld [vmem:[#allocation2 + $0xe0] sm:$0xff]  ;;  %v96_v53 = vld [vmem:[#allocation2 + $0x1b8] sm:$0xff]  ;;  %v70_v55 = vld [vmem:[#allocation2 + $0xe8] sm:$0xff] }
  0x3a   :  { %1264 = vmatmul.mubr.msk.f32.gmra.mrb[8].mxu0 %vm106_vm1, %v50_v15  ;;  %v97_v54 = vld [vmem:[#allocation2 + $0x1c0] sm:$0xff]  ;;  %v71_v56 = vld [vmem:[#allocation2 + $0xf0] sm:$0xff]  ;;  %v98_v57 = vld [vmem:[#allocation2 + $0x1c8] sm:$0xff] }
  0x3b   :  { %1266 = vmatprep.mubr.msk.f32.mxu0 %vm106_vm1, %v51_v16  ;;  %v99_v58 = vld [vmem:[#allocation2 + $0x1d0] sm:$0xff]  ;;  %v72_v59 = vld [vmem:[#allocation2 + $0xf8] sm:$0xff]  ;;  %v101_v61 = vld [vmem:[#allocation2 + $0x1e0] sm:$0xff] }
  0x3c   :  { %1312 = vmatmul.mubr.msk.f32.gmra.mrb[8].mxu1 %vm106_vm1, %v82_v25  ;;  %v100_v60 = vld [vmem:[#allocation2 + $0x1d8] sm:$0xff]  ;;  %v102_v62 = vld [vmem:[#allocation2 + $0x1e8] sm:$0xff]  ;;  %v103_v63 = vld [vmem:[#allocation2 + $0x1f0] sm:$0xff] }
  0x3d   :  { %1314 = vmatprep.mubr.msk.f32.mxu1 %vm106_vm1, %v83_v26  ;;  %v104_v0 = vld [vmem:[#allocation2 + $0x1f8] sm:$0xff] }
  0x3e   :  { %1267 = vmatmul.mubr.msk.f32.gmra.mrb[10].mxu0 %vm106_vm1, %v52_v19 }
  0x3f   :  { %1269 = vmatprep.mubr.msk.f32.mxu0 %vm106_vm1, %v53_v20 }
  0x40   :  { %1315 = vmatmul.mubr.msk.f32.gmra.mrb[10].mxu1 %vm106_vm1, %v84_v29 }
  0x41   :  { %1317 = vmatprep.mubr.msk.f32.mxu1 %vm106_vm1, %v85_v30 }
  0x42   :  { %1270 = vmatmul.mubr.msk.f32.gmra.mrb[12].mxu0 %vm106_vm1, %v54_v23 }
  0x43   :  { %1272 = vmatprep.mubr.msk.f32.mxu0 %vm106_vm1, %v55_v24 }
  0x44   :  { %1318 = vmatmul.mubr.msk.f32.gmra.mrb[12].mxu1 %vm106_vm1, %v86_v33 }
  0x45   :  { %1320 = vmatprep.mubr.msk.f32.mxu1 %vm106_vm1, %v87_v34 }
  0x46   :  { %1273 = vmatmul.mubr.msk.f32.gmra.mrb[14].mxu0 %vm106_vm1, %v56_v27 }
  0x47   :  { %1275 = vmatprep.mubr.msk.f32.mxu0 %vm106_vm1, %v57_v28 }
  0x48   :  { %1321 = vmatmul.mubr.msk.f32.gmra.mrb[14].mxu1 %vm106_vm1, %v88_v37 }
  0x49   :  { %1323 = vmatprep.mubr.msk.f32.mxu1 %vm106_vm1, %v89_v38 }
  0x4a   :  { %1276 = vmatmul.mubr.msk.f32.gmra.mrb[16].mxu0 %vm106_vm1, %v58_v31 }
  0x4b   :  { %1278 = vmatprep.mubr.msk.f32.mxu0 %vm106_vm1, %v59_v32 }
  0x4c   :  { %1324 = vmatmul.mubr.msk.f32.gmra.mrb[16].mxu1 %vm106_vm1, %v90_v41 }
  0x4d   :  { %1326 = vmatprep.mubr.msk.f32.mxu1 %vm106_vm1, %v91_v42 }
  0x4e   :  { %1279 = vmatmul.mubr.msk.f32.gmra.mrb[18].mxu0 %vm106_vm1, %v60_v35 }
  0x4f   :  { %1281 = vmatprep.mubr.msk.f32.mxu0 %vm106_vm1, %v61_v36 }
  0x50   :  { %1327 = vmatmul.mubr.msk.f32.gmra.mrb[18].mxu1 %vm106_vm1, %v92_v45 }
  0x51   :  { %1329 = vmatprep.mubr.msk.f32.mxu1 %vm106_vm1, %v93_v46 }
  0x52   :  { %1282 = vmatmul.mubr.msk.f32.gmra.mrb[20].mxu0 %vm106_vm1, %v62_v39 }
  0x53   :  { %1284 = vmatprep.mubr.msk.f32.mxu0 %vm106_vm1, %v63_v40 }
  0x54   :  { %1330 = vmatmul.mubr.msk.f32.gmra.mrb[20].mxu1 %vm106_vm1, %v94_v49 }
  0x55   :  { %1332 = vmatprep.mubr.msk.f32.mxu1 %vm106_vm1, %v95_v50 }
  0x56   :  { %1285 = vmatmul.mubr.msk.f32.gmra.mrb[22].mxu0 %vm106_vm1, %v64_v43 }
  0x57   :  { %1287 = vmatprep.mubr.msk.f32.mxu0 %vm106_vm1, %v65_v44 }
  0x58   :  { %1333 = vmatmul.mubr.msk.f32.gmra.mrb[22].mxu1 %vm106_vm1, %v96_v53 }
  0x59   :  { %1335 = vmatprep.mubr.msk.f32.mxu1 %vm106_vm1, %v97_v54 }
  0x5a   :  { %1288 = vmatmul.mubr.msk.f32.gmra.mrb[24].mxu0 %vm106_vm1, %v66_v47 }
  0x5b   :  { %1290 = vmatprep.mubr.msk.f32.mxu0 %vm106_vm1, %v67_v48 }
  0x5c   :  { %1336 = vmatmul.mubr.msk.f32.gmra.mrb[24].mxu1 %vm106_vm1, %v98_v57 }
  0x5d   :  { %1338 = vmatprep.mubr.msk.f32.mxu1 %vm106_vm1, %v99_v58 }
  0x5e   :  { %1291 = vmatmul.mubr.msk.f32.gmra.mrb[26].mxu0 %vm106_vm1, %v68_v51 }
  0x5f   :  { %1293 = vmatprep.mubr.msk.f32.mxu0 %vm106_vm1, %v69_v52 }
  0x60   :  { %1339 = vmatmul.mubr.msk.f32.gmra.mrb[26].mxu1 %vm106_vm1, %v100_v60 }
  0x61   :  { %1341 = vmatprep.mubr.msk.f32.mxu1 %vm106_vm1, %v101_v61 }
  0x62   :  { %1294 = vmatmul.mubr.msk.f32.gmra.mrb[28].mxu0 %vm106_vm1, %v70_v55 }
  0x63   :  { %1296 = vmatprep.mubr.msk.f32.mxu0 %vm106_vm1, %v71_v56 }
  0x64   :  { %1342 = vmatmul.mubr.msk.f32.gmra.mrb[28].mxu1 %vm106_vm1, %v102_v62 }
  0x65   :  { %1344 = vmatprep.mubr.msk.f32.mxu1 %vm106_vm1, %v103_v63 }
  0x66   :  { %1297 = vmatmul.mubr.msk.f32.gmra.mrb[30].mxu0 %vm106_vm1, %v72_v59 }
  0x68   :  { %1345 = vmatmul.mubr.msk.f32.gmra.mrb[30].mxu1 %vm106_vm1, %v104_v0 }
  0xfd   :  { %v1253_v1 = vpop.f32.mrb[0].mxu0 }
  0xfe   :  { %690 = vst.msk [vmem:[#allocation7 + $0x8] sm:$0xff] %vm688_vm2, %v1253_v1  ;;  %v754_v2 = vsel %vm688_vm2, %v1253_v1, 0.0  ;;  %v887_v3 = vmul.f32 %v1253_v1, %v1253_v1  ;;  %v369_v4 = vpop.f32.mrb[1].mxu0 }
  0xff   :  { %689 = vst.msk [vmem:[#allocation7] sm:$0xff] %vm688_vm2, %v369_v4  ;;  %v753_v5 = vsel %vm688_vm2, %v369_v4, 0.0  ;;  %v886_v6 = vmul.f32 %v369_v4, %v369_v4  ;;  %v1583_v27 = vpop.f32.mrb[0].mxu1 }
 0x100   :  { %v951_v7 = vsel %vm688_vm2, %v887_v3, 0.0  ;;  %v755_v8 = vadd.f32 %v754_v2, %v753_v5  ;;  %722 = vst.msk [vmem:[#allocation7 + $0x108] sm:$0xff] %vm688_vm2, %v1583_v27  ;;  %v1587_v30 = vpop.f32.mrb[1].mxu1 }
 0x101   :  { %v950_v9 = vsel %vm688_vm2, %v886_v6, 0.0  ;;  %v1256_v10 = vpop.f32.mrb[2].mxu0  ;;  %721 = vst.msk [vmem:[#allocation7 + $0x100] sm:$0xff] %vm688_vm2, %v1587_v30 }
 0x102   :  { %v952_v11 = vadd.f32 %v951_v7, %v950_v9  ;;  %692 = vst.msk [vmem:[#allocation7 + $0x18] sm:$0xff] %vm688_vm2, %v1256_v10  ;;  %v379_v12 = vpop.f32.mrb[3].mxu0  ;;  %v889_v13 = vmul.f32 %v1256_v10, %v1256_v10  ;;  %v758_v17 = vsel %vm688_vm2, %v1256_v10, 0.0 }
 0x103   :  { %691 = vst.msk [vmem:[#allocation7 + $0x10] sm:$0xff] %vm688_vm2, %v379_v12  ;;  %v756_v14 = vsel %vm688_vm2, %v379_v12, 0.0  ;;  %v888_v15 = vmul.f32 %v379_v12, %v379_v12  ;;  %v1597_v41 = vpop.f32.mrb[2].mxu1 }
 0x104   :  { %v757_v16 = vadd.f32 %v756_v14, %v755_v8  ;;  %v955_v23 = vsel %vm688_vm2, %v889_v13, 0.0  ;;  %724 = vst.msk [vmem:[#allocation7 + $0x118] sm:$0xff] %vm688_vm2, %v1597_v41  ;;  %v1601_v44 = vpop.f32.mrb[3].mxu1 }
 0x105   :  { %v953_v18 = vsel %vm688_vm2, %v888_v15, 0.0  ;;  %v1259_v19 = vpop.f32.mrb[4].mxu0  ;;  %723 = vst.msk [vmem:[#allocation7 + $0x110] sm:$0xff] %vm688_vm2, %v1601_v44 }
 0x106   :  { %v954_v20 = vadd.f32 %v953_v18, %v952_v11  ;;  %694 = vst.msk [vmem:[#allocation7 + $0x28] sm:$0xff] %vm688_vm2, %v1259_v19  ;;  %v389_v21 = vpop.f32.mrb[5].mxu0  ;;  %v759_v22 = vadd.f32 %v758_v17, %v757_v16  ;;  %v891_v24 = vmul.f32 %v1259_v19, %v1259_v19  ;;  %v762_v31 = vsel %vm688_vm2, %v1259_v19, 0.0 }
 0x107   :  { %693 = vst.msk [vmem:[#allocation7 + $0x20] sm:$0xff] %vm688_vm2, %v389_v21  ;;  %v760_v25 = vsel %vm688_vm2, %v389_v21, 0.0  ;;  %v890_v26 = vmul.f32 %v389_v21, %v389_v21  ;;  %v1611_v55 = vpop.f32.mrb[4].mxu1 }
 0x108   :  { %v761_v28 = vadd.f32 %v760_v25, %v759_v22  ;;  %v956_v29 = vadd.f32 %v955_v23, %v954_v20  ;;  %v959_v37 = vsel %vm688_vm2, %v891_v24, 0.0  ;;  %726 = vst.msk [vmem:[#allocation7 + $0x128] sm:$0xff] %vm688_vm2, %v1611_v55  ;;  %v1615_v58 = vpop.f32.mrb[5].mxu1 }
 0x109   :  { %v957_v32 = vsel %vm688_vm2, %v890_v26, 0.0  ;;  %v1262_v33 = vpop.f32.mrb[6].mxu0  ;;  %725 = vst.msk [vmem:[#allocation7 + $0x120] sm:$0xff] %vm688_vm2, %v1615_v58 }
 0x10a   :  { %v958_v34 = vadd.f32 %v957_v32, %v956_v29  ;;  %696 = vst.msk [vmem:[#allocation7 + $0x38] sm:$0xff] %vm688_vm2, %v1262_v33  ;;  %v399_v35 = vpop.f32.mrb[7].mxu0  ;;  %v763_v36 = vadd.f32 %v762_v31, %v761_v28  ;;  %v893_v38 = vmul.f32 %v1262_v33, %v1262_v33  ;;  %v766_v45 = vsel %vm688_vm2, %v1262_v33, 0.0 }
 0x10b   :  { %695 = vst.msk [vmem:[#allocation7 + $0x30] sm:$0xff] %vm688_vm2, %v399_v35  ;;  %v764_v39 = vsel %vm688_vm2, %v399_v35, 0.0  ;;  %v892_v40 = vmul.f32 %v399_v35, %v399_v35  ;;  %v1625_v5 = vpop.f32.mrb[6].mxu1 }
 0x10c   :  { %v765_v42 = vadd.f32 %v764_v39, %v763_v36  ;;  %v960_v43 = vadd.f32 %v959_v37, %v958_v34  ;;  %v963_v51 = vsel %vm688_vm2, %v893_v38, 0.0  ;;  %728 = vst.msk [vmem:[#allocation7 + $0x138] sm:$0xff] %vm688_vm2, %v1625_v5  ;;  %v1629_v8 = vpop.f32.mrb[7].mxu1 }
 0x10d   :  { %v961_v46 = vsel %vm688_vm2, %v892_v40, 0.0  ;;  %v1265_v47 = vpop.f32.mrb[8].mxu0  ;;  %727 = vst.msk [vmem:[#allocation7 + $0x130] sm:$0xff] %vm688_vm2, %v1629_v8 }
 0x10e   :  { %v962_v48 = vadd.f32 %v961_v46, %v960_v43  ;;  %698 = vst.msk [vmem:[#allocation7 + $0x48] sm:$0xff] %vm688_vm2, %v1265_v47  ;;  %v409_v49 = vpop.f32.mrb[9].mxu0  ;;  %v767_v50 = vadd.f32 %v766_v45, %v765_v42  ;;  %v895_v52 = vmul.f32 %v1265_v47, %v1265_v47  ;;  %v770_v59 = vsel %vm688_vm2, %v1265_v47, 0.0 }
 0x10f   :  { %697 = vst.msk [vmem:[#allocation7 + $0x40] sm:$0xff] %vm688_vm2, %v409_v49  ;;  %v768_v53 = vsel %vm688_vm2, %v409_v49, 0.0  ;;  %v894_v54 = vmul.f32 %v409_v49, %v409_v49  ;;  %v1639_v19 = vpop.f32.mrb[8].mxu1 }
 0x110   :  { %v769_v56 = vadd.f32 %v768_v53, %v767_v50  ;;  %v964_v57 = vadd.f32 %v963_v51, %v962_v48  ;;  %v967_v1 = vsel %vm688_vm2, %v895_v52, 0.0  ;;  %730 = vst.msk [vmem:[#allocation7 + $0x148] sm:$0xff] %vm688_vm2, %v1639_v19  ;;  %v1643_v22 = vpop.f32.mrb[9].mxu1 }
 0x111   :  { %v965_v60 = vsel %vm688_vm2, %v894_v54, 0.0  ;;  %v1268_v61 = vpop.f32.mrb[10].mxu0  ;;  %729 = vst.msk [vmem:[#allocation7 + $0x140] sm:$0xff] %vm688_vm2, %v1643_v22 }
 0x112   :  { %v966_v62 = vadd.f32 %v965_v60, %v964_v57  ;;  %700 = vst.msk [vmem:[#allocation7 + $0x58] sm:$0xff] %vm688_vm2, %v1268_v61  ;;  %v419_v63 = vpop.f32.mrb[11].mxu0  ;;  %v771_v0 = vadd.f32 %v770_v59, %v769_v56  ;;  %v897_v2 = vmul.f32 %v1268_v61, %v1268_v61  ;;  %v774_v9 = vsel %vm688_vm2, %v1268_v61, 0.0 }
 0x113   :  { %699 = vst.msk [vmem:[#allocation7 + $0x50] sm:$0xff] %vm688_vm2, %v419_v63  ;;  %v772_v3 = vsel %vm688_vm2, %v419_v63, 0.0  ;;  %v896_v4 = vmul.f32 %v419_v63, %v419_v63  ;;  %v1653_v35 = vpop.f32.mrb[10].mxu1 }
 0x114   :  { %v773_v6 = vadd.f32 %v772_v3, %v771_v0  ;;  %v968_v7 = vadd.f32 %v967_v1, %v966_v62  ;;  %v971_v15 = vsel %vm688_vm2, %v897_v2, 0.0  ;;  %732 = vst.msk [vmem:[#allocation7 + $0x158] sm:$0xff] %vm688_vm2, %v1653_v35  ;;  %v1657_v38 = vpop.f32.mrb[11].mxu1 }
 0x115   :  { %v969_v10 = vsel %vm688_vm2, %v896_v4, 0.0  ;;  %v1271_v11 = vpop.f32.mrb[12].mxu0  ;;  %731 = vst.msk [vmem:[#allocation7 + $0x150] sm:$0xff] %vm688_vm2, %v1657_v38 }
 0x116   :  { %v970_v12 = vadd.f32 %v969_v10, %v968_v7  ;;  %702 = vst.msk [vmem:[#allocation7 + $0x68] sm:$0xff] %vm688_vm2, %v1271_v11  ;;  %v429_v13 = vpop.f32.mrb[13].mxu0  ;;  %v775_v14 = vadd.f32 %v774_v9, %v773_v6  ;;  %v899_v16 = vmul.f32 %v1271_v11, %v1271_v11  ;;  %v778_v23 = vsel %vm688_vm2, %v1271_v11, 0.0 }
 0x117   :  { %701 = vst.msk [vmem:[#allocation7 + $0x60] sm:$0xff] %vm688_vm2, %v429_v13  ;;  %v776_v17 = vsel %vm688_vm2, %v429_v13, 0.0  ;;  %v898_v18 = vmul.f32 %v429_v13, %v429_v13  ;;  %v1667_v51 = vpop.f32.mrb[12].mxu1 }
 0x118   :  { %v777_v20 = vadd.f32 %v776_v17, %v775_v14  ;;  %v972_v21 = vadd.f32 %v971_v15, %v970_v12  ;;  %v975_v31 = vsel %vm688_vm2, %v899_v16, 0.0  ;;  %734 = vst.msk [vmem:[#allocation7 + $0x168] sm:$0xff] %vm688_vm2, %v1667_v51  ;;  %v1671_v54 = vpop.f32.mrb[13].mxu1 }
 0x119   :  { %v973_v24 = vsel %vm688_vm2, %v898_v18, 0.0  ;;  %v1274_v25 = vpop.f32.mrb[14].mxu0  ;;  %733 = vst.msk [vmem:[#allocation7 + $0x160] sm:$0xff] %vm688_vm2, %v1671_v54 }
 0x11a   :  { %v974_v26 = vadd.f32 %v973_v24, %v972_v21  ;;  %704 = vst.msk [vmem:[#allocation7 + $0x78] sm:$0xff] %vm688_vm2, %v1274_v25  ;;  %v439_v28 = vpop.f32.mrb[15].mxu0  ;;  %v779_v29 = vadd.f32 %v778_v23, %v777_v20  ;;  %v901_v32 = vmul.f32 %v1274_v25, %v1274_v25  ;;  %v782_v39 = vsel %vm688_vm2, %v1274_v25, 0.0 }
 0x11b   :  { %703 = vst.msk [vmem:[#allocation7 + $0x70] sm:$0xff] %vm688_vm2, %v439_v28  ;;  %v780_v33 = vsel %vm688_vm2, %v439_v28, 0.0  ;;  %v900_v34 = vmul.f32 %v439_v28, %v439_v28  ;;  %v1681_v3 = vpop.f32.mrb[14].mxu1 }
 0x11c   :  { %v781_v36 = vadd.f32 %v780_v33, %v779_v29  ;;  %v976_v37 = vadd.f32 %v975_v31, %v974_v26  ;;  %v979_v47 = vsel %vm688_vm2, %v901_v32, 0.0  ;;  %736 = vst.msk [vmem:[#allocation7 + $0x178] sm:$0xff] %vm688_vm2, %v1681_v3  ;;  %v1685_v7 = vpop.f32.mrb[15].mxu1 }
 0x11d   :  { %v977_v40 = vsel %vm688_vm2, %v900_v34, 0.0  ;;  %v1277_v42 = vpop.f32.mrb[16].mxu0  ;;  %735 = vst.msk [vmem:[#allocation7 + $0x170] sm:$0xff] %vm688_vm2, %v1685_v7 }
 0x11e   :  { %v978_v43 = vadd.f32 %v977_v40, %v976_v37  ;;  %706 = vst.msk [vmem:[#allocation7 + $0x88] sm:$0xff] %vm688_vm2, %v1277_v42  ;;  %v449_v45 = vpop.f32.mrb[17].mxu0  ;;  %v783_v46 = vadd.f32 %v782_v39, %v781_v36  ;;  %v903_v48 = vmul.f32 %v1277_v42, %v1277_v42  ;;  %v786_v56 = vsel %vm688_vm2, %v1277_v42, 0.0 }
 0x11f   :  { %705 = vst.msk [vmem:[#allocation7 + $0x80] sm:$0xff] %vm688_vm2, %v449_v45  ;;  %v784_v49 = vsel %vm688_vm2, %v449_v45, 0.0  ;;  %v902_v50 = vmul.f32 %v449_v45, %v449_v45  ;;  %v1695_v20 = vpop.f32.mrb[16].mxu1 }
 0x120   :  { %v785_v52 = vadd.f32 %v784_v49, %v783_v46  ;;  %v980_v53 = vadd.f32 %v979_v47, %v978_v43  ;;  %v983_v63 = vsel %vm688_vm2, %v903_v48, 0.0  ;;  %738 = vst.msk [vmem:[#allocation7 + $0x188] sm:$0xff] %vm688_vm2, %v1695_v20  ;;  %v1699_v24 = vpop.f32.mrb[17].mxu1 }
 0x121   :  { %v981_v57 = vsel %vm688_vm2, %v902_v50, 0.0  ;;  %v1280_v59 = vpop.f32.mrb[18].mxu0  ;;  %737 = vst.msk [vmem:[#allocation7 + $0x180] sm:$0xff] %vm688_vm2, %v1699_v24 }
 0x122   :  { %v982_v60 = vadd.f32 %v981_v57, %v980_v53  ;;  %708 = vst.msk [vmem:[#allocation7 + $0x98] sm:$0xff] %vm688_vm2, %v1280_v59  ;;  %v459_v61 = vpop.f32.mrb[19].mxu0  ;;  %v787_v62 = vadd.f32 %v786_v56, %v785_v52  ;;  %v905_v0 = vmul.f32 %v1280_v59, %v1280_v59  ;;  %v790_v9 = vsel %vm688_vm2, %v1280_v59, 0.0 }
 0x123   :  { %707 = vst.msk [vmem:[#allocation7 + $0x90] sm:$0xff] %vm688_vm2, %v459_v61  ;;  %v788_v1 = vsel %vm688_vm2, %v459_v61, 0.0  ;;  %v904_v2 = vmul.f32 %v459_v61, %v459_v61  ;;  %v1709_v39 = vpop.f32.mrb[18].mxu1 }
 0x124   :  { %v789_v4 = vadd.f32 %v788_v1, %v787_v62  ;;  %v984_v6 = vadd.f32 %v983_v63, %v982_v60  ;;  %v987_v15 = vsel %vm688_vm2, %v905_v0, 0.0  ;;  %740 = vst.msk [vmem:[#allocation7 + $0x198] sm:$0xff] %vm688_vm2, %v1709_v39  ;;  %v1713_v43 = vpop.f32.mrb[19].mxu1 }
 0x125   :  { %v985_v10 = vsel %vm688_vm2, %v904_v2, 0.0  ;;  %v1283_v11 = vpop.f32.mrb[20].mxu0  ;;  %739 = vst.msk [vmem:[#allocation7 + $0x190] sm:$0xff] %vm688_vm2, %v1713_v43 }
 0x126   :  { %v986_v12 = vadd.f32 %v985_v10, %v984_v6  ;;  %710 = vst.msk [vmem:[#allocation7 + $0xa8] sm:$0xff] %vm688_vm2, %v1283_v11  ;;  %v469_v13 = vpop.f32.mrb[21].mxu0  ;;  %v791_v14 = vadd.f32 %v790_v9, %v789_v4  ;;  %v907_v16 = vmul.f32 %v1283_v11, %v1283_v11  ;;  %v794_v25 = vsel %vm688_vm2, %v1283_v11, 0.0 }
 0x127   :  { %709 = vst.msk [vmem:[#allocation7 + $0xa0] sm:$0xff] %vm688_vm2, %v469_v13  ;;  %v792_v17 = vsel %vm688_vm2, %v469_v13, 0.0  ;;  %v906_v18 = vmul.f32 %v469_v13, %v469_v13  ;;  %v1723_v59 = vpop.f32.mrb[20].mxu1 }
 0x128   :  { %v793_v21 = vadd.f32 %v792_v17, %v791_v14  ;;  %v988_v23 = vadd.f32 %v987_v15, %v986_v12  ;;  %v991_v33 = vsel %vm688_vm2, %v907_v16, 0.0  ;;  %742 = vst.msk [vmem:[#allocation7 + $0x1a8] sm:$0xff] %vm688_vm2, %v1723_v59  ;;  %v1727_v62 = vpop.f32.mrb[21].mxu1 }
 0x129   :  { %v989_v26 = vsel %vm688_vm2, %v906_v18, 0.0  ;;  %v1286_v28 = vpop.f32.mrb[22].mxu0  ;;  %741 = vst.msk [vmem:[#allocation7 + $0x1a0] sm:$0xff] %vm688_vm2, %v1727_v62 }
 0x12a   :  { %v990_v29 = vadd.f32 %v989_v26, %v988_v23  ;;  %712 = vst.msk [vmem:[#allocation7 + $0xb8] sm:$0xff] %vm688_vm2, %v1286_v28  ;;  %v479_v31 = vpop.f32.mrb[23].mxu0  ;;  %v795_v32 = vadd.f32 %v794_v25, %v793_v21  ;;  %v909_v34 = vmul.f32 %v1286_v28, %v1286_v28  ;;  %v798_v45 = vsel %vm688_vm2, %v1286_v28, 0.0 }
 0x12b   :  { %711 = vst.msk [vmem:[#allocation7 + $0xb0] sm:$0xff] %vm688_vm2, %v479_v31  ;;  %v796_v36 = vsel %vm688_vm2, %v479_v31, 0.0  ;;  %v908_v37 = vmul.f32 %v479_v31, %v479_v31  ;;  %v1737_v13 = vpop.f32.mrb[22].mxu1 }
 0x12c   :  { %v797_v40 = vadd.f32 %v796_v36, %v795_v32  ;;  %v992_v42 = vadd.f32 %v991_v33, %v990_v29  ;;  %v995_v52 = vsel %vm688_vm2, %v909_v34, 0.0  ;;  %744 = vst.msk [vmem:[#allocation7 + $0x1b8] sm:$0xff] %vm688_vm2, %v1737_v13  ;;  %v1741_v16 = vpop.f32.mrb[23].mxu1 }
 0x12d   :  { %v993_v46 = vsel %vm688_vm2, %v908_v37, 0.0  ;;  %v1289_v47 = vpop.f32.mrb[24].mxu0  ;;  %743 = vst.msk [vmem:[#allocation7 + $0x1b0] sm:$0xff] %vm688_vm2, %v1741_v16 }
 0x12e   :  { %v994_v48 = vadd.f32 %v993_v46, %v992_v42  ;;  %714 = vst.msk [vmem:[#allocation7 + $0xc8] sm:$0xff] %vm688_vm2, %v1289_v47  ;;  %v489_v49 = vpop.f32.mrb[25].mxu0  ;;  %v799_v50 = vadd.f32 %v798_v45, %v797_v40  ;;  %v911_v53 = vmul.f32 %v1289_v47, %v1289_v47  ;;  %v802_v63 = vsel %vm688_vm2, %v1289_v47, 0.0 }
 0x12f   :  { %713 = vst.msk [vmem:[#allocation7 + $0xc0] sm:$0xff] %vm688_vm2, %v489_v49  ;;  %v800_v56 = vsel %vm688_vm2, %v489_v49, 0.0  ;;  %v910_v57 = vmul.f32 %v489_v49, %v489_v49  ;;  %v1751_v33 = vpop.f32.mrb[24].mxu1  ;;  %v918_v49 = vmul.f32 %v1587_v30, %v1587_v30 }
 0x130   :  { %v801_v60 = vadd.f32 %v800_v56, %v799_v50  ;;  %v996_v61 = vadd.f32 %v995_v52, %v994_v48  ;;  %v999_v9 = vsel %vm688_vm2, %v911_v53, 0.0  ;;  %746 = vst.msk [vmem:[#allocation7 + $0x1c8] sm:$0xff] %vm688_vm2, %v1751_v33  ;;  %v1755_v37 = vpop.f32.mrb[25].mxu1 }
 0x131   :  { %v997_v0 = vsel %vm688_vm2, %v910_v57, 0.0  ;;  %v1292_v1 = vpop.f32.mrb[26].mxu0  ;;  %745 = vst.msk [vmem:[#allocation7 + $0x1c0] sm:$0xff] %vm688_vm2, %v1755_v37 }
 0x132   :  { %v998_v2 = vadd.f32 %v997_v0, %v996_v61  ;;  %716 = vst.msk [vmem:[#allocation7 + $0xd8] sm:$0xff] %vm688_vm2, %v1292_v1  ;;  %v499_v4 = vpop.f32.mrb[27].mxu0  ;;  %v803_v6 = vadd.f32 %v802_v63, %v801_v60  ;;  %v913_v10 = vmul.f32 %v1292_v1, %v1292_v1  ;;  %v806_v17 = vsel %vm688_vm2, %v1292_v1, 0.0 }
 0x133   :  { %715 = vst.msk [vmem:[#allocation7 + $0xd0] sm:$0xff] %vm688_vm2, %v499_v4  ;;  %v804_v11 = vsel %vm688_vm2, %v499_v4, 0.0  ;;  %v912_v12 = vmul.f32 %v499_v4, %v499_v4  ;;  %v1767_v57 = vpop.f32.mrb[26].mxu1 }
 0x134   :  { %v805_v14 = vadd.f32 %v804_v11, %v803_v6  ;;  %v1000_v15 = vadd.f32 %v999_v9, %v998_v2  ;;  %v1003_v28 = vsel %vm688_vm2, %v913_v10, 0.0  ;;  %748 = vst.msk [vmem:[#allocation7 + $0x1d8] sm:$0xff] %vm688_vm2, %v1767_v57  ;;  %v1771_v63 = vpop.f32.mrb[27].mxu1  ;;  %v816_v2 = vsel %vm688_vm2, %v1587_v30, 0.0 }
 0x135   :  { %v1001_v18 = vsel %vm688_vm2, %v912_v12, 0.0  ;;  %v1295_v21 = vpop.f32.mrb[28].mxu0  ;;  %747 = vst.msk [vmem:[#allocation7 + $0x1d0] sm:$0xff] %vm688_vm2, %v1771_v63  ;;  %v919_v10 = vmul.f32 %v1583_v27, %v1583_v27  ;;  %v1013_v11 = vsel %vm688_vm2, %v918_v49, 0.0  ;;  %v920_v12 = vmul.f32 %v1601_v44, %v1601_v44 }
 0x136   :  { %v1002_v23 = vadd.f32 %v1001_v18, %v1000_v15  ;;  %718 = vst.msk [vmem:[#allocation7 + $0xe8] sm:$0xff] %vm688_vm2, %v1295_v21  ;;  %v509_v25 = vpop.f32.mrb[29].mxu0  ;;  %v807_v26 = vadd.f32 %v806_v17, %v805_v14  ;;  %v915_v29 = vmul.f32 %v1295_v21, %v1295_v21  ;;  %v810_v40 = vsel %vm688_vm2, %v1295_v21, 0.0 }
 0x137   :  { %717 = vst.msk [vmem:[#allocation7 + $0xe0] sm:$0xff] %vm688_vm2, %v509_v25  ;;  %v808_v31 = vsel %vm688_vm2, %v509_v25, 0.0  ;;  %v914_v32 = vmul.f32 %v509_v25, %v509_v25  ;;  %v1785_v14 = vpop.f32.mrb[28].mxu1  ;;  %v818_v18 = vsel %vm688_vm2, %v1583_v27, 0.0  ;;  %v820_v21 = vsel %vm688_vm2, %v1601_v44, 0.0 }
 0x138   :  { %v809_v34 = vadd.f32 %v808_v31, %v807_v26  ;;  %v1004_v36 = vadd.f32 %v1003_v28, %v1002_v23  ;;  %v1007_v50 = vsel %vm688_vm2, %v915_v29, 0.0  ;;  %750 = vst.msk [vmem:[#allocation7 + $0x1e8] sm:$0xff] %vm688_vm2, %v1785_v14  ;;  %v1789_v30 = vpop.f32.mrb[29].mxu1  ;;  %v1015_v26 = vsel %vm688_vm2, %v919_v10, 0.0 }
 0x139   :  { %v1005_v42 = vsel %vm688_vm2, %v914_v32, 0.0  ;;  %v1298_v45 = vpop.f32.mrb[30].mxu0  ;;  %749 = vst.msk [vmem:[#allocation7 + $0x1e0] sm:$0xff] %vm688_vm2, %v1789_v30  ;;  %v921_v28 = vmul.f32 %v1597_v41, %v1597_v41  ;;  %v1017_v29 = vsel %vm688_vm2, %v920_v12, 0.0  ;;  %v922_v31 = vmul.f32 %v1615_v58, %v1615_v58 }
 0x13a   :  { %v1006_v46 = vadd.f32 %v1005_v42, %v1004_v36  ;;  %720 = vst.msk [vmem:[#allocation7 + $0xf8] sm:$0xff] %vm688_vm2, %v1298_v45  ;;  %v519_v47 = vpop.f32.mrb[31].mxu0  ;;  %v811_v48 = vadd.f32 %v810_v40, %v809_v34  ;;  %v917_v52 = vmul.f32 %v1298_v45, %v1298_v45  ;;  %v814_v0 = vsel %vm688_vm2, %v1298_v45, 0.0 }
 0x13b   :  { %719 = vst.msk [vmem:[#allocation7 + $0xf0] sm:$0xff] %vm688_vm2, %v519_v47  ;;  %v812_v53 = vsel %vm688_vm2, %v519_v47, 0.0  ;;  %v916_v56 = vmul.f32 %v519_v47, %v519_v47  ;;  %v1803_v32 = vpop.f32.mrb[30].mxu1  ;;  %v822_v36 = vsel %vm688_vm2, %v1597_v41, 0.0  ;;  %v824_v40 = vsel %vm688_vm2, %v1615_v58, 0.0 }
 0x13c   :  { %v813_v60 = vadd.f32 %v812_v53, %v811_v48  ;;  %v1008_v61 = vadd.f32 %v1007_v50, %v1006_v46  ;;  %v1011_v9 = vsel %vm688_vm2, %v917_v52, 0.0  ;;  %752 = vst.msk [vmem:[#allocation7 + $0x1f8] sm:$0xff] %vm688_vm2, %v1803_v32  ;;  %v1807_v34 = vpop.f32.mrb[31].mxu1 }
 0x13d   :  { %v1009_v1 = vsel %vm688_vm2, %v916_v56, 0.0  ;;  %751 = vst.msk [vmem:[#allocation7 + $0x1f0] sm:$0xff] %vm688_vm2, %v1807_v34 }
 0x13e   :  { %v815_v4 = vadd.f32 %v814_v0, %v813_v60  ;;  %v1010_v6 = vadd.f32 %v1009_v1, %v1008_v61 }
 0x140   :  { %v1012_v15 = vadd.f32 %v1011_v9, %v1010_v6  ;;  %v817_v17 = vadd.f32 %v816_v2, %v815_v4 }
 0x142   :  { %v1014_v23 = vadd.f32 %v1013_v11, %v1012_v15  ;;  %v819_v25 = vadd.f32 %v818_v18, %v817_v17 }
 0x144   :  { %v821_v27 = vadd.f32 %v820_v21, %v819_v25  ;;  %v1016_v44 = vadd.f32 %v1015_v26, %v1014_v23 }
 0x146   :  { %v1018_v42 = vadd.f32 %v1017_v29, %v1016_v44  ;;  %v823_v45 = vadd.f32 %v822_v36, %v821_v27 }
 0x147   :  { %1410 = shalt.err (!%p1407_p6)
}
 0x148   :  { %s1411_s14 = scalar_lea.hbm %s1981_s2, 8192 }
 0x149   :  { %p1412_p7 = scmp.ne.s32.totalorder %s1981_s2, %s1411_s14  ;;  %p1415_p8 = scmp.lt.u32.totalorder %s1411_s14, %s1981_s2 }
 0x14b   :  { %p1417_p9 = pnand %p1415_p8, %p1412_p7 }
 0x14d   :  { %1420 = shalt.err (!%p1417_p9)
}
 0x14e   :  { %1098 = dma.vmem_to_hbm [thread:$0]  %s1093_s10, 8192, %s1981_s2, [#allocation4], %s1452_s22, %s1452_s22, %s1453_s23   ;;  %v1019_v41 = vsel %vm688_vm2, %v921_v28, 0.0  ;;  %v923_v58 = vmul.f32 %v1611_v55, %v1611_v55  ;;  %v1021_v46 = vsel %vm688_vm2, %v922_v31, 0.0  ;;  %v924_v47 = vmul.f32 %v1629_v8, %v1629_v8 }
 0x14f   :  { %v825_v48 = vadd.f32 %v824_v40, %v823_v45  ;;  %v1020_v49 = vadd.f32 %v1019_v41, %v1018_v42  ;;  %v826_v50 = vsel %vm688_vm2, %v1611_v55, 0.0  ;;  %v828_v52 = vsel %vm688_vm2, %v1629_v8, 0.0  ;;  %s1456_s2 = smov [#allocation8]  }
 0x150   :  { %v1023_v60 = vsel %vm688_vm2, %v923_v58, 0.0  ;;  %v925_v61 = vmul.f32 %v1625_v5, %v1625_v5  ;;  %v1025_v0 = vsel %vm688_vm2, %v924_v47, 0.0  ;;  %v926_v1 = vmul.f32 %v1643_v22, %v1643_v22  ;;  %s1105_s21 = sshll.u32 %s1456_s2, 4  ;;  %s1106_s21 = int_to_ptr.vmem [resolvable:$true] %s1105_s21 }
 0x151   :  { %v1022_v53 = vadd.f32 %v1021_v46, %v1020_v49  ;;  %v827_v56 = vadd.f32 %v826_v50, %v825_v48  ;;  %v830_v55 = vsel %vm688_vm2, %v1625_v5, 0.0  ;;  %v832_v8 = vsel %vm688_vm2, %v1643_v22, 0.0  ;;  %s1421_s22 = scalar_lea.vmem %s1106_s21, 32  ;;  %p1426_p11 = scmp.lt.s32.totalorder %s1106_s21, %s1106_s21 }
 0x152   :  { %v1027_v10 = vsel %vm688_vm2, %v925_v61, 0.0  ;;  %v927_v11 = vmul.f32 %v1639_v19, %v1639_v19  ;;  %v1029_v12 = vsel %vm688_vm2, %v926_v1, 0.0  ;;  %v928_v15 = vmul.f32 %v1657_v38, %v1657_v38  ;;  %p1422_p10 = scmp.ne.s32.totalorder %s1106_s21, %s1421_s22  ;;  %p1427_p12 = scmp.lt.s32.totalorder %s1421_s22, %s1421_s22 }
 0x153   :  { %v829_v2 = vadd.f32 %v828_v52, %v827_v56  ;;  %v1024_v4 = vadd.f32 %v1023_v60, %v1022_v53  ;;  %v834_v5 = vsel %vm688_vm2, %v1639_v19, 0.0  ;;  %v836_v22 = vsel %vm688_vm2, %v1657_v38, 0.0 }
 0x154   :  { %v1031_v25 = vsel %vm688_vm2, %v927_v11, 0.0  ;;  %v929_v26 = vmul.f32 %v1653_v35, %v1653_v35  ;;  %v1033_v28 = vsel %vm688_vm2, %v928_v15, 0.0  ;;  %v930_v29 = vmul.f32 %v1671_v54, %v1671_v54  ;;  %p1428_p13 = por %p1427_p12, %p1426_p11 }
 0x155   :  { %v1026_v6 = vadd.f32 %v1025_v0, %v1024_v4  ;;  %v831_v9 = vadd.f32 %v830_v55, %v829_v2  ;;  %v838_v19 = vsel %vm688_vm2, %v1653_v35, 0.0  ;;  %v840_v38 = vsel %vm688_vm2, %v1671_v54, 0.0 }
 0x156   :  { %v1035_v40 = vsel %vm688_vm2, %v929_v26, 0.0  ;;  %v931_v42 = vmul.f32 %v1667_v51, %v1667_v51  ;;  %v1037_v45 = vsel %vm688_vm2, %v930_v29, 0.0  ;;  %v932_v41 = vmul.f32 %v1685_v7, %v1685_v7  ;;  %p1429_p0 = pnand %p1428_p13, %p1422_p10 }
 0x157   :  { %v833_v17 = vadd.f32 %v832_v8, %v831_v9  ;;  %v1028_v18 = vadd.f32 %v1027_v10, %v1026_v6  ;;  %v842_v35 = vsel %vm688_vm2, %v1667_v51, 0.0  ;;  %v844_v54 = vsel %vm688_vm2, %v1685_v7, 0.0 }
 0x158   :  { %v1039_v49 = vsel %vm688_vm2, %v931_v42, 0.0  ;;  %v933_v50 = vmul.f32 %v1681_v3, %v1681_v3  ;;  %v1041_v52 = vsel %vm688_vm2, %v932_v41, 0.0  ;;  %v934_v53 = vmul.f32 %v1699_v24, %v1699_v24 }
 0x159   :  { %v1030_v21 = vadd.f32 %v1029_v12, %v1028_v18  ;;  %v835_v23 = vadd.f32 %v834_v5, %v833_v17  ;;  %v846_v51 = vsel %vm688_vm2, %v1681_v3, 0.0  ;;  %v848_v7 = vsel %vm688_vm2, %v1699_v24, 0.0 }
 0x15a   :  { %v1043_v1 = vsel %vm688_vm2, %v933_v50, 0.0  ;;  %v935_v2 = vmul.f32 %v1695_v20, %v1695_v20  ;;  %v1045_v4 = vsel %vm688_vm2, %v934_v53, 0.0  ;;  %v936_v55 = vmul.f32 %v1713_v43, %v1713_v43 }
 0x15b   :  { %v837_v31 = vadd.f32 %v836_v22, %v835_v23  ;;  %v1032_v27 = vadd.f32 %v1031_v25, %v1030_v21  ;;  %v850_v3 = vsel %vm688_vm2, %v1695_v20, 0.0  ;;  %v852_v24 = vsel %vm688_vm2, %v1713_v43, 0.0 }
 0x15c   :  { %v1047_v11 = vsel %vm688_vm2, %v935_v2, 0.0  ;;  %v937_v12 = vmul.f32 %v1709_v39, %v1709_v39  ;;  %v1049_v15 = vsel %vm688_vm2, %v936_v55, 0.0  ;;  %v938_v17 = vmul.f32 %v1727_v62, %v1727_v62 }
 0x15d   :  { %v1034_v44 = vadd.f32 %v1033_v28, %v1032_v27  ;;  %v839_v36 = vadd.f32 %v838_v19, %v837_v31  ;;  %v854_v20 = vsel %vm688_vm2, %v1709_v39, 0.0  ;;  %v856_v43 = vsel %vm688_vm2, %v1727_v62, 0.0 }
 0x15e   :  { %v1051_v23 = vsel %vm688_vm2, %v937_v12, 0.0  ;;  %v939_v25 = vmul.f32 %v1723_v59, %v1723_v59  ;;  %v1053_v26 = vsel %vm688_vm2, %v938_v17, 0.0  ;;  %v940_v28 = vmul.f32 %v1741_v16, %v1741_v16 }
 0x15f   :  { %v841_v58 = vadd.f32 %v840_v38, %v839_v36  ;;  %v1036_v46 = vadd.f32 %v1035_v40, %v1034_v44  ;;  %v858_v39 = vsel %vm688_vm2, %v1723_v59, 0.0  ;;  %v860_v62 = vsel %vm688_vm2, %v1741_v16, 0.0 }
 0x160   :  { %v1055_v38 = vsel %vm688_vm2, %v939_v25, 0.0  ;;  %v941_v44 = vmul.f32 %v1737_v13, %v1737_v13  ;;  %v1057_v36 = vsel %vm688_vm2, %v940_v28, 0.0  ;;  %v942_v40 = vmul.f32 %v1755_v37, %v1755_v37 }
 0x161   :  { %v1038_v47 = vadd.f32 %v1037_v45, %v1036_v46  ;;  %v843_v48 = vadd.f32 %v842_v35, %v841_v58  ;;  %v862_v59 = vsel %vm688_vm2, %v1737_v13, 0.0  ;;  %v864_v16 = vsel %vm688_vm2, %v1755_v37, 0.0 }
 0x162   :  { %v1059_v46 = vsel %vm688_vm2, %v941_v44, 0.0  ;;  %v943_v35 = vmul.f32 %v1751_v33, %v1751_v33  ;;  %v866_v13 = vsel %vm688_vm2, %v1751_v33, 0.0  ;;  %v868_v37 = vsel %vm688_vm2, %v1771_v63, 0.0 }
 0x163   :  { %v845_v56 = vadd.f32 %v844_v54, %v843_v48  ;;  %v1040_v60 = vadd.f32 %v1039_v49, %v1038_v47  ;;  %v1061_v54 = vsel %vm688_vm2, %v942_v40, 0.0  ;;  %v944_v47 = vmul.f32 %v1771_v63, %v1771_v63 }
 0x164   :  { %v1063_v53 = vsel %vm688_vm2, %v943_v35, 0.0  ;;  %v870_v33 = vsel %vm688_vm2, %v1767_v57, 0.0  ;;  %v872_v63 = vsel %vm688_vm2, %v1789_v30, 0.0  ;;  %vm1083_vm3 = vcmask 1040384  }
 0x165   :  { %v1042_v61 = vadd.f32 %v1041_v52, %v1040_v60  ;;  %v847_v0 = vadd.f32 %v846_v51, %v845_v56  ;;  %v945_v56 = vmul.f32 %v1767_v57, %v1767_v57  ;;  %v1065_v60 = vsel %vm688_vm2, %v944_v47, 0.0 }
 0x166   :  { %v946_v51 = vmul.f32 %v1789_v30, %v1789_v30  ;;  %v874_v57 = vsel %vm688_vm2, %v1785_v14, 0.0  ;;  %v876_v30 = vsel %vm688_vm2, %v1807_v34, 0.0  ;;  %vm1085_vm4 = vcmask 9216  }
 0x167   :  { %v849_v8 = vadd.f32 %v848_v7, %v847_v0  ;;  %v1044_v6 = vadd.f32 %v1043_v1, %v1042_v61  ;;  %v1067_v2 = vsel %vm688_vm2, %v945_v56, 0.0 }
 0x168   :  { %v1069_v55 = vsel %vm688_vm2, %v946_v51, 0.0 }
 0x169   :  { %v1046_v9 = vadd.f32 %v1045_v4, %v1044_v6  ;;  %v851_v10 = vadd.f32 %v850_v3, %v849_v8  ;;  %v947_v4 = vmul.f32 %v1785_v14, %v1785_v14  ;;  %v948_v8 = vmul.f32 %v1807_v34, %v1807_v34 }
 0x16b   :  { %v853_v18 = vadd.f32 %v852_v24, %v851_v10  ;;  %v1048_v5 = vadd.f32 %v1047_v11, %v1046_v9  ;;  %v1071_v10 = vsel %vm688_vm2, %v947_v4, 0.0  ;;  %v949_v11 = vmul.f32 %v1803_v32, %v1803_v32 }
 0x16c   :  { %v1073_v12 = vsel %vm688_vm2, %v948_v8, 0.0 }
 0x16d   :  { %v1050_v22 = vadd.f32 %v1049_v15, %v1048_v5  ;;  %v855_v21 = vadd.f32 %v854_v20, %v853_v18  ;;  %v878_v18 = vsel %vm688_vm2, %v1803_v32, 0.0  ;;  %v1075_v14 = vsel %vm688_vm2, %v949_v11, 0.0 }
 0x16f   :  { %v857_v29 = vadd.f32 %v856_v43, %v855_v21  ;;  %v1052_v31 = vadd.f32 %v1051_v23, %v1050_v22 }
 0x171   :  { %v1054_v27 = vadd.f32 %v1053_v26, %v1052_v31  ;;  %v859_v19 = vadd.f32 %v858_v39, %v857_v29 }
 0x173   :  { %v861_v42 = vadd.f32 %v860_v62, %v859_v19  ;;  %v1056_v45 = vadd.f32 %v1055_v38, %v1054_v27 }
 0x175   :  { %v1058_v41 = vadd.f32 %v1057_v36, %v1056_v45  ;;  %v863_v58 = vadd.f32 %v862_v59, %v861_v42 }
 0x177   :  { %v865_v48 = vadd.f32 %v864_v16, %v863_v58  ;;  %v1060_v49 = vadd.f32 %v1059_v46, %v1058_v41 }
 0x179   :  { %v1062_v50 = vadd.f32 %v1061_v54, %v1060_v49  ;;  %v867_v52 = vadd.f32 %v866_v13, %v865_v48 }
 0x17b   :  { %v869_v7 = vadd.f32 %v868_v37, %v867_v52  ;;  %v1064_v61 = vadd.f32 %v1063_v53, %v1062_v50 }
 0x17d   :  { %v1066_v0 = vadd.f32 %v1065_v60, %v1064_v61  ;;  %v871_v1 = vadd.f32 %v870_v33, %v869_v7 }
 0x17f   :  { %v873_v6 = vadd.f32 %v872_v63, %v871_v1  ;;  %v1068_v3 = vadd.f32 %v1067_v2, %v1066_v0 }
 0x181   :  { %v1070_v24 = vadd.f32 %v1069_v55, %v1068_v3  ;;  %v875_v9 = vadd.f32 %v874_v57, %v873_v6 }
 0x183   :  { %v877_v15 = vadd.f32 %v876_v30, %v875_v9  ;;  %v1072_v17 = vadd.f32 %v1071_v10, %v1070_v24 }
 0x185   :  { %v879_v5 = vadd.f32 %v878_v18, %v877_v15  ;;  %v1074_v20 = vadd.f32 %v1073_v12, %v1072_v17 }
 0x187   :  { %v880_v43 = vrot.slane %v879_v5, 4  ;;  %v1076_v34 = vadd.f32 %v1075_v14, %v1074_v20 }
 0x189   :  { %v881_v22 = vadd.f32 %v880_v43, %v879_v5  ;;  %v1077_v21 = vrot.slane %v1076_v34, 4 }
 0x18b   :  { %v882_v23 = vrot.slane %v881_v22, 2  ;;  %v1078_v25 = vadd.f32 %v1077_v21, %v1076_v34 }
 0x18d   :  { %v883_v26 = vadd.f32 %v882_v23, %v881_v22  ;;  %v1079_v28 = vrot.slane %v1078_v25, 2 }
 0x18f   :  { %v884_v29 = vrot.slane %v883_v26, 1  ;;  %v1080_v31 = vadd.f32 %v1079_v28, %v1078_v25 }
 0x191   :  { %v1081_v39 = vrot.slane %v1080_v31, 1  ;;  %v885_v62 = vadd.f32 %v884_v29, %v883_v26 }
 0x193   :  { %v1082_v32 = vadd.f32 %v1081_v39, %v1080_v31 }
 0x195   :  { %v1084_v27 = vsel %vm1083_vm3, %v885_v62, %v1082_v32 }
 0x196   :  { %1086 = vst.msk [vmem:[#allocation8] sm:$0x3] %vm1085_vm4, %v1084_v27 }
 0x197   :  { %1432 = shalt.err (!%p1429_p0)
}
 0x198   :  { %s1433_s25 = scalar_lea.hbm %s1982_s3, 32 }
 0x199   :  { %p1434_p1 = scmp.ne.s32.totalorder %s1982_s3, %s1433_s25  ;;  %p1437_p2 = scmp.lt.u32.totalorder %s1433_s25, %s1982_s3 }
 0x19b   :  { %p1439_p3 = pnand %p1437_p2, %p1434_p1 }
 0x19d   :  { %1442 = shalt.err (!%p1439_p3)
}
 0x19e   :  { %1108 = dma.vmem_to_hbm [thread:$0]  %s1106_s21, 32, %s1982_s3, [#allocation9]  }
 0x19f   :  { %1447 = dma.done.wait [#allocation4], 8192  }
 0x1a0   :  { %1448 = vsyncadd [#allocation4], 4294959104 }
 0x1a1   :  { %1449 = dma.done.wait [#allocation9], 32  }
 0x1a2   :  { %1450 = vsyncadd [#allocation9], 4294967264 }
 0x1a3   :  { %1115 = vsyncpa [#allocation3], 1 }
 0x1a4   :  { %1116 = vsyncpa [#allocation6], 1 }
 0x1a5   :  { %1117 = vsyncpa [#allocation4], 1 }
 0x1a6   :  { %1118 = vsyncpa [#allocation9], 1 }

// kernel: residual_block_forward.7
= control target key start
LH: loop header
LB: loop body
LE: loop exit
PB: predicated region body
PF: predicated region fallthrough
CT: control target
= control target key end

     0   :  { %11 = vsyncpa [#allocation4], 0  ;;  %s9179_s0 = inlined_call_operand.hbm [shape: f32[2,256,2], index: 0, kind: input, shape index: {}]   ;;  %s9180_s1 = inlined_call_operand.hbm [shape: f32[1,2], index: 1, kind: input, shape index: {}]   ;;  %s9181_s2 = inlined_call_operand.hbm [shape: f32[1,2], index: 2, kind: input, shape index: {}]   ;;  %s9182_s3 = inlined_call_operand.hbm [shape: f32[9,2,4], index: 3, kind: input, shape index: {}]   ;;  %s9183_s4 = inlined_call_operand.hbm [shape: f32[2,256,4], index: 4, kind: output, shape index: {0}]   ;;  %s9184_s5 = inlined_call_operand.hbm [shape: f32[2,2,4], index: 5, kind: output, shape index: {1}]  }
   0x1   :  { %13 = vsyncpa [#allocation4 + $0x1], 0 }
   0x2   :  { %14 = vsyncpa [#allocation7], 0 }
   0x3   :  { %15 = vsyncpa [#allocation10], 0 }
   0x4   :  { %16 = vsyncpa [#allocation5], 0 }
   0x5   :  { %18 = vsyncpa [#allocation5 + $0x1], 0 }
   0x6   :  { %19 = vsyncpa [#allocation13], 0 }
   0x7   :  { %21 = vsyncpa [#allocation13 + $0x1], 0  ;;  %s7355_s18 = smov 0   ;;  %s7357_s19 = smov 0  }
   0x8   :  { %s7359_s20 = smov 0   ;;  %s7361_s21 = smov 0  }
   0x9 LB: > { %s7376_s22 = sadd.s32 4294967295, %s7310_s21   ;;  %s5511_s23 = sadd.s32 4294967294, %s7310_s21   ;;  %s7310_s21 = sphi %s7361_s21, %s9359_s21   ;;  %s7306_s20 = sphi %s7359_s20, %s9358_s20   ;;  %s7302_s19 = sphi %s7357_s19, %s9357_s19   ;;  %s7298_s18 = sphi %s7355_s18, %s9356_s18  }
   0xa   : > { %p47_p0 = scmp.ne.s32.totalorder %s7302_s19, %s7298_s18  ;;  %p9185_p1 = scmp.eq.s32.totalorder %s7376_s22, 0 }
   0xb   : > { %p140_p3 = scmp.eq.s32.totalorder %s5511_s23, 1  ;;  %p5512_p5 = scmp.ge.s32.totalorder %s7310_s21, 1 }
   0xc   : > { %p7385_p4 = por %p9185_p1, %p47_p0  ;;  %p173_p7 = scmp.lt.s32.totalorder %s7310_s21, 3 }
   0xd   : > { %p7390_p6 = por %p140_p3, %p47_p0  ;;  %s7312_s27 = smov [#allocation6]  }
   0xe   : > { %s9235_s24 = scalar_select %p7385_p4, 1, 0 }
   0xf   : > { %s9236_s25 = scalar_select %p7390_p6, 1, 0 }
  0x10   : > { %p7395_p8 = pnand %p5512_p5, %p173_p7  ;;  %s186_s28 = sshll.u32 %s7312_s27, 4  ;;  %s187_s28 = int_to_ptr.vmem [resolvable:$true] %s186_s28 }
  0x11   : > { %s7313_s29 = smov [#allocation8]   ;;  %s7314_s7 = smov [#allocation9]  }
  0x12   : > { %s9237_s26 = scalar_select %p7395_p8, 1, 0 }
  0x13   : > { %p6890_p10 = pneg %p7395_p8  ;;  %s197_s30 = sshll.u32 %s7313_s29, 4  ;;  %s7408_s30 = int_to_ptr.vmem [resolvable:$true] %s197_s30 }
  0x14   : > { %s207_s8 = sshll.u32 %s7314_s7, 4  ;;  %s7090_s11 = scalar_lea.hbm %s9180_s1, 16  ;;  %s7410_s8 = int_to_ptr.vmem [resolvable:$true] %s207_s8 }
  0x15   : > { %p7404_p11 = pnand %p6890_p10, %p9185_p1  ;;  %p7091_p12 = scmp.ne.s32.totalorder %s9180_s1, %s7090_s11 }
  0x16   : > { %p7097_p5 = scmp.lt.u32.totalorder %s7090_s11, %s9180_s1 }
  0x17   : > { %p7420_p13 = pneg %p7404_p11 }
  0x19   : > { %p7093_p0 = pnand %p7420_p13, %p7091_p12 }
  0x1b   : > { %p7094_p3 = pneg %p7093_p0 }
  0x1d   : > { %p7099_p7 = pnand %p7097_p5, %p7094_p3 }
  0x1f   : > { %7102 = shalt.err (!%p7099_p7)
}
  0x20   : > { %s7103_s17 = scalar_lea.vmem %s187_s28, 16  ;;  %s7110_s23 = scalar_lea.vmem %s187_s28, 32 }
  0x21   : > { %p7104_p10 = scmp.ne.s32.totalorder %s187_s28, %s7103_s17  ;;  %p7111_p2 = scmp.lt.s32.totalorder %s187_s28, %s187_s28 }
  0x22   : > { %p7112_p6 = scmp.lt.s32.totalorder %s7110_s23, %s7103_s17 }
  0x23   : > { %p7106_p9 = pnand %p7104_p10, %p7420_p13 }
  0x24   : > { %p7113_p4 = por %p7112_p6, %p7111_p2 }
  0x25   : > { %p7107_p1 = pneg %p7106_p9 }
  0x27   : > { %p7114_p8 = pnand %p7113_p4, %p7107_p1 }
  0x29   : > { %7117 = shalt.err (!%p7114_p8)
}
  0x2a   : > { %6893 = dma.hbm_to_vmem [thread:$0]  (!%p7404_p11), %s9180_s1, 16, %s187_s28, [#allocation7]  }
  0x2b   : > { %s7118_s10 = scalar_lea.hbm %s9181_s2, 16 }
  0x2c   : > { %p7119_p9 = scmp.ne.s32.totalorder %s9181_s2, %s7118_s10  ;;  %p7125_p1 = scmp.lt.u32.totalorder %s7118_s10, %s9181_s2 }
  0x2e   : > { %p7121_p12 = pnand %p7119_p9, %p7420_p13 }
  0x30   : > { %p7122_p2 = pneg %p7121_p12 }
  0x32   : > { %p7127_p4 = pnand %p7125_p1, %p7122_p2 }
  0x34   : > { %7130 = shalt.err (!%p7127_p4)
}
  0x35   : > { %s7131_s28 = scalar_lea.vmem %s7408_s30, 16  ;;  %s7138_s16 = scalar_lea.vmem %s7408_s30, 32 }
  0x36   : > { %p7132_p6 = scmp.ne.s32.totalorder %s7408_s30, %s7131_s28  ;;  %p7139_p3 = scmp.lt.s32.totalorder %s7408_s30, %s7408_s30 }
  0x37   : > { %p7140_p5 = scmp.lt.s32.totalorder %s7138_s16, %s7131_s28 }
  0x38   : > { %p7134_p8 = pnand %p7132_p6, %p7420_p13 }
  0x39   : > { %p7141_p7 = por %p7140_p5, %p7139_p3 }
  0x3a   : > { %p7135_p0 = pneg %p7134_p8 }
  0x3c   : > { %p7142_p10 = pnand %p7141_p7, %p7135_p0 }
  0x3e   : > { %7145 = shalt.err (!%p7142_p10)
}
  0x3f   : > { %6896 = dma.hbm_to_vmem [thread:$0]  (!%p7404_p11), %s9181_s2, 16, %s7408_s30, [#allocation7]  }
  0x40   : > { %s7146_s7 = scalar_lea.hbm %s9182_s3, 288 }
  0x41   : > { %p7147_p9 = scmp.ne.s32.totalorder %s9182_s3, %s7146_s7  ;;  %p7153_p1 = scmp.lt.u32.totalorder %s7146_s7, %s9182_s3 }
  0x43   : > { %p7149_p12 = pnand %p7147_p9, %p7420_p13 }
  0x45   : > { %p7150_p2 = pneg %p7149_p12 }
  0x47   : > { %p7155_p4 = pnand %p7153_p1, %p7150_p2 }
  0x49   : > { %7158 = shalt.err (!%p7155_p4)
}
  0x4a   : > { %s7159_s30 = scalar_lea.vmem %s7410_s8, 288  ;;  %p7167_p3 = scmp.lt.s32.totalorder %s7410_s8, %s7410_s8 }
  0x4b   : > { %p7160_p6 = scmp.ne.s32.totalorder %s7410_s8, %s7159_s30  ;;  %p7168_p5 = scmp.lt.s32.totalorder %s7159_s30, %s7159_s30 }
  0x4d   : > { %p7162_p8 = pnand %p7160_p6, %p7420_p13  ;;  %p7169_p7 = por %p7168_p5, %p7167_p3 }
  0x4f   : > { %p7163_p0 = pneg %p7162_p8 }
  0x51   : > { %p7170_p10 = pnand %p7169_p7, %p7163_p0 }
  0x53   : > { %7173 = shalt.err (!%p7170_p10)
}
  0x54   : > { %s7315_s13 = smov 32   ;;  %s7316_s14 = smov 2  }
  0x55   : > { %6899 = dma.hbm_to_vmem [thread:$0]  (!%p7404_p11), %s9182_s3, 288, %s7410_s8, [#allocation10], %s7315_s13, %s7315_s13, %s7316_s14  }
  0x56   : > { %s7484_s16 = sadd.s32 1, %s7310_s21   ;;  %s34_s23 = sadd.s32 1, %s7306_s20 }
  0x57   : > { %s31_s17 = ssub.s32 %s7310_s21, %s7484_s16  ;;  %p41_p9 = scmp.ne.s32.totalorder %s7306_s20, %s7302_s19 }
  0x58   : > { %p32_p13 = scmp.eq.s32.totalorder %s31_s17, 0  ;;  %p42_p12 = scmp.eq.s32.totalorder %s7310_s21, 0 }
  0x59   : > { %p6914_p2 = scmp.lt.s32.totalorder %s7310_s21, 2  ;;  %p9240_p4 = scmp.eq.s32.totalorder %s7376_s22, 1 }
  0x5a   : > { %s7494_s27 = scalar_select %p32_p13, %s7306_s20, %s34_s23  }
  0x5b   : > { %p43_p1 = por %p42_p12, %p41_p9  ;;  %p7498_p6 = por %p9240_p4, %p41_p9 }
  0x5c   : > { %s221_s6 = sand.u32 1, %s7306_s20   ;;  %s5865_s7 = sshll.u32 %s7310_s21, 12 }
  0x5d   : > { %s5517_s8 = sshll.u32 %s221_s6, 8  ;;  %s7507_s11 = scalar_lea.hbm %s9179_s0, %s5865_s7 }
  0x5e   : > { %s225_s12 = scalar_lea.vmem [#allocation3], %s5517_s8  ;;  %p7509_p11 = pnand %p6914_p2, %p43_p1 }
  0x5f   : > { %s232_s30 = sshll.u32 %s225_s12, 4  ;;  %s7515_s14 = scalar_lea.sflag [#allocation4], %s221_s6  ;;  %s7513_s30 = int_to_ptr.vmem [resolvable:$true] %s232_s30 }
  0x60   : > { %s7174_s15 = scalar_lea.hbm %s7507_s11, 4096  ;;  %p7176_p0 = pneg %p7509_p11 }
  0x61   : > { %p7175_p8 = scmp.ne.s32.totalorder %s7507_s11, %s7174_s15  ;;  %s7179_s23 = scalar_lea.hbm %s9179_s0, 8192 }
  0x62   : > { %p7180_p7 = scmp.lt.u32.totalorder %s7507_s11, %s9179_s0  ;;  %p7181_p10 = scmp.lt.u32.totalorder %s7179_s23, %s7174_s15 }
  0x63   : > { %p7177_p3 = pnand %p7176_p0, %p7175_p8  ;;  %p7183_p9 = scmp.lt.u32.totalorder %s7174_s15, %s7507_s11 }
  0x64   : > { %p7182_p13 = por %p7181_p10, %p7180_p7 }
  0x65   : > { %p7178_p5 = pneg %p7177_p3 }
  0x66   : > { %p7184_p12 = por %p7183_p9, %p7182_p13 }
  0x68   : > { %p7185_p2 = pnand %p7184_p12, %p7178_p5 }
  0x6a   : > { %7188 = shalt.err (!%p7185_p2)
}
  0x6b   : > { %s7189_s6 = scalar_lea.vmem %s7513_s30, 4096  ;;  %s7317_s9 = smov [#allocation3]  }
  0x6c   : > { %p7190_p1 = scmp.ne.s32.totalorder %s7513_s30, %s7189_s6  ;;  %s7194_s10 = sshll.u32 %s7317_s9, 4  ;;  %s7195_s10 = int_to_ptr.vmem [resolvable:$false] %s7194_s10 }
  0x6d   : > { %s7196_s12 = scalar_lea.vmem %s7195_s10, 8192  ;;  %p7197_p3 = scmp.lt.s32.totalorder %s7513_s30, %s7195_s10 }
  0x6e   : > { %p7192_p4 = pnand %p7190_p1, %p7176_p0  ;;  %p7198_p7 = scmp.lt.s32.totalorder %s7196_s12, %s7189_s6 }
  0x70   : > { %p7193_p8 = pneg %p7192_p4  ;;  %p7199_p10 = por %p7198_p7, %p7197_p3 }
  0x72   : > { %p7200_p13 = pnand %p7199_p10, %p7193_p8 }
  0x74   : > { %7203 = shalt.err (!%p7200_p13)
}
  0x75   : > { %s7318_s15 = smov 128   ;;  %s7319_s28 = smov 8  }
  0x76   : > { %6903 = dma.hbm_to_vmem [thread:$0]  (!%p7509_p11), %s7507_s11, 4096, %s7513_s30, %s7515_s14, %s7318_s15, %s7318_s15, %s7319_s28  }
  0x77   : > { %p9243_p0 = scmp.ne.s32.totalorder %s9237_s26, 0 }
  0x79   : > { %244 = sbr.rel (%p9243_p0) target bundleno = 730 (0x2da), region = 36 }
  0x80   : > { %s7546_s17 = sand.u32 1, %s7302_s19   ;;  %p9244_p5 = scmp.ne.s32.totalorder %s9235_s24, 0 }
  0x81   : > { %s5521_s23 = sshll.u32 %s7546_s17, 8  ;;  %s247_s7 = scalar_lea.sflag [#allocation4], %s7546_s17 }
  0x82   : > { %s7552_s8 = scalar_lea.vmem [#allocation3], %s5521_s23 }
  0x83   : > { %7277 = dma.done.wait (%p9244_p5), %s247_s7, 4096  }
  0x84   : > { %7279 = vsyncadd (%p9244_p5), %s247_s7, 4294963200  ;;  %p9245_p11 = scmp.eq.s32.totalorder %s7376_s22, 0 }
  0x86   : > { %7281 = dma.done.wait (%p9245_p11), [#allocation7], 32   ;;  %p9246_p9 = pmov %p9245_p11 }
  0x88   : > { %7283 = vsyncadd (%p9246_p9), [#allocation7], 4294967264  ;;  %p9247_p12 = pmov %p9246_p9 }
  0x89   : > { %p9248_p2 = pmov %p9246_p9 }
  0x8a   : > { %7285 = dma.done.wait (%p9247_p12), [#allocation10], 288  }
  0x8b   : > { %7287 = vsyncadd (%p9248_p2), [#allocation10], 4294967008  ;;  %vm628_vm0 = vcmask 15360   ;;  %v9191_v0 = vmov 0.0   ;;  %vm1503_vm1 = vcmask 1041408   ;;  %v294_v3 = vld [vmem:[%s7552_s8] sm:$0xff] }
  0x8c   : > { %629 = vst.msk [vmem:[#allocation2] sm:$0xff] %vm628_vm0, %v9191_v0  ;;  %630 = vst.msk [vmem:[#allocation2 + $0x8] sm:$0xff] %vm628_vm0, %v9191_v0  ;;  %v1406_v1 = vld [vmem:[#allocation9 + $0x2] sm:$0x3]  ;;  %v3125_v2 = vld [vmem:[#allocation9 + $0x8] sm:$0x3] }
  0x8d   : > { %631 = vst.msk [vmem:[#allocation2 + $0x10] sm:$0xff] %vm628_vm0, %v9191_v0  ;;  %632 = vst.msk [vmem:[#allocation2 + $0x18] sm:$0xff] %vm628_vm0, %v9191_v0  ;;  %6164 = vmatprep.subr.msk.mxu1 %vm1503_vm1, %v1406_v1  ;;  %6364 = vmatprep.subr.msk.mxu0 %vm1503_vm1, %v3125_v2  ;;  %v7641_v6 = vld [vmem:[#allocation6] ss:$0 sm:$0xff]  ;;  %v7646_v8 = vld [vmem:[#allocation8] ss:$0 sm:$0xff] }
  0x8e   : > { %633 = vst.msk [vmem:[#allocation2 + $0x20] sm:$0xff] %vm628_vm0, %v9191_v0  ;;  %634 = vst.msk [vmem:[#allocation2 + $0x28] sm:$0xff] %vm628_vm0, %v9191_v0  ;;  %6165 = vmatpush3.msk.msra.mxu1 %vm1503_vm1, %v1406_v1  ;;  %v333_v7 = vmul.f32 %v7641_v6, %v294_v3  ;;  %v1372_v9 = vld [vmem:[#allocation9] sm:$0x3]  ;;  %v7648_v10 = vld [vmem:[#allocation9 + $0xa] sm:$0x3]  ;;  %6365 = vmatpush3.msk.msra.mxu0 %vm1503_vm1, %v3125_v2 }
  0x8f   : > { %635 = vst.msk [vmem:[#allocation2 + $0x30] sm:$0xff] %vm628_vm0, %v9191_v0  ;;  %636 = vst.msk [vmem:[#allocation2 + $0x38] sm:$0xff] %vm628_vm0, %v9191_v0  ;;  %v295_v11 = vld [vmem:[%s7552_s8 + $0x8] sm:$0xff]  ;;  %v296_v12 = vld [vmem:[%s7552_s8 + $0x10] sm:$0xff]  ;;  %6214 = vmatprep.subr.msk.mxu1 %vm1503_vm1, %v1372_v9  ;;  %6414 = vmatprep.subr.msk.mxu0 %vm1503_vm1, %v7648_v10  ;;  %s8959_s24 = scalar_lea.vmem [#allocation11], %s5521_s23  ;;  %s5866_s26 = sshll.u32 %s7376_s22, 12 }
  0x90   : > { %637 = vst.msk [vmem:[#allocation2 + $0x40] sm:$0xff] %vm628_vm0, %v9191_v0  ;;  %638 = vst.msk [vmem:[#allocation2 + $0x48] sm:$0xff] %vm628_vm0, %v9191_v0  ;;  %v297_v13 = vld [vmem:[%s7552_s8 + $0x18] sm:$0xff]  ;;  %v7656_v14 = vadd.f32 %v7646_v8, %v333_v7  ;;  %v334_v15 = vmul.f32 %v7641_v6, %v295_v11  ;;  %v335_v16 = vmul.f32 %v7641_v6, %v296_v12  ;;  %v298_v17 = vld [vmem:[%s7552_s8 + $0x20] sm:$0xff]  ;;  %s5364_s11 = sshll.u32 %s8959_s24, 4  ;;  %s9091_s14 = scalar_lea.hbm %s9183_s4, %s5866_s26  ;;  %s9093_s11 = int_to_ptr.vmem [resolvable:$true] %s5364_s11 }
  0x91   : > { %639 = vst.msk [vmem:[#allocation2 + $0x50] sm:$0xff] %vm628_vm0, %v9191_v0  ;;  %640 = vst.msk [vmem:[#allocation2 + $0x58] sm:$0xff] %vm628_vm0, %v9191_v0  ;;  %v299_v18 = vld [vmem:[%s7552_s8 + $0x28] sm:$0xff]  ;;  %v300_v19 = vld [vmem:[%s7552_s8 + $0x30] sm:$0xff]  ;;  %v336_v20 = vmul.f32 %v7641_v6, %v297_v13  ;;  %v337_v21 = vmul.f32 %v7641_v6, %v298_v17  ;;  %s5346_s6 = scalar_lea.sflag [#allocation5], %s7546_s17  ;;  %s7204_s9 = scalar_lea.vmem %s9093_s11, 4096 }
  0x92   : > { %641 = vst.msk [vmem:[#allocation2 + $0x60] sm:$0xff] %vm628_vm0, %v9191_v0  ;;  %642 = vst.msk [vmem:[#allocation2 + $0x68] sm:$0xff] %vm628_vm0, %v9191_v0  ;;  %v338_v22 = vmul.f32 %v7641_v6, %v299_v18  ;;  %v339_v23 = vmul.f32 %v7641_v6, %v300_v19  ;;  %v301_v24 = vld [vmem:[%s7552_s8 + $0x38] sm:$0xff]  ;;  %v5529_v25 = vmul.f32 -1.442695, %v7656_v14  ;;  %v7674_v26 = vadd.f32 %v7646_v8, %v334_v15  ;;  %v302_v29 = vld [vmem:[%s7552_s8 + $0x40] sm:$0xff]  ;;  %p7205_p1 = scmp.ne.s32.totalorder %s9093_s11, %s7204_s9 }
  0x93   : > { %643 = vst.msk [vmem:[#allocation2 + $0x70] sm:$0xff] %vm628_vm0, %v9191_v0  ;;  %644 = vst.msk [vmem:[#allocation2 + $0x78] sm:$0xff] %vm628_vm0, %v9191_v0  ;;  %v1373_v4 = vld [vmem:[#allocation2 + $0x1] sm:$0xff]  ;;  %v7677_v27 = vadd.f32 %v7646_v8, %v335_v16  ;;  %v340_v28 = vmul.f32 %v7641_v6, %v301_v24  ;;  %v7682_v30 = vadd.f32 %v7646_v8, %v336_v20  ;;  %v303_v34 = vld [vmem:[%s7552_s8 + $0x48] sm:$0xff]  ;;  %s7321_s10 = smov [#allocation11]  }
  0x94   : > { %645 = vst.msk [vmem:[#allocation2 + $0x80] sm:$0xff] %vm628_vm0, %v9191_v0  ;;  %646 = vst.msk [vmem:[#allocation2 + $0x88] sm:$0xff] %vm628_vm0, %v9191_v0  ;;  %v1374_v5 = vld [vmem:[#allocation2 + $0x9] sm:$0xff]  ;;  %6166 = vmatprep.mubr.msk.f32.mxu1 %vm628_vm0, %v1373_v4  ;;  %v7685_v31 = vadd.f32 %v7646_v8, %v337_v21  ;;  %v7688_v32 = vadd.f32 %v7646_v8, %v338_v22  ;;  %v7691_v33 = vadd.f32 %v7646_v8, %v339_v23  ;;  %v304_v38 = vld [vmem:[%s7552_s8 + $0x50] sm:$0xff]  ;;  %p7206_p4 = pnand %p7205_p1, %p7498_p6  ;;  %s7208_s12 = sshll.u32 %s7321_s10, 4  ;;  %s7209_s12 = int_to_ptr.vmem [resolvable:$false] %s7208_s12 }
  0x95   : > { %647 = vst.msk [vmem:[#allocation2 + $0x90] sm:$0xff] %vm628_vm0, %v9191_v0  ;;  %648 = vst.msk [vmem:[#allocation2 + $0x98] sm:$0xff] %vm628_vm0, %v9191_v0  ;;  %6167 = vmatmul.mubr.msk.f32.vlgmr.msra.gmra.mrb[0].mxu1 %vm628_vm0, %v1374_v5  ;;  %6961 = vpow2.f32 %v5529_v25  ;;  %v5530_v35 = vmul.f32 -1.442695, %v7674_v26  ;;  %v5531_v36 = vmul.f32 -1.442695, %v7677_v27  ;;  %v7697_v37 = vadd.f32 %v7646_v8, %v340_v28  ;;  %p7211_p3 = scmp.lt.s32.totalorder %s9093_s11, %s7209_s12 }
  0x96   : > { %649 = vst.msk [vmem:[#allocation2 + $0xa0] sm:$0xff] %vm628_vm0, %v9191_v0  ;;  %650 = vst.msk [vmem:[#allocation2 + $0xa8] sm:$0xff] %vm628_vm0, %v9191_v0  ;;  %6215 = vmatpush3.msk.msra.mxu1 %vm1503_vm1, %v1372_v9  ;;  %v305_v39 = vld [vmem:[%s7552_s8 + $0x58] sm:$0xff]  ;;  %v5532_v40 = vmul.f32 -1.442695, %v7682_v30  ;;  %v341_v42 = vmul.f32 %v7641_v6, %v302_v29  ;;  %v306_v43 = vld [vmem:[%s7552_s8 + $0x60] sm:$0xff]  ;;  %v342_v46 = vmul.f32 %v7641_v6, %v303_v34  ;;  %p7207_p8 = pneg %p7206_p4 }
  0x97   : > { %651 = vst.msk [vmem:[#allocation2 + $0xb0] sm:$0xff] %vm628_vm0, %v9191_v0  ;;  %652 = vst.msk [vmem:[#allocation2 + $0xb8] sm:$0xff] %vm628_vm0, %v9191_v0  ;;  %v5533_v41 = vmul.f32 -1.442695, %v7685_v31  ;;  %6963 = vpow2.f32 %v5530_v35  ;;  %v5534_v44 = vmul.f32 -1.442695, %v7688_v32  ;;  %v343_v48 = vmul.f32 %v7641_v6, %v304_v38 }
  0x98   : > { %653 = vst.msk [vmem:[#allocation2 + $0xc0] sm:$0xff] %vm628_vm0, %v9191_v0  ;;  %654 = vst.msk [vmem:[#allocation2 + $0xc8] sm:$0xff] %vm628_vm0, %v9191_v0  ;;  %v5535_v45 = vmul.f32 -1.442695, %v7691_v33  ;;  %6965 = vpow2.f32 %v5531_v36  ;;  %v7709_v47 = vadd.f32 %v7646_v8, %v341_v42  ;;  %v344_v49 = vmul.f32 %v7641_v6, %v305_v39  ;;  %v307_v60 = vld [vmem:[%s7552_s8 + $0x68] sm:$0xff]  ;;  %v308_v62 = vld [vmem:[%s7552_s8 + $0x70] sm:$0xff] }
  0x99   : > { %655 = vst.msk [vmem:[#allocation2 + $0xd0] sm:$0xff] %vm628_vm0, %v9191_v0  ;;  %656 = vst.msk [vmem:[#allocation2 + $0xd8] sm:$0xff] %vm628_vm0, %v9191_v0  ;;  %6967 = vpow2.f32 %v5532_v40  ;;  %v5536_v50 = vmul.f32 -1.442695, %v7697_v37  ;;  %v7715_v51 = vadd.f32 %v7646_v8, %v342_v46  ;;  %v345_v52 = vmul.f32 %v7641_v6, %v306_v43  ;;  %v7732_v61 = vld [vmem:[#allocation9 + $0x4] sm:$0x3] }
  0x9a   : > { %657 = vst.msk [vmem:[#allocation2 + $0xe0] sm:$0xff] %vm628_vm0, %v9191_v0  ;;  %658 = vst.msk [vmem:[#allocation2 + $0xe8] sm:$0xff] %vm628_vm0, %v9191_v0  ;;  %6969 = vpow2.f32 %v5533_v41  ;;  %v5537_v53 = vmul.f32 -1.442695, %v7709_v47  ;;  %v7720_v54 = vadd.f32 %v7646_v8, %v343_v48  ;;  %v7723_v55 = vadd.f32 %v7646_v8, %v344_v49  ;;  %6264 = vmatprep.subr.msk.mxu1 %vm1503_vm1, %v7732_v61  ;;  %v309_v2 = vld [vmem:[%s7552_s8 + $0x78] sm:$0xff]  ;;  %v310_v9 = vld [vmem:[%s7552_s8 + $0x80] sm:$0xff] }
  0x9b   : > { %659 = vst.msk [vmem:[#allocation2 + $0xf0] sm:$0xff] %vm628_vm0, %v9191_v0  ;;  %660 = vst.msk [vmem:[#allocation2 + $0xf8] sm:$0xff] %vm628_vm0, %v9191_v0  ;;  %6971 = vpow2.f32 %v5534_v44  ;;  %v5538_v56 = vmul.f32 -1.442695, %v7715_v51  ;;  %v7727_v57 = vadd.f32 %v7646_v8, %v345_v52  ;;  %v346_v4 = vmul.f32 %v7641_v6, %v307_v60  ;;  %v311_v17 = vld [vmem:[%s7552_s8 + $0x88] sm:$0xff]  ;;  %v312_v22 = vld [vmem:[%s7552_s8 + $0x90] sm:$0xff] }
  0x9c   : > { %661 = vst.msk [vmem:[#allocation2 + $0x100] sm:$0xff] %vm628_vm0, %v9191_v0  ;;  %662 = vst.msk [vmem:[#allocation2 + $0x108] sm:$0xff] %vm628_vm0, %v9191_v0  ;;  %6973 = vpow2.f32 %v5535_v45  ;;  %v5539_v58 = vmul.f32 -1.442695, %v7720_v54  ;;  %v5540_v59 = vmul.f32 -1.442695, %v7723_v55  ;;  %v347_v7 = vmul.f32 %v7641_v6, %v308_v62 }
  0x9d   : > { %663 = vst.msk [vmem:[#allocation2 + $0x110] sm:$0xff] %vm628_vm0, %v9191_v0  ;;  %664 = vst.msk [vmem:[#allocation2 + $0x118] sm:$0xff] %vm628_vm0, %v9191_v0  ;;  %6975 = vpow2.f32 %v5536_v50  ;;  %v5541_v1 = vmul.f32 -1.442695, %v7727_v57  ;;  %v348_v13 = vmul.f32 %v7641_v6, %v309_v2  ;;  %v7745_v20 = vadd.f32 %v7646_v8, %v346_v4  ;;  %v313_v36 = vld [vmem:[%s7552_s8 + $0x98] sm:$0xff]  ;;  %v314_v45 = vld [vmem:[%s7552_s8 + $0xa0] sm:$0xff] }
  0x9e   : > { %6977 = vpow2.f32 %v5537_v53  ;;  %v349_v21 = vmul.f32 %v7641_v6, %v310_v9  ;;  %v7750_v25 = vadd.f32 %v7646_v8, %v347_v7  ;;  %v350_v35 = vmul.f32 %v7641_v6, %v311_v17  ;;  %v315_v52 = vld [vmem:[%s7552_s8 + $0xa8] sm:$0xff]  ;;  %v316_v60 = vld [vmem:[%s7552_s8 + $0xb0] sm:$0xff]  ;;  %s7210_s15 = scalar_lea.vmem %s7209_s12, 8192 }
  0x9f   : > { %v6962_v63 = vpop.eup %6961  ;;  %6979 = vpow2.f32 %v5538_v56  ;;  %v7753_v34 = vadd.f32 %v7646_v8, %v348_v13  ;;  %v351_v40 = vmul.f32 %v7641_v6, %v312_v22  ;;  %v5542_v43 = vmul.f32 -1.442695, %v7745_v20  ;;  %v319_v22 = vld [vmem:[%s7552_s8 + $0xc8] sm:$0xff]  ;;  %p7212_p7 = scmp.lt.s32.totalorder %s7210_s15, %s7204_s9 }
  0xa0   : > { %v500_v3 = vadd.f32 1.0, %v6962_v63  ;;  %6981 = vpow2.f32 %v5539_v58  ;;  %v7760_v44 = vadd.f32 %v7646_v8, %v349_v21  ;;  %v5543_v49 = vmul.f32 -1.442695, %v7750_v25 }
  0xa1   : > { %v6964_v5 = vpop.eup %6963  ;;  %6983 = vpow2.f32 %v5540_v59  ;;  %v352_v50 = vmul.f32 %v7641_v6, %v313_v36  ;;  %v5544_v58 = vmul.f32 -1.442695, %v7753_v34  ;;  %v7768_v59 = vadd.f32 %v7646_v8, %v350_v35  ;;  %p7213_p10 = por %p7212_p7, %p7211_p3 }
  0xa2   : > { %v6966_v11 = vpop.eup %6965  ;;  %6985 = vrcp.f32 %v500_v3  ;;  %v501_v12 = vadd.f32 1.0, %v6964_v5  ;;  %v353_v2 = vmul.f32 %v7641_v6, %v314_v45  ;;  %v317_v3 = vld [vmem:[%s7552_s8 + $0xb8] sm:$0xff]  ;;  %v5545_v7 = vmul.f32 -1.442695, %v7760_v44 }
  0xa3   : > { %v6968_v15 = vpop.eup %6967  ;;  %v502_v16 = vadd.f32 1.0, %v6966_v11  ;;  %6987 = vpow2.f32 %v5541_v1  ;;  %v7772_v1 = vadd.f32 %v7646_v8, %v351_v40  ;;  %v354_v9 = vmul.f32 %v7641_v6, %v315_v52  ;;  %v318_v11 = vld [vmem:[%s7552_s8 + $0xc0] sm:$0xff]  ;;  %p7214_p13 = pnand %p7213_p10, %p7207_p8 }
  0xa4   : > { %v6970_v18 = vpop.eup %6969  ;;  %6989 = vrcp.f32 %v501_v12  ;;  %v503_v19 = vadd.f32 1.0, %v6968_v15  ;;  %v7781_v15 = vadd.f32 %v7646_v8, %v352_v50  ;;  %v356_v21 = vmul.f32 %v7641_v6, %v317_v3 }
  0xa5   : > { %v6972_v23 = vpop.eup %6971  ;;  %6991 = vrcp.f32 %v502_v16  ;;  %v504_v24 = vadd.f32 1.0, %v6970_v18  ;;  %v355_v16 = vmul.f32 %v7641_v6, %v316_v60  ;;  %v5547_v36 = vmul.f32 -1.442695, %v7772_v1 }
  0xa6   : > { %v6974_v28 = vpop.eup %6973  ;;  %6993 = vrcp.f32 %v503_v19  ;;  %v505_v29 = vadd.f32 1.0, %v6972_v23  ;;  %v5546_v19 = vmul.f32 -1.442695, %v7768_v59  ;;  %v7808_v45 = vadd.f32 %v7646_v8, %v356_v21 }
  0xa7   : > { %v6976_v38 = vpop.eup %6975  ;;  %6995 = vrcp.f32 %v504_v24  ;;  %v506_v39 = vadd.f32 1.0, %v6974_v28  ;;  %v357_v28 = vmul.f32 %v7641_v6, %v318_v11  ;;  %v7801_v40 = vadd.f32 %v7646_v8, %v355_v16 }
  0xa8   : > { %v6978_v41 = vpop.eup %6977  ;;  %6997 = vrcp.f32 %v505_v29  ;;  %v507_v42 = vadd.f32 1.0, %v6976_v38  ;;  %v7796_v38 = vadd.f32 %v7646_v8, %v354_v9 }
  0xa9   : > { %v6980_v46 = vpop.eup %6979  ;;  %6999 = vrcp.f32 %v506_v39  ;;  %v508_v48 = vadd.f32 1.0, %v6978_v41  ;;  %v358_v41 = vmul.f32 %v7641_v6, %v319_v22  ;;  %v321_v22 = vld [vmem:[%s7552_s8 + $0xd8] sm:$0xff] }
  0xaa   : > { %v6982_v53 = vpop.eup %6981  ;;  %7001 = vrcp.f32 %v507_v42  ;;  %v509_v56 = vadd.f32 1.0, %v6980_v46  ;;  %v5550_v52 = vmul.f32 -1.442695, %v7796_v38 }
  0xab   : > { %v6984_v62 = vpop.eup %6983  ;;  %7003 = vrcp.f32 %v508_v48  ;;  %v510_v63 = vadd.f32 1.0, %v6982_v53 }
  0xac   : > { %v6986_v4 = vpop.eup %6985  ;;  %7005 = vrcp.f32 %v509_v56  ;;  %v511_v5 = vadd.f32 1.0, %v6984_v62 }
  0xad   : > { %v6988_v12 = vpop.eup %6987  ;;  %v596_v13 = vmul.f32 %v6986_v4, %v7656_v14  ;;  %7007 = vrcp.f32 %v510_v63  ;;  %v7790_v14 = vadd.f32 %v7646_v8, %v353_v2  ;;  %v5552_v63 = vmul.f32 -1.442695, %v7808_v45 }
  0xae   : > { %v6990_v17 = vpop.eup %6989  ;;  %7009 = vrcp.f32 %v511_v5  ;;  %v512_v18 = vadd.f32 1.0, %v6988_v12 }
  0xaf   : > { %v6992_v23 = vpop.eup %6991  ;;  %667 = vst.msk [vmem:[#allocation2 + $0x11] sm:$0xff] %vm628_vm0, %v596_v13  ;;  %v597_v24 = vmul.f32 %v6990_v17, %v7674_v26  ;;  %7011 = vpow2.f32 %v5542_v43  ;;  %v5548_v43 = vmul.f32 -1.442695, %v7781_v15  ;;  %v5549_v48 = vmul.f32 -1.442695, %v7790_v14  ;;  %v320_v17 = vld [vmem:[%s7552_s8 + $0xd0] sm:$0xff] }
  0xb0   : > { %v6994_v29 = vpop.eup %6993  ;;  %v598_v35 = vmul.f32 %v6992_v23, %v7677_v27  ;;  %7013 = vrcp.f32 %v512_v18 }
  0xb1   : > { %v6996_v39 = vpop.eup %6995  ;;  %668 = vst.msk [vmem:[#allocation2 + $0x19] sm:$0xff] %vm628_vm0, %v597_v24  ;;  %v599_v26 = vmul.f32 %v6994_v29, %v7682_v30  ;;  %7015 = vpow2.f32 %v5543_v49  ;;  %v7814_v49 = vadd.f32 %v7646_v8, %v357_v28  ;;  %v322_v28 = vld [vmem:[%s7552_s8 + $0xe0] sm:$0xff] }
  0xb2   : > { %v6998_v42 = vpop.eup %6997  ;;  %669 = vst.msk [vmem:[#allocation2 + $0x21] sm:$0xff] %vm628_vm0, %v598_v35  ;;  %v600_v27 = vmul.f32 %v6996_v39, %v7685_v31  ;;  %7017 = vpow2.f32 %v5544_v58  ;;  %v7823_v58 = vadd.f32 %v7646_v8, %v358_v41  ;;  %v323_v39 = vld [vmem:[%s7552_s8 + $0xe8] sm:$0xff] }
  0xb3   : > { %v7000_v46 = vpop.eup %6999  ;;  %670 = vst.msk [vmem:[#allocation2 + $0x29] sm:$0xff] %vm628_vm0, %v599_v26  ;;  %v601_v30 = vmul.f32 %v6998_v42, %v7688_v32  ;;  %7019 = vpow2.f32 %v5545_v7  ;;  %v5551_v32 = vmul.f32 -1.442695, %v7801_v40  ;;  %v5553_v3 = vmul.f32 -1.442695, %v7814_v49 }
  0xb4   : > { %v7002_v50 = vpop.eup %7001  ;;  %671 = vst.msk [vmem:[#allocation2 + $0x31] sm:$0xff] %vm628_vm0, %v600_v27  ;;  %v602_v31 = vmul.f32 %v7000_v46, %v7691_v33  ;;  %7021 = vpow2.f32 %v5546_v19  ;;  %v7835_v7 = vld [vmem:[#allocation9 + $0xc] sm:$0x3]  ;;  %v5554_v12 = vmul.f32 -1.442695, %v7823_v58  ;;  %v699_v27 = vlaneseq }
  0xb5   : > { %v7004_v53 = vpop.eup %7003  ;;  %672 = vst.msk [vmem:[#allocation2 + $0x39] sm:$0xff] %vm628_vm0, %v601_v30  ;;  %v603_v56 = vmul.f32 %v7002_v50, %v7697_v37  ;;  %7023 = vpow2.f32 %v5547_v36 }
  0xb6   : > { %v7006_v60 = vpop.eup %7005  ;;  %v1375_v62 = vld [vmem:[#allocation2 + $0x11] sm:$0xff]  ;;  %673 = vst.msk [vmem:[#allocation2 + $0x41] sm:$0xff] %vm628_vm0, %v602_v31  ;;  %v604_v33 = vmul.f32 %v7004_v53, %v7709_v47  ;;  %7025 = vpow2.f32 %v5548_v43  ;;  %v360_v43 = vmul.f32 %v7641_v6, %v321_v22  ;;  %v362_v53 = vmul.f32 %v7641_v6, %v323_v39 }
  0xb7   : > { %v7008_v2 = vpop.eup %7007  ;;  %6169 = vmatprep.mubr.msk.f32.mxu1 %vm628_vm0, %v1375_v62  ;;  %6366 = vmatprep.mubr.msk.f32.mxu0 %vm628_vm0, %v1375_v62  ;;  %674 = vst.msk [vmem:[#allocation2 + $0x49] sm:$0xff] %vm628_vm0, %v603_v56  ;;  %v605_v37 = vmul.f32 %v7006_v60, %v7715_v51  ;;  %7027 = vpow2.f32 %v5549_v48  ;;  %v361_v48 = vmul.f32 %v7641_v6, %v322_v28 }
  0xb8   : > { %v7010_v4 = vpop.eup %7009  ;;  %v1376_v5 = vld [vmem:[#allocation2 + $0x19] sm:$0xff]  ;;  %675 = vst.msk [vmem:[#allocation2 + $0x51] sm:$0xff] %vm628_vm0, %v604_v33  ;;  %v606_v47 = vmul.f32 %v7008_v2, %v7720_v54  ;;  %7029 = vpow2.f32 %v5550_v52 }
  0xb9   : > { %v7012_v9 = vpop.eup %7011  ;;  %6170 = vmatmul.mubr.msk.f32.gmra.mrb[2].mxu1 %vm628_vm0, %v1376_v5  ;;  %6367 = vmatmul.mubr.msk.f32.vlgmr.msra.gmra.mrb[0].mxu0 %vm628_vm0, %v1376_v5  ;;  %v1377_v11 = vld [vmem:[#allocation2 + $0x21] sm:$0xff]  ;;  %676 = vst.msk [vmem:[#allocation2 + $0x59] sm:$0xff] %vm628_vm0, %v605_v37  ;;  %v607_v51 = vmul.f32 %v7010_v4, %v7723_v55  ;;  %7031 = vpow2.f32 %v5551_v32  ;;  %v7874_v37 = vadd.f32 %v7646_v8, %v360_v43 }
  0xba   : > { %v7014_v13 = vpop.eup %7013  ;;  %6415 = vmatpush3.msk.msra.mxu0 %vm1503_vm1, %v7648_v10  ;;  %6172 = vmatprep.mubr.msk.f32.mxu1 %vm628_vm0, %v1377_v11  ;;  %v1378_v54 = vld [vmem:[#allocation2 + $0x29] sm:$0xff]  ;;  %677 = vst.msk [vmem:[#allocation2 + $0x61] sm:$0xff] %vm628_vm0, %v606_v47  ;;  %v513_v16 = vadd.f32 1.0, %v7012_v9  ;;  %7033 = vpow2.f32 %v5552_v63  ;;  %v7871_v63 = vshrl.u32 %v699_v27, 7  ;;  %v7877_v5 = vadd.f32 %v7646_v8, %v361_v48 }
  0xbb   : > { %v7016_v18 = vpop.eup %7015  ;;  %6369 = vmatprep.mubr.msk.f32.mxu0 %vm628_vm0, %v1377_v11  ;;  %v1379_v55 = vld [vmem:[#allocation2 + $0x31] sm:$0xff]  ;;  %678 = vst.msk [vmem:[#allocation2 + $0x69] sm:$0xff] %vm628_vm0, %v607_v51  ;;  %v608_v19 = vmul.f32 %v7014_v13, %v7727_v57  ;;  %6464 = vmatprep.subr.msk.mxu0 %vm1503_vm1, %v7835_v7  ;;  %7035 = vpow2.f32 %v5553_v3  ;;  %v359_v57 = vmul.f32 %v7641_v6, %v320_v17 }
  0xbc   : > { %v7018_v10 = vpop.eup %7017  ;;  %7037 = vrcp.f32 %v513_v16  ;;  %v514_v21 = vadd.f32 1.0, %v7016_v18  ;;  %v1380_v35 = vld [vmem:[#allocation2 + $0x39] sm:$0xff]  ;;  %v7883_v51 = vadd.f32 %v7646_v8, %v362_v53  ;;  %v5557_v22 = vmul.f32 -1.442695, %v7877_v5 }
  0xbd   : > { %v7020_v23 = vpop.eup %7019  ;;  %6173 = vmatmul.mubr.msk.f32.gmra.mrb[4].mxu1 %vm628_vm0, %v1378_v54  ;;  %6370 = vmatmul.mubr.msk.f32.gmra.mrb[2].mxu0 %vm628_vm0, %v1378_v54  ;;  %679 = vst.msk [vmem:[#allocation2 + $0x71] sm:$0xff] %vm628_vm0, %v608_v19  ;;  %v515_v24 = vadd.f32 1.0, %v7018_v10  ;;  %7039 = vpow2.f32 %v5554_v12  ;;  %v1381_v41 = vld [vmem:[#allocation2 + $0x41] sm:$0xff]  ;;  %v7866_v52 = vadd.f32 %v7646_v8, %v359_v57  ;;  %v5556_v19 = vmul.f32 -1.442695, %v7874_v37 }
  0xbe   : > { %v7022_v29 = vpop.eup %7021  ;;  %6175 = vmatprep.mubr.msk.f32.mxu1 %vm628_vm0, %v1379_v55  ;;  %6372 = vmatprep.mubr.msk.f32.mxu0 %vm628_vm0, %v1379_v55  ;;  %7041 = vrcp.f32 %v514_v21  ;;  %v516_v36 = vadd.f32 1.0, %v7020_v23  ;;  %v1382_v32 = vld [vmem:[#allocation2 + $0x49] sm:$0xff]  ;;  %v701_v55 = vadd.s32 8, %v7871_v63 }
  0xbf   : > { %v7024_v26 = vpop.eup %7023  ;;  %7043 = vrcp.f32 %v515_v24  ;;  %v517_v42 = vadd.f32 1.0, %v7022_v29  ;;  %v1383_v33 = vld [vmem:[#allocation2 + $0x51] sm:$0xff]  ;;  %v5555_v11 = vmul.f32 -1.442695, %v7866_v52 }
  0xc0   : > { %v7026_v46 = vpop.eup %7025  ;;  %7045 = vrcp.f32 %v516_v36  ;;  %v518_v30 = vadd.f32 1.0, %v7024_v26  ;;  %v1384_v13 = vld [vmem:[#allocation2 + $0x59] sm:$0xff]  ;;  %v743_v26 = vand.u32 15, %v701_v55 }
  0xc1   : > { %v7028_v50 = vpop.eup %7027  ;;  %6176 = vmatmul.mubr.msk.f32.gmra.mrb[6].mxu1 %vm628_vm0, %v1380_v35  ;;  %6373 = vmatmul.mubr.msk.f32.gmra.mrb[4].mxu0 %vm628_vm0, %v1380_v35  ;;  %7047 = vrcp.f32 %v517_v42  ;;  %v519_v31 = vadd.f32 1.0, %v7026_v46  ;;  %v1385_v17 = vld [vmem:[#allocation2 + $0x61] sm:$0xff] }
  0xc2   : > { %v7030_v56 = vpop.eup %7029  ;;  %6178 = vmatprep.mubr.msk.f32.mxu1 %vm628_vm0, %v1381_v41  ;;  %6375 = vmatprep.mubr.msk.f32.mxu0 %vm628_vm0, %v1381_v41  ;;  %7049 = vrcp.f32 %v518_v30  ;;  %v520_v60 = vadd.f32 1.0, %v7028_v50  ;;  %v1386_v28 = vld [vmem:[#allocation2 + $0x69] sm:$0xff]  ;;  %v7912_v46 = vadd.s32 1, %v743_v26 }
  0xc3   : > { %v7032_v62 = vpop.eup %7031  ;;  %7051 = vrcp.f32 %v519_v31  ;;  %v521_v2 = vadd.f32 1.0, %v7030_v56 }
  0xc4   : > { %v7034_v3 = vpop.eup %7033  ;;  %7053 = vrcp.f32 %v520_v60  ;;  %v522_v4 = vadd.f32 1.0, %v7032_v62  ;;  %v1387_v36 = vld [vmem:[#allocation2 + $0x71] sm:$0xff]  ;;  %v707_v62 = vadd.s32 56, %v7871_v63  ;;  %vm2153_vm2 = vcmp.lt.s32.totalorder %v7912_v46, 16 }
  0xc5   : > { %v7036_v47 = vpop.eup %7035  ;;  %6179 = vmatmul.mubr.msk.f32.gmra.mrb[8].mxu1 %vm628_vm0, %v1382_v32  ;;  %6376 = vmatmul.mubr.msk.f32.gmra.mrb[6].mxu0 %vm628_vm0, %v1382_v32  ;;  %7055 = vrcp.f32 %v521_v2  ;;  %v523_v9 = vadd.f32 1.0, %v7034_v3  ;;  %v7928_v2 = vld [vmem:[#allocation2 + $0x12] sm:$0xff] }
  0xc6   : > { %v7038_v12 = vpop.eup %7037  ;;  %6181 = vmatprep.mubr.msk.f32.mxu1 %vm628_vm0, %v1383_v33  ;;  %6378 = vmatprep.mubr.msk.f32.mxu0 %vm628_vm0, %v1383_v33  ;;  %7057 = vrcp.f32 %v522_v4  ;;  %v524_v54 = vadd.f32 1.0, %v7036_v47  ;;  %v785_v55 = vand.u32 15, %v707_v62 }
  0xc7   : > { %v7040_v16 = vpop.eup %7039  ;;  %v609_v18 = vmul.f32 %v7038_v12, %v7745_v20  ;;  %7059 = vrcp.f32 %v523_v9  ;;  %v5558_v20 = vmul.f32 -1.442695, %v7883_v51  ;;  %v324_v12 = vld [vmem:[%s7552_s8 + $0xf0] sm:$0xff] }
  0xc8   : > { %v7042_v10 = vpop.eup %7041  ;;  %7061 = vrcp.f32 %v524_v54  ;;  %v525_v21 = vadd.f32 1.0, %v7040_v16  ;;  %v709_v16 = vadd.s32 72, %v7871_v63 }
  0xc9   : > { %v7044_v23 = vpop.eup %7043  ;;  %6182 = vmatmul.mubr.msk.f32.gmra.mrb[10].mxu1 %vm628_vm0, %v1384_v13  ;;  %6379 = vmatmul.mubr.msk.f32.gmra.mrb[8].mxu0 %vm628_vm0, %v1384_v13  ;;  %680 = vst.msk [vmem:[#allocation2 + $0x79] sm:$0xff] %vm628_vm0, %v609_v18  ;;  %v610_v24 = vmul.f32 %v7042_v10, %v7750_v25  ;;  %7063 = vpow2.f32 %v5555_v11  ;;  %v703_v25 = vadd.s32 24, %v7871_v63 }
  0xca   : > { %v7046_v57 = vpop.eup %7045  ;;  %6184 = vmatprep.mubr.msk.f32.mxu1 %vm628_vm0, %v1385_v17  ;;  %6381 = vmatprep.mubr.msk.f32.mxu0 %vm628_vm0, %v1385_v17  ;;  %v611_v29 = vmul.f32 %v7044_v23, %v7753_v34  ;;  %7065 = vrcp.f32 %v525_v21 }
  0xcb   : > { %v7048_v35 = vpop.eup %7047  ;;  %681 = vst.msk [vmem:[#allocation2 + $0x81] sm:$0xff] %vm628_vm0, %v610_v24  ;;  %v612_v39 = vmul.f32 %v7046_v57, %v7760_v44  ;;  %7067 = vpow2.f32 %v5556_v19  ;;  %v757_v30 = vand.u32 15, %v703_v25  ;;  %v363_v24 = vmul.f32 %v7641_v6, %v324_v12  ;;  %v7958_v57 = vld [vmem:[#allocation2 + $0x22] sm:$0xff] }
  0xcc   : > { %v7050_v41 = vpop.eup %7049  ;;  %682 = vst.msk [vmem:[#allocation2 + $0x89] sm:$0xff] %vm628_vm0, %v611_v29  ;;  %v613_v42 = vmul.f32 %v7048_v35, %v7768_v59  ;;  %7069 = vpow2.f32 %v5557_v22  ;;  %v7960_v29 = vld [vmem:[#allocation9 + $0xe] sm:$0x3]  ;;  %v799_v35 = vand.u32 15, %v709_v16  ;;  %v702_v12 = vadd.s32 16, %v7871_v63 }
  0xcd   : > { %v7052_v27 = vpop.eup %7051  ;;  %6185 = vmatmul.mubr.msk.f32.gmra.mrb[12].mxu1 %vm628_vm0, %v1386_v28  ;;  %6382 = vmatmul.mubr.msk.f32.gmra.mrb[10].mxu0 %vm628_vm0, %v1386_v28  ;;  %683 = vst.msk [vmem:[#allocation2 + $0x91] sm:$0xff] %vm628_vm0, %v612_v39  ;;  %v614_v34 = vmul.f32 %v7050_v41, %v7772_v1  ;;  %7071 = vpow2.f32 %v5558_v20  ;;  %v705_v1 = vadd.s32 40, %v7871_v63  ;;  %v7933_v3 = vadd.s32 1, %v757_v30  ;;  %v325_v20 = vld [vmem:[%s7552_s8 + $0xf8] sm:$0xff] }
  0xce   : > { %v7054_v44 = vpop.eup %7053  ;;  %6187 = vmatprep.mubr.msk.f32.mxu1 %vm628_vm0, %v1387_v36  ;;  %6384 = vmatprep.mubr.msk.f32.mxu0 %vm628_vm0, %v1387_v36  ;;  %684 = vst.msk [vmem:[#allocation2 + $0x99] sm:$0xff] %vm628_vm0, %v613_v42  ;;  %v615_v59 = vmul.f32 %v7052_v27, %v7781_v15  ;;  %v711_v36 = vadd.s32 88, %v7871_v63  ;;  %v7966_v39 = vadd.f32 %v7646_v8, %v363_v24  ;;  %v7974_v41 = vadd.s32 1, %v785_v55 }
  0xcf   : > { %v7056_v43 = vpop.eup %7055  ;;  %685 = vst.msk [vmem:[#allocation2 + $0xa1] sm:$0xff] %vm628_vm0, %v614_v34  ;;  %v616_v48 = vmul.f32 %v7054_v44, %v7790_v14  ;;  %v771_v4 = vand.u32 15, %v705_v1  ;;  %vm2155_vm3 = vcmp.lt.s32.totalorder %v7933_v3, 16  ;;  %v364_v42 = vmul.f32 %v7641_v6, %v325_v20  ;;  %v7979_v34 = vld [vmem:[#allocation2 + $0x32] sm:$0xff] }
  0xd0   : > { %v7058_v50 = vpop.eup %7057  ;;  %v1388_v31 = vld [vmem:[#allocation2 + $0x79] sm:$0xff]  ;;  %686 = vst.msk [vmem:[#allocation2 + $0xa9] sm:$0xff] %vm628_vm0, %v615_v59  ;;  %v617_v53 = vmul.f32 %v7056_v43, %v7796_v38  ;;  %v5559_v44 = vmul.f32 -1.442695, %v7966_v39  ;;  %v7998_v30 = vadd.s32 1, %v799_v35  ;;  %vm9212_vm5 = vcmp.lt.s32.totalorder %v7974_v41, 16 }
  0xd1   : > { %v7060_v56 = vpop.eup %7059  ;;  %6188 = vmatmul.mubr.msk.f32.gmra.mrb[14].mxu1 %vm628_vm0, %v1388_v31  ;;  %6385 = vmatmul.mubr.msk.f32.gmra.mrb[12].mxu0 %vm628_vm0, %v1388_v31  ;;  %687 = vst.msk [vmem:[#allocation2 + $0xb1] sm:$0xff] %vm628_vm0, %v616_v48  ;;  %v618_v15 = vmul.f32 %v7058_v50, %v7801_v40  ;;  %v7931_v40 = vld [vmem:[#allocation2 + $0x1a] sm:$0xff]  ;;  %v7953_v22 = vadd.s32 1, %v771_v4  ;;  %v7988_v59 = vadd.f32 %v7646_v8, %v364_v42  ;;  %v713_v8 = vadd.s32 104, %v7871_v63  ;;  %v8002_v50 = vld [vmem:[#allocation2 + $0x42] sm:$0xff]  ;;  %v8005_v31 = vld [vmem:[#allocation2 + $0x4a] sm:$0xff] }
  0xd2   : > { %v7062_v32 = vpop.eup %7061  ;;  %v1389_v60 = vld [vmem:[#allocation2 + $0x81] sm:$0xff]  ;;  %688 = vst.msk [vmem:[#allocation2 + $0xb9] sm:$0xff] %vm628_vm0, %v617_v53  ;;  %v619_v14 = vmul.f32 %v7060_v56, %v7808_v45  ;;  %v3515_v18 = vsel %vm2153_vm2, %v7931_v40, 0.0  ;;  %v813_v53 = vand.u32 15, %v711_v36  ;;  %v3521_v62 = vsel %vm9212_vm5, %v8005_v31, 0.0 }
  0xd3   : > { %v7064_v33 = vpop.eup %7063  ;;  %6190 = vmatprep.mubr.msk.f32.mxu1 %vm628_vm0, %v1389_v60  ;;  %6387 = vmatprep.mubr.msk.f32.mxu0 %vm628_vm0, %v1389_v60  ;;  %v1390_v38 = vld [vmem:[#allocation2 + $0x89] sm:$0xff]  ;;  %689 = vst.msk [vmem:[#allocation2 + $0xc1] sm:$0xff] %vm628_vm0, %v618_v15  ;;  %v620_v45 = vmul.f32 %v7062_v32, %v7814_v49  ;;  %vm9222_vm4 = vcmp.lt.s32.totalorder %v7953_v22, 16  ;;  %v5560_v48 = vmul.f32 -1.442695, %v7988_v59  ;;  %v736_v32 = vand.u32 15, %v7871_v63 }
  0xd4   : > { %v7066_v47 = vpop.eup %7065  ;;  %v1391_v9 = vld [vmem:[#allocation2 + $0x91] sm:$0xff]  ;;  %690 = vst.msk [vmem:[#allocation2 + $0xc9] sm:$0xff] %vm628_vm0, %v619_v14  ;;  %v526_v11 = vadd.f32 1.0, %v7064_v33  ;;  %vm9207_vm6 = vcmp.lt.s32.totalorder %v7998_v30, 16  ;;  %v827_v33 = vand.u32 15, %v713_v8  ;;  %v1116_v36 = vld [vmem:[#allocation2] sm:$0xff] }
  0xd5   : > { %v7068_v13 = vpop.eup %7067  ;;  %6191 = vmatmul.mubr.msk.f32.gmra.mrb[16].mxu1 %vm628_vm0, %v1390_v38  ;;  %6388 = vmatmul.mubr.msk.f32.gmra.mrb[14].mxu0 %vm628_vm0, %v1390_v38  ;;  %691 = vst.msk [vmem:[#allocation2 + $0xd1] sm:$0xff] %vm628_vm0, %v620_v45  ;;  %v621_v54 = vmul.f32 %v7066_v47, %v7823_v58  ;;  %v1392_v49 = vld [vmem:[#allocation2 + $0x99] sm:$0xff]  ;;  %v7951_v58 = vld [vmem:[#allocation2 + $0x2a] sm:$0xff] }
  0xd6   : > { %v7070_v17 = vpop.eup %7069  ;;  %6193 = vmatprep.mubr.msk.f32.mxu1 %vm628_vm0, %v1391_v9  ;;  %6416 = vmatprep.mubr.msk.f32.mxu0 %vm628_vm0, %v7928_v2  ;;  %7073 = vrcp.f32 %v526_v11  ;;  %v527_v19 = vadd.f32 1.0, %v7068_v13  ;;  %v1393_v21 = vld [vmem:[#allocation2 + $0xa1] sm:$0xff]  ;;  %v3517_v25 = vsel %vm2155_vm3, %v7951_v58, 0.0  ;;  %v8018_v45 = vld [vmem:[#allocation2 + $0x52] sm:$0xff]  ;;  %v8024_v9 = vadd.s32 1, %v813_v53 }
  0xd7   : > { %v7072_v10 = vpop.eup %7071  ;;  %692 = vst.msk [vmem:[#allocation2 + $0xd9] sm:$0xff] %vm628_vm0, %v621_v54  ;;  %v528_v23 = vadd.f32 1.0, %v7070_v17  ;;  %v1394_v26 = vld [vmem:[#allocation2 + $0xa9] sm:$0xff]  ;;  %v715_v11 = vadd.s32 120, %v7871_v63  ;;  %v8033_v17 = vadd.s32 4294967295, %v736_v32  ;;  %v8064_v42 = vld [vmem:[#allocation2 + $0x7a] sm:$0xff] }
  0xd8   : > { %7075 = vrcp.f32 %v527_v19  ;;  %v529_v28 = vadd.f32 1.0, %v7072_v10  ;;  %v1395_v27 = vld [vmem:[#allocation2 + $0xb1] sm:$0xff]  ;;  %vm9195_vm7 = vcmp.lt.s32.totalorder %v8024_v9, 16 }
  0xd9   : > { %6194 = vmatmul.mubr.msk.f32.gmra.mrb[18].mxu1 %vm628_vm0, %v1392_v49  ;;  %6417 = vmatmul.mubr.msk.f32.vlgmr.msra.gmra.mrb[0].mxu0 %vm628_vm0, %v3515_v18  ;;  %7077 = vrcp.f32 %v528_v23  ;;  %v1396_v6 = vld [vmem:[#allocation2 + $0xb9] sm:$0xff]  ;;  %v8042_v49 = vadd.s32 1, %v827_v33  ;;  %v717_v18 = vadd.s32 136, %v7871_v63  ;;  %v8048_v19 = vld [vmem:[#allocation2 + $0x6a] sm:$0xff]  ;;  %v841_v10 = vand.u32 15, %v715_v11  ;;  %v8085_v33 = vld [vmem:[#allocation2 + $0x82] sm:$0xff] }
  0xda   : > { %6465 = vmatpush3.msk.msra.mxu0 %vm1503_vm1, %v7835_v7  ;;  %6196 = vmatprep.mubr.msk.f32.mxu1 %vm628_vm0, %v1393_v21  ;;  %7079 = vrcp.f32 %v529_v28  ;;  %v7982_v7 = vld [vmem:[#allocation2 + $0x3a] sm:$0xff]  ;;  %v750_v21 = vand.u32 15, %v702_v12  ;;  %v704_v23 = vadd.s32 32, %v7871_v63  ;;  %vm1180_vm8 = vcmp.ge.s32.totalorder %v8033_v17, 0 }
  0xdb   : > { %6419 = vmatprep.mubr.msk.f32.mxu0 %vm628_vm0, %v7958_v57  ;;  %6514 = vmatprep.subr.msk.mxu0 %vm1503_vm1, %v7960_v29  ;;  %7081 = vpow2.f32 %v5559_v44  ;;  %v3519_v43 = vsel %vm9222_vm4, %v7982_v7, 0.0  ;;  %v1397_v1 = vld [vmem:[#allocation2 + $0xc1] sm:$0xff]  ;;  %v1398_v14 = vld [vmem:[#allocation2 + $0xc9] sm:$0xff]  ;;  %v3525_v35 = vsel %vm9195_vm7, %v8048_v19, 0.0  ;;  %vm9192_vm9 = vcmp.lt.s32.totalorder %v8042_v49, 16  ;;  %v8396_v17 = vld [vmem:[#allocation2 + $0x98] sm:$0xff] }
  0xdc   : > { %7083 = vpow2.f32 %v5560_v48  ;;  %v1399_v4 = vld [vmem:[#allocation2 + $0xd1] sm:$0xff]  ;;  %v8068_v44 = vadd.s32 4294967295, %v750_v21  ;;  %v764_v48 = vand.u32 15, %v704_v23  ;;  %v1340_v32 = vsel %vm1180_vm8, %v1116_v36, 0.0  ;;  %v8223_v0 = vld [vmem:[#allocation2 + $0xc2] sm:$0xff] }
  0xdd   : > { %6197 = vmatmul.mubr.msk.f32.gmra.mrb[20].mxu1 %vm628_vm0, %v1394_v26  ;;  %6420 = vmatmul.mubr.msk.f32.gmra.mrb[2].mxu0 %vm628_vm0, %v3517_v25  ;;  %v855_v26 = vand.u32 15, %v717_v18  ;;  %v8062_v25 = vld [vmem:[#allocation2 + $0x72] sm:$0xff]  ;;  %v710_v23 = vadd.s32 80, %v7871_v63  ;;  %9266 = vst [vmem:[#allocation36_spill] sm:$0xff] %v8223_v0 }
  0xde   : > { %6199 = vmatprep.mubr.msk.f32.mxu1 %vm628_vm0, %v1395_v27  ;;  %6422 = vmatprep.mubr.msk.f32.mxu0 %vm628_vm0, %v7979_v34  ;;  %v8066_v27 = vadd.s32 1, %v841_v10  ;;  %vm1182_vm11 = vcmp.ge.s32.totalorder %v8068_v44, 0  ;;  %v8092_v11 = vadd.s32 4294967295, %v764_v48  ;;  %v8106_v18 = vld [vmem:[#allocation2 + $0x92] sm:$0xff] }
  0xdf   : > { %9250 = vst [vmem:[#allocation20_spill] sm:$0xff] %v8106_v18 }
  0xe0   : > { %v7074_v56 = vpop.eup %7073  ;;  %vm9189_vm10 = vcmp.lt.s32.totalorder %v8066_v27, 16  ;;  %vm1184_vm13 = vcmp.ge.s32.totalorder %v8092_v11, 0 }
  0xe1   : > { %6200 = vmatmul.mubr.msk.f32.gmra.mrb[22].mxu1 %vm628_vm0, %v1396_v6  ;;  %6423 = vmatmul.mubr.msk.f32.gmra.mrb[4].mxu0 %vm628_vm0, %v3519_v43  ;;  %v622_v15 = vmul.f32 %v7074_v56, %v7866_v52  ;;  %v8020_v52 = vld [vmem:[#allocation2 + $0x5a] sm:$0xff]  ;;  %v719_v6 = vadd.s32 152, %v7871_v63 }
  0xe2   : > { %v7076_v60 = vpop.eup %7075  ;;  %6202 = vmatprep.mubr.msk.f32.mxu1 %vm628_vm0, %v1397_v1  ;;  %6425 = vmatprep.mubr.msk.f32.mxu0 %vm628_vm0, %v8002_v50  ;;  %v706_v1 = vadd.s32 48, %v7871_v63 }
  0xe3   : > { %v7078_v38 = vpop.eup %7077  ;;  %693 = vst.msk [vmem:[#allocation2 + $0xe1] sm:$0xff] %vm628_vm0, %v622_v15  ;;  %v623_v47 = vmul.f32 %v7076_v60, %v7874_v37  ;;  %v1400_v37 = vld [vmem:[#allocation2 + $0xd9] sm:$0xff]  ;;  %v3527_v15 = vsel %vm9192_vm9, %v8064_v42, 0.0  ;;  %v1118_v60 = vld [vmem:[#allocation2 + $0x10] sm:$0xff] }
  0xe4   : > { %v7080_v13 = vpop.eup %7079  ;;  %v624_v54 = vmul.f32 %v7078_v38, %v7877_v5  ;;  %v3523_v5 = vsel %vm9207_vm6, %v8020_v52, 0.0  ;;  %v8088_v38 = vld [vmem:[#allocation2 + $0x8a] sm:$0xff]  ;;  %v778_v12 = vand.u32 15, %v706_v1 }
  0xe5   : > { %6203 = vmatmul.mubr.msk.f32.gmra.mrb[24].mxu1 %vm628_vm0, %v1398_v14  ;;  %6426 = vmatmul.mubr.msk.f32.gmra.mrb[6].mxu0 %vm628_vm0, %v3521_v62  ;;  %694 = vst.msk [vmem:[#allocation2 + $0xe9] sm:$0xff] %vm628_vm0, %v623_v47  ;;  %v625_v16 = vmul.f32 %v7080_v13, %v7883_v51  ;;  %v7082_v55 = vpop.eup %7081  ;;  %v8045_v51 = vld [vmem:[#allocation2 + $0x62] sm:$0xff]  ;;  %v8082_v14 = vadd.s32 1, %v855_v26  ;;  %v708_v62 = vadd.s32 64, %v7871_v63  ;;  %v721_v47 = vadd.s32 168, %v7871_v63 }
  0xe6   : > { %6205 = vmatprep.mubr.msk.f32.mxu1 %vm628_vm0, %v1399_v4  ;;  %6428 = vmatprep.mubr.msk.f32.mxu0 %vm628_vm0, %v8018_v45  ;;  %695 = vst.msk [vmem:[#allocation2 + $0xf1] sm:$0xff] %vm628_vm0, %v624_v54  ;;  %v530_v24 = vadd.f32 1.0, %v7082_v55  ;;  %v7084_v20 = vpop.eup %7083  ;;  %v869_v4 = vand.u32 15, %v719_v6  ;;  %v723_v13 = vadd.s32 184, %v7871_v63  ;;  %v1117_v54 = vld [vmem:[#allocation2 + $0x8] sm:$0xff]  ;;  %v8108_v55 = vld [vmem:[#allocation2 + $0x9a] sm:$0xff] }
  0xe7   : > { %696 = vst.msk [vmem:[#allocation2 + $0xf9] sm:$0xff] %vm628_vm0, %v625_v16  ;;  %v531_v43 = vadd.f32 1.0, %v7084_v20  ;;  %9249 = vst [vmem:[#allocation19_spill] sm:$0xff] %v8082_v14  ;;  %v3529_v16 = vsel %vm9189_vm10, %v8088_v38, 0.0  ;;  %vm9188_vm12 = vcmp.lt.s32.totalorder %v8082_v14, 16  ;;  %v883_v21 = vand.u32 15, %v721_v47 }
  0xe8   : > { %7085 = vrcp.f32 %v530_v24  ;;  %9251 = vst [vmem:[#allocation21_spill] sm:$0xff] %v8108_v55  ;;  %v8110_v10 = vadd.s32 1, %v869_v4  ;;  %v8115_v24 = vsel %vm1180_vm8, %v1118_v60, 0.0  ;;  %v897_v36 = vand.u32 15, %v723_v13  ;;  %v8125_v6 = vld [vmem:[#allocation9 + $0x6] sm:$0x3] }
  0xe9   : > { %6206 = vmatmul.mubr.msk.f32.gmra.mrb[26].mxu1 %vm628_vm0, %v1400_v37  ;;  %6429 = vmatmul.mubr.msk.f32.gmra.mrb[8].mxu0 %vm628_vm0, %v3523_v5  ;;  %7087 = vrcp.f32 %v531_v43  ;;  %v1342_v37 = vsel %vm1182_vm11, %v1118_v60, 0.0  ;;  %v792_v5 = vand.u32 15, %v708_v62  ;;  %9253 = vst [vmem:[#allocation23_spill] sm:$0xff] %v8115_v24  ;;  %v3531_v48 = vsel %vm9188_vm12, %v8108_v55, 0.0  ;;  %v8152_v60 = vld [vmem:[#allocation2 + $0xaa] sm:$0xff] }
  0xea   : > { %v1401_v28 = vld [vmem:[#allocation2 + $0xe1] sm:$0xff]  ;;  %6431 = vmatprep.mubr.msk.f32.mxu0 %vm628_vm0, %v8045_v51  ;;  %9252 = vst [vmem:[#allocation22_spill] sm:$0xff] %v8110_v10  ;;  %vm9190_vm14 = vcmp.lt.s32.totalorder %v8110_v10, 16  ;;  %9257 = vst [vmem:[#allocation27_spill] sm:$0xff] %v8152_v60  ;;  %v8154_v62 = vadd.s32 1, %v883_v21  ;;  %v806_v4 = vand.u32 15, %v710_v23 }
  0xeb   : > { %6208 = vmatprep.mubr.msk.f32.mxu1 %vm628_vm0, %v1401_v28  ;;  %v8117_v28 = vld [vmem:[#allocation2 + $0x20] sm:$0xff]  ;;  %v8140_v1 = vadd.s32 4294967295, %v792_v5  ;;  %v8157_v47 = vld [vmem:[#allocation2 + $0x30] sm:$0xff]  ;;  %v726_v14 = vadd.s32 208, %v7871_v63 }
  0xec   : > { %v1402_v8 = vld [vmem:[#allocation2 + $0xe9] sm:$0xff]  ;;  %v8130_v43 = vsel %vm1182_vm11, %v8117_v28, 0.0  ;;  %9258 = vst [vmem:[#allocation28_spill] sm:$0xff] %v8154_v62  ;;  %v8171_v13 = vsel %vm1184_vm13, %v8157_v47, 0.0  ;;  %v8188_v23 = vld [vmem:[#allocation2 + $0xb2] sm:$0xff]  ;;  %vm9194_vm10 = vcmp.lt.s32.totalorder %v8154_v62, 16 }
  0xed   : > { %6209 = vmatmul.mubr.msk.f32.gmra.mrb[28].mxu1 %vm628_vm0, %v1402_v8  ;;  %6432 = vmatmul.mubr.msk.f32.gmra.mrb[10].mxu0 %vm628_vm0, %v3525_v35  ;;  %v1403_v53 = vld [vmem:[#allocation2 + $0xf1] sm:$0xff]  ;;  %v8120_v35 = vadd.s32 4294967295, %v778_v12  ;;  %9254 = vst [vmem:[#allocation24_spill] sm:$0xff] %v8130_v43  ;;  %v8166_v12 = vadd.s32 1, %v897_v36  ;;  %9260 = vst [vmem:[#allocation30_spill] sm:$0xff] %v8171_v13  ;;  %vm1188_vm12 = vcmp.ge.s32.totalorder %v8140_v1, 0 }
  0xee   : > { %6211 = vmatprep.mubr.msk.f32.mxu1 %vm628_vm0, %v1403_v53  ;;  %6434 = vmatprep.mubr.msk.f32.mxu0 %vm628_vm0, %v8062_v25  ;;  %v1404_v56 = vld [vmem:[#allocation2 + $0xf9] sm:$0xff]  ;;  %v712_v53 = vadd.s32 96, %v7871_v63  ;;  %9261 = vst [vmem:[#allocation31_spill] sm:$0xff] %v8188_v23  ;;  %v8193_v36 = vadd.s32 4294967295, %v806_v4  ;;  %v8217_v4 = vld [vmem:[#allocation2 + $0x50] sm:$0xff]  ;;  %v729_v13 = vadd.s32 232, %v7871_v63 }
  0xef   : > { %v8135_v8 = vld [vmem:[#allocation2 + $0x18] sm:$0xff]  ;;  %vm1186_vm15 = vcmp.ge.s32.totalorder %v8120_v35, 0  ;;  %9259 = vst [vmem:[#allocation29_spill] sm:$0xff] %v8166_v12  ;;  %v716_v43 = vadd.s32 128, %v7871_v63  ;;  %v8476_v35 = vld [vmem:[#allocation2 + $0xc8] sm:$0xff] }
  0xf0   : > { %9255 = vst [vmem:[#allocation25_spill] sm:$0xff] %v8135_v8  ;;  %v820_v5 = vand.u32 15, %v712_v53  ;;  %v1346_v21 = vsel %vm1186_vm15, %v8157_v47, 0.0  ;;  %vm1190_vm9 = vcmp.ge.s32.totalorder %v8193_v36, 0  ;;  %v8500_v1 = vld [vmem:[#allocation2 + $0xd8] sm:$0xff] }
  0xf1   : > { %6212 = vmatmul.mubr.msk.f32.gmra.mrb[30].mxu1 %vm628_vm0, %v1404_v56  ;;  %6435 = vmatmul.mubr.msk.f32.gmra.mrb[12].mxu0 %vm628_vm0, %v3527_v15  ;;  %v1344_v15 = vsel %vm1184_vm13, %v8117_v28, 0.0 }
  0xf2   : > { %6216 = vmatprep.mubr.msk.f32.mxu1 %vm628_vm0, %v1340_v32  ;;  %6437 = vmatprep.mubr.msk.f32.mxu0 %vm628_vm0, %v8085_v33  ;;  %v7086_v20 = vpop.eup %7085  ;;  %v8149_v32 = vld [vmem:[#allocation2 + $0xa2] sm:$0xff] }
  0xf3   : > { %v626_v26 = vmul.f32 %v7086_v20, %v7966_v39  ;;  %v725_v39 = vadd.s32 200, %v7871_v63  ;;  %v7088_v56 = vpop.eup %7087  ;;  %9256 = vst [vmem:[#allocation26_spill] sm:$0xff] %v8149_v32  ;;  %v8191_v20 = vld [vmem:[#allocation2 + $0xba] sm:$0xff] }
  0xf4   : > { %9262 = vst [vmem:[#allocation32_spill] sm:$0xff] %v8191_v20 }
  0xf5   : > { %6217 = vmatmul.mubr.msk.f32.vlgmr.msra.gmra.mrb[0].mxu1 %vm628_vm0, %v1117_v54  ;;  %6438 = vmatmul.mubr.msk.f32.gmra.mrb[14].mxu0 %vm628_vm0, %v3529_v16  ;;  %697 = vst.msk [vmem:[#allocation2 + $0x101] sm:$0xff] %vm628_vm0, %v626_v26  ;;  %v3533_v54 = vsel %vm9190_vm14, %v8152_v60, 0.0  ;;  %v8181_v16 = vld [vmem:[#allocation2 + $0x40] sm:$0xff]  ;;  %v727_v26 = vadd.s32 216, %v7871_v63  ;;  %vm9204_vm14 = vcmp.lt.s32.totalorder %v8166_v12, 16  ;;  %v8291_v60 = vld [vmem:[#allocation2 + $0x70] sm:$0xff] }
  0xf6   : > { %6219 = vmatprep.mubr.msk.f32.mxu1 %vm628_vm0, %v1342_v37  ;;  %6440 = vmatprep.mubr.msk.f32.mxu0 %vm628_vm0, %v8106_v18  ;;  %v911_v37 = vand.u32 15, %v725_v39  ;;  %v1348_v39 = vsel %vm1188_vm12, %v8181_v16, 0.0  ;;  %v8206_v53 = vsel %vm1186_vm15, %v8181_v16, 0.0  ;;  %v3936_v18 = vsel %vm1180_vm8, %v8117_v28, 0.0 }
  0xf7   : > { %6265 = vmatpush3.msk.msra.mxu1 %vm1503_vm1, %v7732_v61  ;;  %v627_v61 = vmul.f32 %v7088_v56, %v7988_v59  ;;  %v8176_v59 = vld [vmem:[#allocation2 + $0x28] sm:$0xff]  ;;  %9263 = vst [vmem:[#allocation33_spill] sm:$0xff] %v8206_v53  ;;  %v8211_v56 = vld [vmem:[#allocation2 + $0x38] sm:$0xff]  ;;  %v925_v53 = vand.u32 15, %v727_v26 }
  0xf8   : > { %6314 = vmatprep.subr.msk.mxu1 %vm1503_vm1, %v8125_v6  ;;  %9264 = vst [vmem:[#allocation34_spill] sm:$0xff] %v8211_v56 }
  0xf9   : > { %6220 = vmatmul.mubr.msk.f32.gmra.mrb[2].mxu1 %vm628_vm0, %v8135_v8  ;;  %6441 = vmatmul.mubr.msk.f32.gmra.mrb[16].mxu0 %vm628_vm0, %v3531_v48  ;;  %698 = vst.msk [vmem:[#allocation2 + $0x109] sm:$0xff] %vm628_vm0, %v627_v61  ;;  %v714_v48 = vadd.s32 112, %v7871_v63  ;;  %v8219_v61 = vadd.s32 1, %v911_v37  ;;  %v8236_v37 = vsel %vm1188_vm12, %v8217_v4, 0.0  ;;  %v8257_v24 = vadd.s32 1, %v925_v53  ;;  %v8282_v53 = vld [vmem:[#allocation2 + $0xe2] sm:$0xff] }
  0xfa   : > { %6222 = vmatprep.mubr.msk.f32.mxu1 %vm628_vm0, %v1344_v15  ;;  %6443 = vmatprep.mubr.msk.f32.mxu0 %vm628_vm0, %v8149_v32  ;;  %v3535_v15 = vsel %vm9194_vm10, %v8191_v20, 0.0  ;;  %9268 = vst [vmem:[#allocation38_spill] sm:$0xff] %v8236_v37  ;;  %v8255_v37 = vld [vmem:[#allocation2 + $0xda] sm:$0xff]  ;;  %v848_v20 = vand.u32 15, %v716_v43  ;;  %9273 = vst [vmem:[#allocation43_spill] sm:$0xff] %v8282_v53 }
  0xfb   : > { %9265 = vst [vmem:[#allocation35_spill] sm:$0xff] %v8219_v61  ;;  %v834_v8 = vand.u32 15, %v714_v48  ;;  %v1350_v48 = vsel %vm1190_vm9, %v8217_v4, 0.0  ;;  %vm9211_vm10 = vcmp.lt.s32.totalorder %v8219_v61, 16  ;;  %9270 = vst [vmem:[#allocation40_spill] sm:$0xff] %v8255_v37  ;;  %v8274_v43 = vld [vmem:[#allocation2 + $0x58] sm:$0xff] }
  0xfc   : > { %9271 = vst [vmem:[#allocation41_spill] sm:$0xff] %v8257_v24  ;;  %v720_v61 = vadd.s32 160, %v7871_v63 }
  0xfd   : > { %6223 = vmatmul.mubr.msk.f32.gmra.mrb[4].mxu1 %vm628_vm0, %v8176_v59  ;;  %6444 = vmatmul.mubr.msk.f32.gmra.mrb[18].mxu0 %vm628_vm0, %v3533_v54  ;;  %v8221_v54 = vadd.s32 4294967295, %v820_v5  ;;  %v8241_v5 = vld [vmem:[#allocation2 + $0x48] sm:$0xff]  ;;  %v8260_v12 = vadd.s32 4294967295, %v834_v8  ;;  %v3539_v8 = vsel %vm9211_vm10, %v8255_v37, 0.0 }
  0xfe   : > { %6225 = vmatprep.mubr.msk.f32.mxu1 %vm628_vm0, %v1346_v21  ;;  %6446 = vmatprep.mubr.msk.f32.mxu0 %vm628_vm0, %v8188_v23  ;;  %v8225_v21 = vld [vmem:[#allocation2 + $0xca] sm:$0xff]  ;;  %v718_v23 = vadd.s32 144, %v7871_v63 }
  0xff   : > { %9267 = vst [vmem:[#allocation37_spill] sm:$0xff] %v8225_v21  ;;  %v3537_v26 = vsel %vm9204_vm14, %v8225_v21, 0.0  ;;  %vm1192_vm7 = vcmp.ge.s32.totalorder %v8221_v54, 0  ;;  %v731_v21 = vadd.s32 248, %v7871_v63  ;;  %vm9218_vm14 = vcmp.lt.s32.totalorder %v8257_v24, 16 }
 0x100   : > { %vm1194_vm6 = vcmp.ge.s32.totalorder %v8260_v12, 0  ;;  %v862_v37 = vand.u32 15, %v718_v23  ;;  %v876_v24 = vand.u32 15, %v720_v61  ;;  %v8339_v61 = vld [vmem:[#allocation2 + $0x78] sm:$0xff]  ;;  %v8347_v55 = vld [vmem:[#allocation2 + $0x102] sm:$0xff]  ;;  %v2283_v12 = vsel %vm2155_vm3, %v7931_v40, 0.0 }
 0x101   : > { %6226 = vmatmul.mubr.msk.f32.gmra.mrb[6].mxu1 %vm628_vm0, %v8211_v56  ;;  %6447 = vmatmul.mubr.msk.f32.gmra.mrb[20].mxu0 %vm628_vm0, %v3535_v15  ;;  %v8250_v15 = vld [vmem:[#allocation2 + $0x60] sm:$0xff]  ;;  %9281 = vst [vmem:[#allocation50_spill] sm:$0xff] %v8347_v55 }
 0x102   : > { %6228 = vmatprep.mubr.msk.f32.mxu1 %vm628_vm0, %v1348_v39  ;;  %6449 = vmatprep.mubr.msk.f32.mxu0 %vm628_vm0, %v8223_v0  ;;  %v8253_v39 = vld [vmem:[#allocation2 + $0xd2] sm:$0xff]  ;;  %v939_v0 = vand.u32 15, %v729_v13  ;;  %v8269_v62 = vsel %vm1190_vm9, %v8250_v15, 0.0  ;;  %v1352_v13 = vsel %vm1192_vm7, %v8250_v15, 0.0  ;;  %v8324_v32 = vadd.s32 4294967295, %v862_v37 }
 0x103   : > { %9269 = vst [vmem:[#allocation39_spill] sm:$0xff] %v8253_v39  ;;  %9272 = vst [vmem:[#allocation42_spill] sm:$0xff] %v8269_v62  ;;  %v8289_v62 = vadd.s32 4294967295, %v848_v20  ;;  %v8306_v20 = vld [vmem:[#allocation2 + $0x68] sm:$0xff] }
 0x105   : > { %6229 = vmatmul.mubr.msk.f32.gmra.mrb[8].mxu1 %vm628_vm0, %v8241_v5  ;;  %6450 = vmatmul.mubr.msk.f32.gmra.mrb[22].mxu0 %vm628_vm0, %v3537_v26  ;;  %v8285_v26 = vld [vmem:[#allocation2 + $0xea] sm:$0xff]  ;;  %vm1196_vm5 = vcmp.ge.s32.totalorder %v8289_v62, 0 }
 0x106   : > { %6231 = vmatprep.mubr.msk.f32.mxu1 %vm628_vm0, %v1350_v48  ;;  %6452 = vmatprep.mubr.msk.f32.mxu0 %vm628_vm0, %v8253_v39  ;;  %9274 = vst [vmem:[#allocation44_spill] sm:$0xff] %v8285_v26  ;;  %v8287_v48 = vadd.s32 1, %v939_v0  ;;  %v953_v39 = vand.u32 15, %v731_v21  ;;  %v8301_v0 = vsel %vm1192_vm7, %v8291_v60, 0.0  ;;  %v3541_v23 = vsel %vm9218_vm14, %v8285_v26, 0.0 }
 0x107   : > { %9276 = vst [vmem:[#allocation46_spill] sm:$0xff] %v8301_v0  ;;  %v1354_v21 = vsel %vm1194_vm6, %v8291_v60, 0.0  ;;  %v8317_v0 = vld [vmem:[#allocation2 + $0xfa] sm:$0xff]  ;;  %v722_v26 = vadd.s32 176, %v7871_v63  ;;  %vm665_vm14 = vcmask 9216  }
 0x108   : > { %9275 = vst [vmem:[#allocation45_spill] sm:$0xff] %v8287_v48  ;;  %vm9229_vm10 = vcmp.lt.s32.totalorder %v8287_v48, 16  ;;  %9278 = vst [vmem:[#allocation48_spill] sm:$0xff] %v8317_v0  ;;  %v724_v48 = vadd.s32 192, %v7871_v63 }
 0x109   : > { %6232 = vmatmul.mubr.msk.f32.gmra.mrb[10].mxu1 %vm628_vm0, %v8274_v43  ;;  %6453 = vmatmul.mubr.msk.f32.gmra.mrb[24].mxu0 %vm628_vm0, %v3539_v8  ;;  %v8314_v8 = vld [vmem:[#allocation2 + $0xf2] sm:$0xff]  ;;  %v3543_v37 = vsel %vm9229_vm10, %v8317_v0, 0.0 }
 0x10a   : > { %6234 = vmatprep.mubr.msk.f32.mxu1 %vm628_vm0, %v1352_v13  ;;  %6455 = vmatprep.mubr.msk.f32.mxu0 %vm628_vm0, %v8282_v53  ;;  %9277 = vst [vmem:[#allocation47_spill] sm:$0xff] %v8314_v8  ;;  %v8320_v13 = vadd.s32 1, %v953_v39  ;;  %v8322_v53 = vld [vmem:[#allocation2 + $0x80] sm:$0xff]  ;;  %v9280_v39 = vmov 0.0  }
 0x10b   : > { %v8333_v10 = vsel %vm1194_vm6, %v8322_v53, 0.0  ;;  %666 = vst.msk [vmem:[#allocation2 + $0x120] sm:$0x3] %vm665_vm14, %v9280_v39  ;;  %v8350_v39 = vld [vmem:[#allocation2 + $0x10a] sm:$0xff]  ;;  %vm1198_vm14 = vcmp.ge.s32.totalorder %v8324_v32, 0  ;;  %v3948_v36 = vsel %vm1192_vm7, %v8322_v53, 0.0 }
 0x10c   : > { %9279 = vst [vmem:[#allocation49_spill] sm:$0xff] %v8333_v10  ;;  %vm2183_vm4 = vcmp.lt.s32.totalorder %v8320_v13, 16  ;;  %9282 = vst [vmem:[#allocation51_spill] sm:$0xff] %v8350_v39  ;;  %v8355_v10 = vadd.s32 4294967295, %v876_v24  ;;  %v8369_v24 = vld [vmem:[#allocation2 + $0x88] sm:$0xff]  ;;  %vm9291_vm7 = vcmp.lt.s32.totalorder %v7998_v30, 16 }
 0x10d   : > { %6235 = vmatmul.mubr.msk.f32.gmra.mrb[12].mxu1 %vm628_vm0, %v8306_v20  ;;  %6456 = vmatmul.mubr.msk.f32.gmra.mrb[26].mxu0 %vm628_vm0, %v3541_v23  ;;  %v1356_v23 = vsel %vm1196_vm5, %v8322_v53, 0.0  ;;  %v2057_v53 = vld [vmem:[#allocation2 + $0xa] sm:$0xff] }
 0x10e   : > { %6237 = vmatprep.mubr.msk.f32.mxu1 %vm628_vm0, %v1354_v21  ;;  %6458 = vmatprep.mubr.msk.f32.mxu0 %vm628_vm0, %v8314_v8  ;;  %v8352_v21 = vld [vmem:[#allocation2 + $0x90] sm:$0xff]  ;;  %v890_v8 = vand.u32 15, %v722_v26  ;;  %v3545_v26 = vsel %vm2183_vm4, %v8350_v39, 0.0  ;;  %vm1200_vm10 = vcmp.ge.s32.totalorder %v8355_v10, 0 }
 0x10f   : > { %v8364_v0 = vsel %vm1196_vm5, %v8352_v21, 0.0  ;;  %v3950_v54 = vsel %vm1194_vm6, %v8352_v21, 0.0  ;;  %vm9290_vm6 = vcmp.lt.s32.totalorder %v7974_v41, 16  ;;  %v3934_v10 = vld [vmem:[#allocation2 + $0x110] sm:$0xff] }
 0x110   : > { %9283 = vst [vmem:[#allocation52_spill] sm:$0xff] %v8364_v0  ;;  %v8380_v0 = vld [vmem:[#allocation2 + $0xa0] sm:$0xff] }
 0x111   : > { %6238 = vmatmul.mubr.msk.f32.gmra.mrb[14].mxu1 %vm628_vm0, %v8339_v61  ;;  %6459 = vmatmul.mubr.msk.f32.gmra.mrb[28].mxu0 %vm628_vm0, %v3543_v37  ;;  %v1358_v37 = vsel %vm1198_vm14, %v8352_v21, 0.0  ;;  %v8392_v39 = vsel %vm1198_vm14, %v8380_v0, 0.0  ;;  %v1360_v28 = vsel %vm1200_vm10, %v8380_v0, 0.0  ;;  %v9297_v21 = vld [vmem:[#allocation20_spill] sm:$0xff] }
 0x112   : > { %6240 = vmatprep.mubr.msk.f32.mxu1 %vm628_vm0, %v1356_v23  ;;  %6461 = vmatprep.mubr.msk.f32.mxu0 %vm628_vm0, %v8347_v55  ;;  %v8383_v23 = vadd.s32 4294967295, %v890_v8  ;;  %v904_v55 = vand.u32 15, %v724_v48  ;;  %9284 = vst [vmem:[#allocation53_spill] sm:$0xff] %v8392_v39  ;;  %v3938_v48 = vsel %vm1182_vm11, %v8157_v47, 0.0  ;;  %v8404_v8 = vld [vmem:[#allocation2 + $0xb0] sm:$0xff]  ;;  %v918_v39 = vand.u32 15, %v726_v14 }
 0x113   : > { %v8419_v44 = vsel %vm1200_vm10, %v8404_v8, 0.0  ;;  %v8424_v14 = vld [vmem:[#allocation2 + $0xa8] sm:$0xff]  ;;  %v3940_v47 = vsel %vm1184_vm13, %v8181_v16, 0.0  ;;  %v8452_v16 = vld [vmem:[#allocation2 + $0xb8] sm:$0xff]  ;;  %v3954_v62 = vsel %vm1198_vm14, %v8404_v8, 0.0  ;;  %vm9294_vm14 = vcmp.lt.s32.totalorder %v8066_v27, 16 }
 0x114   : > { %vm1202_vm8 = vcmp.ge.s32.totalorder %v8383_v23, 0  ;;  %9285 = vst [vmem:[#allocation54_spill] sm:$0xff] %v8419_v44  ;;  %v8435_v44 = vld [vmem:[#allocation2 + $0xc0] sm:$0xff]  ;;  %v9298_v23 = vld [vmem:[#allocation21_spill] sm:$0xff] }
 0x115   : > { %6241 = vmatmul.mubr.msk.f32.gmra.mrb[16].mxu1 %vm628_vm0, %v8369_v24  ;;  %6462 = vmatmul.mubr.msk.f32.gmra.mrb[30].mxu0 %vm628_vm0, %v3545_v26  ;;  %v8407_v26 = vadd.s32 4294967295, %v904_v55  ;;  %v1362_v55 = vsel %vm1202_vm8, %v8404_v8, 0.0  ;;  %v8448_v11 = vsel %vm1202_vm8, %v8435_v44, 0.0  ;;  %v3956_v40 = vsel %vm1200_vm10, %v8435_v44, 0.0  ;;  %v9299_v8 = vld [vmem:[#allocation22_spill] sm:$0xff] }
 0x116   : > { %6243 = vmatprep.mubr.msk.f32.mxu1 %vm628_vm0, %v1358_v37  ;;  %6466 = vmatprep.mubr.msk.f32.mxu0 %vm628_vm0, %v3936_v18  ;;  %v728_v37 = vadd.s32 224, %v7871_v63  ;;  %v8410_v18 = vld [vmem:[#allocation9 + $0x10] sm:$0x3]  ;;  %9286 = vst [vmem:[#allocation55_spill] sm:$0xff] %v8448_v11  ;;  %vm9293_vm10 = vcmp.lt.s32.totalorder %v8042_v49, 16 }
 0x117   : > { %vm1204_vm11 = vcmp.ge.s32.totalorder %v8407_v26, 0  ;;  %v4327_v26 = vld [vmem:[#allocation2 + $0x29] sm:$0xff] }
 0x119   : > { %6244 = vmatmul.mubr.msk.f32.gmra.mrb[18].mxu1 %vm628_vm0, %v8396_v17  ;;  %6467 = vmatmul.mubr.msk.f32.vlgmr.msra.gmra.mrb[0].mxu0 %vm628_vm0, %v8176_v59 }
 0x11a   : > { %6515 = vmatpush3.msk.msra.mxu0 %vm1503_vm1, %v7960_v29  ;;  %6246 = vmatprep.mubr.msk.f32.mxu1 %vm628_vm0, %v1360_v28  ;;  %v8438_v29 = vadd.s32 4294967295, %v918_v39  ;;  %v932_v28 = vand.u32 15, %v728_v37  ;;  %v3942_v39 = vsel %vm1186_vm15, %v8217_v4, 0.0  ;;  %v8460_v37 = vld [vmem:[#allocation2 + $0xd0] sm:$0xff] }
 0x11b   : > { %6469 = vmatprep.mubr.msk.f32.mxu0 %vm628_vm0, %v3938_v48  ;;  %6564 = vmatprep.subr.msk.mxu0 %vm1503_vm1, %v8410_v18  ;;  %v730_v48 = vadd.s32 240, %v7871_v63  ;;  %v1364_v63 = vsel %vm1204_vm11, %v8435_v44, 0.0  ;;  %v4328_v44 = vld [vmem:[#allocation2 + $0x31] sm:$0xff] }
 0x11c   : > { %vm1206_vm13 = vcmp.ge.s32.totalorder %v8438_v29, 0  ;;  %v9302_v29 = vld [vmem:[#allocation27_spill] sm:$0xff] }
 0x11d   : > { %6247 = vmatmul.mubr.msk.f32.gmra.mrb[20].mxu1 %vm628_vm0, %v8424_v14  ;;  %6470 = vmatmul.mubr.msk.f32.gmra.mrb[2].mxu0 %vm628_vm0, %v8211_v56  ;;  %v8463_v56 = vadd.s32 4294967295, %v932_v28  ;;  %v946_v11 = vand.u32 15, %v730_v48  ;;  %v1366_v4 = vsel %vm1206_vm13, %v8460_v37, 0.0  ;;  %v8484_v28 = vld [vmem:[#allocation2 + $0xe0] sm:$0xff] }
 0x11e   : > { %6249 = vmatprep.mubr.msk.f32.mxu1 %vm628_vm0, %v1362_v55  ;;  %6472 = vmatprep.mubr.msk.f32.mxu0 %vm628_vm0, %v3940_v47  ;;  %v8472_v55 = vsel %vm1204_vm11, %v8460_v37, 0.0  ;;  %v3944_v47 = vsel %vm1188_vm12, %v8250_v15, 0.0  ;;  %v9336_v46 = vld [vmem:[#allocation55_spill] sm:$0xff] }
 0x11f   : > { %vm1208_vm15 = vcmp.ge.s32.totalorder %v8463_v56, 0  ;;  %v8487_v48 = vadd.s32 4294967295, %v946_v11  ;;  %v3946_v11 = vsel %vm1190_vm9, %v8291_v60, 0.0  ;;  %vm9292_vm9 = vcmp.lt.s32.totalorder %v8024_v9, 16  ;;  %v4326_v56 = vld [vmem:[#allocation2 + $0x21] sm:$0xff] }
 0x120   : > { %v1368_v15 = vsel %vm1208_vm15, %v8484_v28, 0.0 }
 0x121   : > { %6250 = vmatmul.mubr.msk.f32.gmra.mrb[22].mxu1 %vm628_vm0, %v8452_v16  ;;  %6473 = vmatmul.mubr.msk.f32.gmra.mrb[4].mxu0 %vm628_vm0, %v8241_v5  ;;  %vm1210_vm12 = vcmp.ge.s32.totalorder %v8487_v48, 0  ;;  %v4329_v48 = vld [vmem:[#allocation2 + $0x39] sm:$0xff] }
 0x122   : > { %6252 = vmatprep.mubr.msk.f32.mxu1 %vm628_vm0, %v1364_v63  ;;  %6475 = vmatprep.mubr.msk.f32.mxu0 %vm628_vm0, %v3942_v39  ;;  %v8496_v63 = vsel %vm1206_vm13, %v8484_v28, 0.0  ;;  %v1146_v39 = vld [vmem:[#allocation2 + $0xf0] sm:$0xff] }
 0x123   : > { %9287 = vst [vmem:[#allocation56_spill] sm:$0xff] %v8496_v63  ;;  %v1370_v60 = vsel %vm1210_vm12, %v1146_v39, 0.0  ;;  %v3932_v63 = vld [vmem:[#allocation2 + $0x100] sm:$0xff] }
 0x125   : > { %6253 = vmatmul.mubr.msk.f32.gmra.mrb[24].mxu1 %vm628_vm0, %v8476_v35  ;;  %6476 = vmatmul.mubr.msk.f32.gmra.mrb[6].mxu0 %vm628_vm0, %v8274_v43 }
 0x126   : > { %6255 = vmatprep.mubr.msk.f32.mxu1 %vm628_vm0, %v1366_v4  ;;  %6478 = vmatprep.mubr.msk.f32.mxu0 %vm628_vm0, %v3944_v47  ;;  %v8515_v4 = vsel %vm1208_vm15, %v1146_v39, 0.0  ;;  %v8519_v47 = vld [vmem:[#allocation2 + $0xe8] sm:$0xff] }
 0x127   : > { %9288 = vst [vmem:[#allocation57_spill] sm:$0xff] %v8515_v4  ;;  %v2056_v4 = vld [vmem:[#allocation2 + $0x2] sm:$0xff] }
 0x129   : > { %6256 = vmatmul.mubr.msk.f32.gmra.mrb[26].mxu1 %vm628_vm0, %v8500_v1  ;;  %6479 = vmatmul.mubr.msk.f32.gmra.mrb[8].mxu0 %vm628_vm0, %v8306_v20 }
 0x12a   : > { %6258 = vmatprep.mubr.msk.f32.mxu1 %vm628_vm0, %v1368_v15  ;;  %6481 = vmatprep.mubr.msk.f32.mxu0 %vm628_vm0, %v3946_v11  ;;  %v8532_v15 = vsel %vm1210_vm12, %v3932_v63, 0.0  ;;  %v8536_v11 = vld [vmem:[#allocation2 + $0xf8] sm:$0xff] }
 0x12d   : > { %6259 = vmatmul.mubr.msk.f32.gmra.mrb[28].mxu1 %vm628_vm0, %v8519_v47  ;;  %6482 = vmatmul.mubr.msk.f32.gmra.mrb[10].mxu0 %vm628_vm0, %v8339_v61 }
 0x12e   : > { %6261 = vmatprep.mubr.msk.f32.mxu1 %vm628_vm0, %v1370_v60  ;;  %6484 = vmatprep.mubr.msk.f32.mxu0 %vm628_vm0, %v3948_v36  ;;  %v2281_v60 = vsel %vm2153_vm2, %v2057_v53, 0.0  ;;  %v3952_v36 = vsel %vm1196_vm5, %v8380_v0, 0.0  ;;  %v8566_v0 = vld [vmem:[#allocation9 + $0x8] sm:$0x3]  ;;  %vm9289_vm5 = vcmp.lt.s32.totalorder %v7953_v22, 16  ;;  %v4331_v53 = vld [vmem:[#allocation2 + $0x49] sm:$0xff] }
 0x131   : > { %6262 = vmatmul.mubr.msk.f32.gmra.mrb[30].mxu1 %vm628_vm0, %v8536_v11  ;;  %6485 = vmatmul.mubr.msk.f32.gmra.mrb[12].mxu0 %vm628_vm0, %v8369_v24 }
 0x132   : > { %6266 = vmatprep.mubr.msk.f32.mxu1 %vm628_vm0, %v2056_v4  ;;  %6487 = vmatprep.mubr.msk.f32.mxu0 %vm628_vm0, %v3950_v54  ;;  %v9307_v4 = vld [vmem:[#allocation29_spill] sm:$0xff] }
 0x135   : > { %6267 = vmatmul.mubr.msk.f32.vlgmr.msra.gmra.mrb[0].mxu1 %vm628_vm0, %v2281_v60  ;;  %6488 = vmatmul.mubr.msk.f32.gmra.mrb[14].mxu0 %vm628_vm0, %v8396_v17  ;;  %v4332_v60 = vld [vmem:[#allocation2 + $0x51] sm:$0xff] }
 0x136   : > { %6269 = vmatprep.mubr.msk.f32.mxu1 %vm628_vm0, %v7928_v2  ;;  %6490 = vmatprep.mubr.msk.f32.mxu0 %vm628_vm0, %v3952_v36  ;;  %v2285_v2 = vsel %vm9289_vm5, %v7951_v58, 0.0  ;;  %v3958_v58 = vsel %vm1202_vm8, %v8460_v37, 0.0  ;;  %v9303_v37 = vld [vmem:[#allocation28_spill] sm:$0xff] }
 0x137   : > { %6315 = vmatpush3.msk.msra.mxu1 %vm1503_vm1, %v8125_v6  ;;  %v8637_v6 = vld [vmem:[#allocation2 + $0x108] sm:$0xff] }
 0x138   : > { %6614 = vmatprep.subr.msk.mxu1 %vm1503_vm1, %v8566_v0  ;;  %v9309_v36 = vld [vmem:[#allocation36_spill] sm:$0xff] }
 0x139   : > { %6270 = vmatmul.mubr.msk.f32.gmra.mrb[2].mxu1 %vm628_vm0, %v2283_v12  ;;  %6491 = vmatmul.mubr.msk.f32.gmra.mrb[16].mxu0 %vm628_vm0, %v8424_v14  ;;  %v9310_v12 = vld [vmem:[#allocation37_spill] sm:$0xff] }
 0x13a   : > { %6272 = vmatprep.mubr.msk.f32.mxu1 %vm628_vm0, %v7958_v57  ;;  %6493 = vmatprep.mubr.msk.f32.mxu0 %vm628_vm0, %v3954_v62  ;;  %v2287_v57 = vsel %vm9290_vm6, %v7982_v7, 0.0  ;;  %v3960_v7 = vsel %vm1204_vm11, %v8484_v28, 0.0  ;;  %vm9300_vm11 = vcmp.lt.s32.totalorder %v9299_v8, 16  ;;  %v9311_v62 = vld [vmem:[#allocation35_spill] sm:$0xff] }
 0x13d   : > { %6273 = vmatmul.mubr.msk.f32.gmra.mrb[4].mxu1 %vm628_vm0, %v2285_v2  ;;  %6494 = vmatmul.mubr.msk.f32.gmra.mrb[18].mxu0 %vm628_vm0, %v8452_v16 }
 0x13e   : > { %6275 = vmatprep.mubr.msk.f32.mxu1 %vm628_vm0, %v7979_v34  ;;  %6496 = vmatprep.mubr.msk.f32.mxu0 %vm628_vm0, %v3956_v40  ;;  %v2289_v34 = vsel %vm9291_vm7, %v8005_v31, 0.0  ;;  %v3962_v31 = vsel %vm1206_vm13, %v1146_v39, 0.0  ;;  %vm9304_vm13 = vcmp.lt.s32.totalorder %v9303_v37, 16  ;;  %v9305_v39 = vld [vmem:[#allocation31_spill] sm:$0xff]  ;;  %v4333_v40 = vld [vmem:[#allocation2 + $0x59] sm:$0xff] }
 0x13f   : > { %v2301_v28 = vsel %vm9304_vm13, %v9302_v29, 0.0  ;;  %v8718_v29 = vld [vmem:[#allocation2 + $0xa1] sm:$0xff] }
 0x141   : > { %6276 = vmatmul.mubr.msk.f32.gmra.mrb[6].mxu1 %vm628_vm0, %v2287_v57  ;;  %6497 = vmatmul.mubr.msk.f32.gmra.mrb[20].mxu0 %vm628_vm0, %v8476_v35  ;;  %v4334_v57 = vld [vmem:[#allocation2 + $0x61] sm:$0xff] }
 0x142   : > { %6278 = vmatprep.mubr.msk.f32.mxu1 %vm628_vm0, %v8002_v50  ;;  %6499 = vmatprep.mubr.msk.f32.mxu0 %vm628_vm0, %v3958_v58  ;;  %v2291_v50 = vsel %vm9292_vm9, %v8020_v52, 0.0  ;;  %v3964_v52 = vsel %vm1208_vm15, %v3932_v63, 0.0  ;;  %v4330_v63 = vld [vmem:[#allocation2 + $0x41] sm:$0xff]  ;;  %vm9308_vm15 = vcmp.lt.s32.totalorder %v9307_v4, 16 }
 0x143   : > { %v9313_v58 = vld [vmem:[#allocation39_spill] sm:$0xff] }
 0x145   : > { %6279 = vmatmul.mubr.msk.f32.gmra.mrb[8].mxu1 %vm628_vm0, %v2289_v34  ;;  %6500 = vmatmul.mubr.msk.f32.gmra.mrb[22].mxu0 %vm628_vm0, %v8500_v1  ;;  %v9314_v34 = vld [vmem:[#allocation40_spill] sm:$0xff] }
 0x146   : > { %6281 = vmatprep.mubr.msk.f32.mxu1 %vm628_vm0, %v8018_v45  ;;  %6502 = vmatprep.mubr.msk.f32.mxu0 %vm628_vm0, %v3960_v7  ;;  %v2293_v45 = vsel %vm9293_vm10, %v8048_v19, 0.0  ;;  %v3966_v19 = vsel %vm1210_vm12, %v3934_v10, 0.0  ;;  %vm9312_vm12 = vcmp.lt.s32.totalorder %v9311_v62, 16  ;;  %v9315_v7 = vld [vmem:[#allocation41_spill] sm:$0xff]  ;;  %v9318_v10 = vld [vmem:[#allocation44_spill] sm:$0xff]  ;;  %v9351_v62 = vld [vmem:[#allocation50_spill] sm:$0xff] }
 0x147   : > { %v2305_v2 = vsel %vm9312_vm12, %v9310_v12, 0.0  ;;  %vm9316_vm5 = vcmp.lt.s32.totalorder %v9315_v7, 16  ;;  %v9329_v12 = vld [vmem:[#allocation38_spill] sm:$0xff] }
 0x149   : > { %6282 = vmatmul.mubr.msk.f32.gmra.mrb[10].mxu1 %vm628_vm0, %v2291_v50  ;;  %6503 = vmatmul.mubr.msk.f32.gmra.mrb[24].mxu0 %vm628_vm0, %v8519_v47  ;;  %v2307_v50 = vsel %vm9316_vm5, %v9314_v34, 0.0  ;;  %v8790_v34 = vld [vmem:[#allocation2 + $0xf9] sm:$0xff] }
 0x14a   : > { %6284 = vmatprep.mubr.msk.f32.mxu1 %vm628_vm0, %v8045_v51  ;;  %6505 = vmatprep.mubr.msk.f32.mxu0 %vm628_vm0, %v3962_v31  ;;  %v2295_v51 = vsel %vm9294_vm14, %v8064_v42, 0.0  ;;  %v3935_v42 = vld [vmem:[#allocation2 + $0x118] sm:$0xff]  ;;  %v4335_v31 = vld [vmem:[#allocation2 + $0x69] sm:$0xff] }
 0x14d   : > { %6285 = vmatmul.mubr.msk.f32.gmra.mrb[12].mxu1 %vm628_vm0, %v2293_v45  ;;  %6506 = vmatmul.mubr.msk.f32.gmra.mrb[26].mxu0 %vm628_vm0, %v8536_v11  ;;  %v4336_v45 = vld [vmem:[#allocation2 + $0x71] sm:$0xff] }
 0x14e   : > { %6287 = vmatprep.mubr.msk.f32.mxu1 %vm628_vm0, %v8062_v25  ;;  %6508 = vmatprep.mubr.msk.f32.mxu0 %vm628_vm0, %v3964_v52  ;;  %v9295_v25 = vld [vmem:[#allocation19_spill] sm:$0xff] }
 0x14f   : > { %vm9296_vm8 = vcmp.lt.s32.totalorder %v9295_v25, 16  ;;  %v9317_v52 = vld [vmem:[#allocation43_spill] sm:$0xff] }
 0x150   : > { %v2297_v32 = vsel %vm9296_vm8, %v8088_v38, 0.0  ;;  %v9301_v38 = vld [vmem:[#allocation26_spill] sm:$0xff] }
 0x151   : > { %6288 = vmatmul.mubr.msk.f32.gmra.mrb[14].mxu1 %vm628_vm0, %v2295_v51  ;;  %6509 = vmatmul.mubr.msk.f32.gmra.mrb[28].mxu0 %vm628_vm0, %v8637_v6  ;;  %v9319_v51 = vld [vmem:[#allocation45_spill] sm:$0xff] }
 0x152   : > { %6290 = vmatprep.mubr.msk.f32.mxu1 %vm628_vm0, %v8085_v33  ;;  %6511 = vmatprep.mubr.msk.f32.mxu0 %vm628_vm0, %v3966_v19  ;;  %v2299_v33 = vsel %vm9300_vm11, %v9298_v23, 0.0  ;;  %vm9320_vm6 = vcmp.lt.s32.totalorder %v9319_v51, 16 }
 0x153   : > { %v2309_v19 = vsel %vm9320_vm6, %v9318_v10, 0.0  ;;  %v4716_v10 = vld [vmem:[#allocation2 + $0x22] sm:$0xff] }
 0x155   : > { %6291 = vmatmul.mubr.msk.f32.gmra.mrb[16].mxu1 %vm628_vm0, %v2297_v32  ;;  %6512 = vmatmul.mubr.msk.f32.gmra.mrb[30].mxu0 %vm628_vm0, %v3935_v42  ;;  %v4337_v32 = vld [vmem:[#allocation2 + $0x79] sm:$0xff]  ;;  %v4338_v42 = vld [vmem:[#allocation2 + $0x81] sm:$0xff] }
 0x156   : > { %6293 = vmatprep.mubr.msk.f32.mxu1 %vm628_vm0, %v9297_v21  ;;  %6516 = vmatprep.mubr.msk.f32.mxu0 %vm628_vm0, %v4326_v56  ;;  %v9321_v56 = vld [vmem:[#allocation47_spill] sm:$0xff]  ;;  %v9322_v21 = vld [vmem:[#allocation48_spill] sm:$0xff] }
 0x157   : > { %v2311_v23 = vsel %vm2183_vm4, %v9322_v21, 0.0 }
 0x159   : > { %6294 = vmatmul.mubr.msk.f32.gmra.mrb[18].mxu1 %vm628_vm0, %v2299_v33  ;;  %6517 = vmatmul.mubr.msk.f32.vlgmr.msra.gmra.mrb[0].mxu0 %vm628_vm0, %v4327_v26  ;;  %v4339_v33 = vld [vmem:[#allocation2 + $0x89] sm:$0xff]  ;;  %v8708_v26 = vld [vmem:[#allocation2 + $0x91] sm:$0xff] }
 0x15a   : > { %6565 = vmatpush3.msk.msra.mxu0 %vm1503_vm1, %v8410_v18  ;;  %6296 = vmatprep.mubr.msk.f32.mxu1 %vm628_vm0, %v9301_v38  ;;  %v9306_v18 = vld [vmem:[#allocation32_spill] sm:$0xff]  ;;  %v8716_v38 = vld [vmem:[#allocation2 + $0x99] sm:$0xff] }
 0x15b   : > { %6519 = vmatprep.mubr.msk.f32.mxu0 %vm628_vm0, %v4328_v44  ;;  %v2303_v54 = vsel %vm9308_vm15, %v9306_v18, 0.0  ;;  %v9323_v44 = vld [vmem:[#allocation23_spill] sm:$0xff]  ;;  %v9326_v18 = vld [vmem:[#allocation30_spill] sm:$0xff] }
 0x15d   : > { %6297 = vmatmul.mubr.msk.f32.gmra.mrb[20].mxu1 %vm628_vm0, %v2301_v28  ;;  %6520 = vmatmul.mubr.msk.f32.gmra.mrb[2].mxu0 %vm628_vm0, %v4329_v48  ;;  %v9324_v28 = vld [vmem:[#allocation25_spill] sm:$0xff]  ;;  %v9325_v48 = vld [vmem:[#allocation24_spill] sm:$0xff] }
 0x15e   : > { %6299 = vmatprep.mubr.msk.f32.mxu1 %vm628_vm0, %v9305_v39  ;;  %6522 = vmatprep.mubr.msk.f32.mxu0 %vm628_vm0, %v4330_v63  ;;  %v8728_v63 = vld [vmem:[#allocation2 + $0xa9] sm:$0xff]  ;;  %v8732_v39 = vld [vmem:[#allocation2 + $0xb1] sm:$0xff] }
 0x161   : > { %6300 = vmatmul.mubr.msk.f32.gmra.mrb[22].mxu1 %vm628_vm0, %v2303_v54  ;;  %6523 = vmatmul.mubr.msk.f32.gmra.mrb[4].mxu0 %vm628_vm0, %v4331_v53  ;;  %v8742_v54 = vld [vmem:[#allocation2 + $0xb9] sm:$0xff]  ;;  %v8744_v53 = vld [vmem:[#allocation2 + $0xc1] sm:$0xff] }
 0x162   : > { %6302 = vmatprep.mubr.msk.f32.mxu1 %vm628_vm0, %v9309_v36  ;;  %6525 = vmatprep.mubr.msk.f32.mxu0 %vm628_vm0, %v4332_v60  ;;  %v9327_v60 = vld [vmem:[#allocation34_spill] sm:$0xff]  ;;  %v8756_v36 = vld [vmem:[#allocation2 + $0xd1] sm:$0xff] }
 0x165   : > { %6303 = vmatmul.mubr.msk.f32.gmra.mrb[24].mxu1 %vm628_vm0, %v2305_v2  ;;  %6526 = vmatmul.mubr.msk.f32.gmra.mrb[6].mxu0 %vm628_vm0, %v4333_v40  ;;  %v8766_v2 = vld [vmem:[#allocation2 + $0xd9] sm:$0xff]  ;;  %v8768_v40 = vld [vmem:[#allocation2 + $0xe1] sm:$0xff] }
 0x166   : > { %6305 = vmatprep.mubr.msk.f32.mxu1 %vm628_vm0, %v9313_v58  ;;  %6528 = vmatprep.mubr.msk.f32.mxu0 %vm628_vm0, %v4334_v57  ;;  %v8778_v57 = vld [vmem:[#allocation2 + $0xe9] sm:$0xff]  ;;  %v8780_v58 = vld [vmem:[#allocation2 + $0xf1] sm:$0xff] }
 0x169   : > { %6306 = vmatmul.mubr.msk.f32.gmra.mrb[26].mxu1 %vm628_vm0, %v2307_v50  ;;  %6529 = vmatmul.mubr.msk.f32.gmra.mrb[8].mxu0 %vm628_vm0, %v4335_v31  ;;  %v8792_v50 = vld [vmem:[#allocation2 + $0x101] sm:$0xff]  ;;  %v8802_v31 = vld [vmem:[#allocation2 + $0x109] sm:$0xff] }
 0x16a   : > { %6308 = vmatprep.mubr.msk.f32.mxu1 %vm628_vm0, %v9317_v52  ;;  %6531 = vmatprep.mubr.msk.f32.mxu0 %vm628_vm0, %v4336_v45  ;;  %v4356_v45 = vld [vmem:[#allocation2 + $0x111] sm:$0xff] }
 0x16b   : > { %v9333_v52 = vld [vmem:[#allocation52_spill] sm:$0xff] }
 0x16d   : > { %6309 = vmatmul.mubr.msk.f32.gmra.mrb[28].mxu1 %vm628_vm0, %v2309_v19  ;;  %6532 = vmatmul.mubr.msk.f32.gmra.mrb[10].mxu0 %vm628_vm0, %v4337_v32  ;;  %v4717_v19 = vld [vmem:[#allocation2 + $0x2a] sm:$0xff]  ;;  %v9334_v32 = vld [vmem:[#allocation53_spill] sm:$0xff] }
 0x16e   : > { %6311 = vmatprep.mubr.msk.f32.mxu1 %vm628_vm0, %v9321_v56  ;;  %6534 = vmatprep.mubr.msk.f32.mxu0 %vm628_vm0, %v4338_v42  ;;  %v4718_v42 = vld [vmem:[#allocation2 + $0x32] sm:$0xff]  ;;  %v4719_v56 = vld [vmem:[#allocation2 + $0x3a] sm:$0xff] }
 0x171   : > { %6312 = vmatmul.mubr.msk.f32.gmra.mrb[30].mxu1 %vm628_vm0, %v2311_v23  ;;  %6535 = vmatmul.mubr.msk.f32.gmra.mrb[12].mxu0 %vm628_vm0, %v4339_v33  ;;  %v9335_v23 = vld [vmem:[#allocation54_spill] sm:$0xff]  ;;  %v4720_v33 = vld [vmem:[#allocation2 + $0x42] sm:$0xff] }
 0x172   : > { %6316 = vmatprep.mubr.msk.f32.mxu1 %vm628_vm0, %v9323_v44  ;;  %6537 = vmatprep.mubr.msk.f32.mxu0 %vm628_vm0, %v8708_v26  ;;  %v4721_v44 = vld [vmem:[#allocation2 + $0x4a] sm:$0xff] }
 0x175   : > { %6317 = vmatmul.mubr.msk.f32.vlgmr.msra.gmra.mrb[0].mxu1 %vm628_vm0, %v9324_v28  ;;  %6538 = vmatmul.mubr.msk.f32.gmra.mrb[14].mxu0 %vm628_vm0, %v8716_v38  ;;  %v4722_v28 = vld [vmem:[#allocation2 + $0x52] sm:$0xff] }
 0x176   : > { %6319 = vmatprep.mubr.msk.f32.mxu1 %vm628_vm0, %v9325_v48  ;;  %6540 = vmatprep.mubr.msk.f32.mxu0 %vm628_vm0, %v8718_v29  ;;  %v4723_v48 = vld [vmem:[#allocation2 + $0x5a] sm:$0xff] }
 0x177   : > { %6615 = vmatpush3.msk.msra.mxu1 %vm1503_vm1, %v8566_v0  ;;  %v8754_v0 = vld [vmem:[#allocation2 + $0xc9] sm:$0xff]  ;;  %vm9337_vm1 = vcmp.lt.s32.totalorder %v7953_v22, 16 }
 0x178   : > { %v9339_v22 = vld [vmem:[#allocation56_spill] sm:$0xff] }
 0x179   : > { %6320 = vmatmul.mubr.msk.f32.gmra.mrb[2].mxu1 %vm628_vm0, %v8176_v59  ;;  %6541 = vmatmul.mubr.msk.f32.gmra.mrb[16].mxu0 %vm628_vm0, %v8728_v63  ;;  %v9328_v59 = vld [vmem:[#allocation33_spill] sm:$0xff] }
 0x17a   : > { %6322 = vmatprep.mubr.msk.f32.mxu1 %vm628_vm0, %v9326_v18  ;;  %6543 = vmatprep.mubr.msk.f32.mxu0 %vm628_vm0, %v8732_v39  ;;  %v4725_v18 = vld [vmem:[#allocation2 + $0x6a] sm:$0xff] }
 0x17d   : > { %6323 = vmatmul.mubr.msk.f32.gmra.mrb[4].mxu1 %vm628_vm0, %v9327_v60  ;;  %6544 = vmatmul.mubr.msk.f32.gmra.mrb[18].mxu0 %vm628_vm0, %v8742_v54  ;;  %v4727_v60 = vld [vmem:[#allocation2 + $0x7a] sm:$0xff] }
 0x17e   : > { %6325 = vmatprep.mubr.msk.f32.mxu1 %vm628_vm0, %v9328_v59  ;;  %6546 = vmatprep.mubr.msk.f32.mxu0 %vm628_vm0, %v8744_v53  ;;  %v4728_v59 = vld [vmem:[#allocation2 + $0x82] sm:$0xff] }
 0x181   : > { %6326 = vmatmul.mubr.msk.f32.gmra.mrb[6].mxu1 %vm628_vm0, %v8241_v5  ;;  %6547 = vmatmul.mubr.msk.f32.gmra.mrb[20].mxu0 %vm628_vm0, %v8754_v0  ;;  %v9330_v5 = vld [vmem:[#allocation42_spill] sm:$0xff] }
 0x182   : > { %6328 = vmatprep.mubr.msk.f32.mxu1 %vm628_vm0, %v9329_v12  ;;  %6549 = vmatprep.mubr.msk.f32.mxu0 %vm628_vm0, %v8756_v36  ;;  %v4729_v12 = vld [vmem:[#allocation2 + $0x8a] sm:$0xff] }
 0x185   : > { %6329 = vmatmul.mubr.msk.f32.gmra.mrb[8].mxu1 %vm628_vm0, %v8274_v43  ;;  %6550 = vmatmul.mubr.msk.f32.gmra.mrb[22].mxu0 %vm628_vm0, %v8766_v2  ;;  %v9331_v43 = vld [vmem:[#allocation46_spill] sm:$0xff] }
 0x186   : > { %6331 = vmatprep.mubr.msk.f32.mxu1 %vm628_vm0, %v9330_v5  ;;  %6552 = vmatprep.mubr.msk.f32.mxu0 %vm628_vm0, %v8768_v40  ;;  %v4731_v5 = vld [vmem:[#allocation2 + $0x9a] sm:$0xff] }
 0x189   : > { %6332 = vmatmul.mubr.msk.f32.gmra.mrb[10].mxu1 %vm628_vm0, %v8306_v20  ;;  %6553 = vmatmul.mubr.msk.f32.gmra.mrb[24].mxu0 %vm628_vm0, %v8778_v57  ;;  %v9332_v20 = vld [vmem:[#allocation49_spill] sm:$0xff] }
 0x18a   : > { %6334 = vmatprep.mubr.msk.f32.mxu1 %vm628_vm0, %v9331_v43  ;;  %6555 = vmatprep.mubr.msk.f32.mxu0 %vm628_vm0, %v8780_v58 }
 0x18d   : > { %6335 = vmatmul.mubr.msk.f32.gmra.mrb[12].mxu1 %vm628_vm0, %v8339_v61  ;;  %6556 = vmatmul.mubr.msk.f32.gmra.mrb[26].mxu0 %vm628_vm0, %v8790_v34  ;;  %v4357_v61 = vld [vmem:[#allocation2 + $0x119] sm:$0xff] }
 0x18e   : > { %6337 = vmatprep.mubr.msk.f32.mxu1 %vm628_vm0, %v9332_v20  ;;  %6558 = vmatprep.mubr.msk.f32.mxu0 %vm628_vm0, %v8792_v50 }
 0x191   : > { %6338 = vmatmul.mubr.msk.f32.gmra.mrb[14].mxu1 %vm628_vm0, %v8369_v24  ;;  %6559 = vmatmul.mubr.msk.f32.gmra.mrb[28].mxu0 %vm628_vm0, %v8802_v31  ;;  %v4749_v24 = vsel %vm2153_vm2, %v4717_v19, 0.0  ;;  %vm9338_vm2 = vcmp.lt.s32.totalorder %v7974_v41, 16  ;;  %v9341_v41 = vld [vmem:[#allocation57_spill] sm:$0xff] }
 0x192   : > { %6340 = vmatprep.mubr.msk.f32.mxu1 %vm628_vm0, %v9333_v52  ;;  %6561 = vmatprep.mubr.msk.f32.mxu0 %vm628_vm0, %v4356_v45  ;;  %v4755_v3 = vsel %vm9338_vm2, %v4723_v48, 0.0 }
 0x195   : > { %6341 = vmatmul.mubr.msk.f32.gmra.mrb[16].mxu1 %vm628_vm0, %v8396_v17  ;;  %6562 = vmatmul.mubr.msk.f32.gmra.mrb[30].mxu0 %vm628_vm0, %v4357_v61  ;;  %v4751_v17 = vsel %vm2155_vm3, %v4719_v56, 0.0  ;;  %vm9340_vm3 = vmmov %vm9291_vm7 }
 0x196   : > { %6343 = vmatprep.mubr.msk.f32.mxu1 %vm628_vm0, %v9334_v32  ;;  %6566 = vmatprep.mubr.msk.f32.mxu0 %vm628_vm0, %v4716_v10  ;;  %vm9342_vm7 = vmmov %vm9292_vm9 }
 0x197   : > { %vm9343_vm9 = vmmov %vm9293_vm10 }
 0x198   : > { %v4761_v30 = vsel %vm9343_vm9, %v4729_v12, 0.0  ;;  %vm9344_vm10 = vmmov %vm9294_vm14 }
 0x199   : > { %6344 = vmatmul.mubr.msk.f32.gmra.mrb[18].mxu1 %vm628_vm0, %v8424_v14  ;;  %6567 = vmatmul.mubr.msk.f32.vlgmr.msra.gmra.mrb[0].mxu0 %vm628_vm0, %v4749_v24  ;;  %v4753_v14 = vsel %vm9337_vm1, %v4721_v44, 0.0  ;;  %v4763_v9 = vsel %vm9344_vm10, %v4731_v5, 0.0  ;;  %vm9345_vm14 = vmmov %vm9296_vm8 }
 0x19a   : > { %6346 = vmatprep.mubr.msk.f32.mxu1 %vm628_vm0, %v9335_v23  ;;  %6569 = vmatprep.mubr.msk.f32.mxu0 %vm628_vm0, %v4718_v42  ;;  %vm9346_vm8 = vmmov %vm9300_vm11 }
 0x19b   : > { %vm9347_vm11 = vmmov %vm9304_vm13 }
 0x19c   : > { %vm9348_vm13 = vmmov %vm9308_vm15 }
 0x19d   : > { %6347 = vmatmul.mubr.msk.f32.gmra.mrb[20].mxu1 %vm628_vm0, %v8452_v16  ;;  %6570 = vmatmul.mubr.msk.f32.gmra.mrb[2].mxu0 %vm628_vm0, %v4751_v17  ;;  %v4724_v16 = vld [vmem:[#allocation2 + $0x62] sm:$0xff]  ;;  %vm9349_vm15 = vmmov %vm9312_vm12 }
 0x19e   : > { %6349 = vmatprep.mubr.msk.f32.mxu1 %vm628_vm0, %v9336_v46  ;;  %6572 = vmatprep.mubr.msk.f32.mxu0 %vm628_vm0, %v4720_v33  ;;  %vm9350_vm12 = vmmov %vm9316_vm5 }
 0x19f   : > { %v4775_v4 = vsel %vm9350_vm12, %v9322_v21, 0.0  ;;  %vm9353_vm5 = vmmov %vm9320_vm6 }
 0x1a1   : > { %6350 = vmatmul.mubr.msk.f32.gmra.mrb[22].mxu1 %vm628_vm0, %v8476_v35  ;;  %6573 = vmatmul.mubr.msk.f32.gmra.mrb[4].mxu0 %vm628_vm0, %v4753_v14  ;;  %v4726_v35 = vld [vmem:[#allocation2 + $0x72] sm:$0xff] }
 0x1a2   : > { %6352 = vmatprep.mubr.msk.f32.mxu1 %vm628_vm0, %v8472_v55  ;;  %6575 = vmatprep.mubr.msk.f32.mxu0 %vm628_vm0, %v4722_v28  ;;  %v4757_v55 = vsel %vm9340_vm3, %v4725_v18, 0.0 }
 0x1a5   : > { %6353 = vmatmul.mubr.msk.f32.gmra.mrb[24].mxu1 %vm628_vm0, %v8500_v1  ;;  %6576 = vmatmul.mubr.msk.f32.gmra.mrb[6].mxu0 %vm628_vm0, %v4755_v3  ;;  %v4759_v1 = vsel %vm9342_vm7, %v4727_v60, 0.0 }
 0x1a6   : > { %6355 = vmatprep.mubr.msk.f32.mxu1 %vm628_vm0, %v9339_v22  ;;  %6578 = vmatprep.mubr.msk.f32.mxu0 %vm628_vm0, %v4724_v16 }
 0x1a9   : > { %6356 = vmatmul.mubr.msk.f32.gmra.mrb[26].mxu1 %vm628_vm0, %v8519_v47  ;;  %6579 = vmatmul.mubr.msk.f32.gmra.mrb[8].mxu0 %vm628_vm0, %v4757_v55  ;;  %v4730_v47 = vld [vmem:[#allocation2 + $0x92] sm:$0xff] }
 0x1aa   : > { %6358 = vmatprep.mubr.msk.f32.mxu1 %vm628_vm0, %v9341_v41  ;;  %6581 = vmatprep.mubr.msk.f32.mxu0 %vm628_vm0, %v4726_v35 }
 0x1ad   : > { %6359 = vmatmul.mubr.msk.f32.gmra.mrb[28].mxu1 %vm628_vm0, %v8536_v11  ;;  %6582 = vmatmul.mubr.msk.f32.gmra.mrb[10].mxu0 %vm628_vm0, %v4759_v1  ;;  %v4733_v11 = vld [vmem:[#allocation2 + $0xaa] sm:$0xff] }
 0x1ae   : > { %6361 = vmatprep.mubr.msk.f32.mxu1 %vm628_vm0, %v8532_v15  ;;  %6584 = vmatprep.mubr.msk.f32.mxu0 %vm628_vm0, %v4728_v59  ;;  %v4732_v15 = vld [vmem:[#allocation2 + $0xa2] sm:$0xff]  ;;  %v4765_v49 = vsel %vm9345_vm14, %v4733_v11, 0.0 }
 0x1b1   : > { %6362 = vmatmul.mubr.msk.f32.gmra.mrb[30].mxu1 %vm628_vm0, %v8637_v6  ;;  %6585 = vmatmul.mubr.msk.f32.gmra.mrb[12].mxu0 %vm628_vm0, %v4761_v30  ;;  %v4734_v6 = vld [vmem:[#allocation2 + $0xb2] sm:$0xff] }
 0x1b2   : > { %6390 = vmatprep.mubr.msk.f32.mxu1 %vm628_vm0, %v8708_v26  ;;  %6587 = vmatprep.mubr.msk.f32.mxu0 %vm628_vm0, %v4730_v47  ;;  %v4735_v26 = vld [vmem:[#allocation2 + $0xba] sm:$0xff] }
 0x1b3   : > { %v4767_v27 = vsel %vm9346_vm8, %v4735_v26, 0.0 }
 0x1b5   : > { %6391 = vmatmul.mubr.msk.f32.vlgmr.msra.gmra.mrb[16].mxu1 %vm628_vm0, %v8716_v38  ;;  %6588 = vmatmul.mubr.msk.f32.gmra.mrb[14].mxu0 %vm628_vm0, %v4763_v9  ;;  %v4736_v38 = vld [vmem:[#allocation2 + $0xc2] sm:$0xff] }
 0x1b6   : > { %6393 = vmatprep.mubr.msk.f32.mxu1 %vm628_vm0, %v8718_v29  ;;  %6590 = vmatprep.mubr.msk.f32.mxu0 %vm628_vm0, %v4732_v15  ;;  %v4737_v29 = vld [vmem:[#allocation2 + $0xca] sm:$0xff] }
 0x1b7   : > { %v4769_v25 = vsel %vm9347_vm11, %v4737_v29, 0.0 }
 0x1b9   : > { %6394 = vmatmul.mubr.msk.f32.gmra.mrb[18].mxu1 %vm628_vm0, %v8728_v63  ;;  %6591 = vmatmul.mubr.msk.f32.gmra.mrb[16].mxu0 %vm628_vm0, %v4765_v49  ;;  %v4738_v63 = vld [vmem:[#allocation2 + $0xd2] sm:$0xff] }
 0x1ba   : > { %6396 = vmatprep.mubr.msk.f32.mxu1 %vm628_vm0, %v8732_v39  ;;  %6593 = vmatprep.mubr.msk.f32.mxu0 %vm628_vm0, %v4734_v6  ;;  %v4739_v39 = vld [vmem:[#allocation2 + $0xda] sm:$0xff] }
 0x1bb   : > { %v4771_v8 = vsel %vm9348_vm13, %v4739_v39, 0.0 }
 0x1bd   : > { %6397 = vmatmul.mubr.msk.f32.gmra.mrb[20].mxu1 %vm628_vm0, %v8742_v54  ;;  %6594 = vmatmul.mubr.msk.f32.gmra.mrb[18].mxu0 %vm628_vm0, %v4767_v27  ;;  %v4740_v54 = vld [vmem:[#allocation2 + $0xe2] sm:$0xff] }
 0x1be   : > { %6399 = vmatprep.mubr.msk.f32.mxu1 %vm628_vm0, %v8744_v53  ;;  %6596 = vmatprep.mubr.msk.f32.mxu0 %vm628_vm0, %v4736_v38  ;;  %v4741_v53 = vld [vmem:[#allocation2 + $0xea] sm:$0xff] }
 0x1bf   : > { %v4773_v37 = vsel %vm9349_vm15, %v4741_v53, 0.0 }
 0x1c1   : > { %6400 = vmatmul.mubr.msk.f32.gmra.mrb[22].mxu1 %vm628_vm0, %v8754_v0  ;;  %6597 = vmatmul.mubr.msk.f32.gmra.mrb[20].mxu0 %vm628_vm0, %v4769_v25  ;;  %v4742_v0 = vld [vmem:[#allocation2 + $0xf2] sm:$0xff] }
 0x1c2   : > { %6402 = vmatprep.mubr.msk.f32.mxu1 %vm628_vm0, %v8756_v36  ;;  %6599 = vmatprep.mubr.msk.f32.mxu0 %vm628_vm0, %v4738_v63  ;;  %v9352_v36 = vld [vmem:[#allocation51_spill] sm:$0xff] }
 0x1c5   : > { %6403 = vmatmul.mubr.msk.f32.gmra.mrb[24].mxu1 %vm628_vm0, %v8766_v2  ;;  %6600 = vmatmul.mubr.msk.f32.gmra.mrb[22].mxu0 %vm628_vm0, %v4771_v8  ;;  %v4777_v2 = vsel %vm9353_vm5, %v9352_v36, 0.0 }
 0x1c6   : > { %6405 = vmatprep.mubr.msk.f32.mxu1 %vm628_vm0, %v8768_v40  ;;  %6602 = vmatprep.mubr.msk.f32.mxu0 %vm628_vm0, %v4740_v54  ;;  %v4746_v40 = vld [vmem:[#allocation2 + $0x112] sm:$0xff] }
 0x1c9   : > { %6406 = vmatmul.mubr.msk.f32.gmra.mrb[26].mxu1 %vm628_vm0, %v8778_v57  ;;  %6603 = vmatmul.mubr.msk.f32.gmra.mrb[24].mxu0 %vm628_vm0, %v4773_v37  ;;  %v4747_v57 = vld [vmem:[#allocation2 + $0x11a] sm:$0xff] }
 0x1ca   : > { %6408 = vmatprep.mubr.msk.f32.mxu1 %vm628_vm0, %v8780_v58  ;;  %6605 = vmatprep.mubr.msk.f32.mxu0 %vm628_vm0, %v4742_v0  ;;  %v4779_v7 = vsel %vm2183_vm4, %v4747_v57, 0.0 }
 0x1cd   : > { %6409 = vmatmul.mubr.msk.f32.gmra.mrb[28].mxu1 %vm628_vm0, %v8790_v34  ;;  %6606 = vmatmul.mubr.msk.f32.gmra.mrb[26].mxu0 %vm628_vm0, %v4775_v4 }
 0x1ce   : > { %6411 = vmatprep.mubr.msk.f32.mxu1 %vm628_vm0, %v8792_v50  ;;  %6608 = vmatprep.mubr.msk.f32.mxu0 %vm628_vm0, %v9351_v62 }
 0x1d1   : > { %6412 = vmatmul.mubr.msk.f32.gmra.mrb[30].mxu1 %vm628_vm0, %v8802_v31  ;;  %6609 = vmatmul.mubr.msk.f32.gmra.mrb[28].mxu0 %vm628_vm0, %v4777_v2 }
 0x1d2   : > { %6611 = vmatprep.mubr.msk.f32.mxu0 %vm628_vm0, %v4746_v40 }
 0x1d5   : > { %6612 = vmatmul.mubr.msk.f32.gmra.mrb[30].mxu0 %vm628_vm0, %v4779_v7  ;;  %vm5138_vm0 = vcmask 31744  }
 0x248   : > { %v6318_v21 = vpop.f32.mrb[0].mxu1 }
 0x249   : > { %v2901_v58 = vpop.f32.mrb[1].mxu1 }
 0x24c   : > { %v6321_v43 = vpop.f32.mrb[2].mxu1 }
 0x24d   : > { %v2911_v34 = vpop.f32.mrb[3].mxu1 }
 0x250   : > { %v6324_v51 = vpop.f32.mrb[4].mxu1 }
 0x251   : > { %v2921_v50 = vpop.f32.mrb[5].mxu1 }
 0x254   : > { %v6327_v20 = vpop.f32.mrb[6].mxu1 }
 0x255   : > { %v2931_v45 = vpop.f32.mrb[7].mxu1 }
 0x258   : > { %v8941_v52 = vpop.f32.mrb[8].mxu1 }
 0x259   : > { %v8943_v31 = vpop.f32.mrb[9].mxu1 }
 0x25c   : > { %v8945_v61 = vpop.f32.mrb[10].mxu1 }
 0x25d   : > { %v8947_v10 = vpop.f32.mrb[11].mxu1 }
 0x260   : > { %v8949_v13 = vpop.f32.mrb[12].mxu1 }
 0x261   : > { %v8951_v19 = vpop.f32.mrb[13].mxu1 }
 0x264   : > { %v8953_v32 = vpop.f32.mrb[14].mxu1 }
 0x265   : > { %v8955_v24 = vpop.f32.mrb[15].mxu1 }
 0x26c   : > { %v6568_v42 = vpop.f32.mrb[0].mxu0 }
 0x26d   : > { %v6616_v56 = vadd.f32 %v6568_v42, %v6318_v21  ;;  %v4947_v23 = vpop.f32.mrb[1].mxu0 }
 0x26e   : > { %v6617_v17 = vadd.f32 %v4947_v23, %v2901_v58 }
 0x26f   : > { %5140 = vst.msk [vmem:[%s8959_s24 + $0x8] sm:$0xff] %vm5138_vm0, %v6616_v56  ;;  %v5172_v33 = vsel %vm5138_vm0, %v6616_v56, 0.0  ;;  %v5241_v44 = vmul.f32 %v6616_v56, %v6616_v56 }
 0x270   : > { %5139 = vst.msk [vmem:[%s8959_s24] sm:$0xff] %vm5138_vm0, %v6617_v17  ;;  %v5171_v46 = vsel %vm5138_vm0, %v6617_v17, 0.0  ;;  %v5240_v14 = vmul.f32 %v6617_v17, %v6617_v17  ;;  %v6571_v28 = vpop.f32.mrb[2].mxu0 }
 0x271   : > { %v5273_v48 = vsel %vm5138_vm0, %v5241_v44, 0.0  ;;  %v5173_v3 = vadd.f32 %v5172_v33, %v5171_v46  ;;  %v6618_v16 = vadd.f32 %v6571_v28, %v6321_v43  ;;  %v4957_v18 = vpop.f32.mrb[3].mxu0 }
 0x272   : > { %v5272_v22 = vsel %vm5138_vm0, %v5240_v14, 0.0  ;;  %v6619_v55 = vadd.f32 %v4957_v18, %v2911_v34 }
 0x273   : > { %v5274_v35 = vadd.f32 %v5273_v48, %v5272_v22  ;;  %5142 = vst.msk [vmem:[%s8959_s24 + $0x18] sm:$0xff] %vm5138_vm0, %v6618_v16  ;;  %v5243_v60 = vmul.f32 %v6618_v16, %v6618_v16  ;;  %v5176_v5 = vsel %vm5138_vm0, %v6618_v16, 0.0 }
 0x274   : > { %5141 = vst.msk [vmem:[%s8959_s24 + $0x10] sm:$0xff] %vm5138_vm0, %v6619_v55  ;;  %v5174_v41 = vsel %vm5138_vm0, %v6619_v55, 0.0  ;;  %v5242_v1 = vmul.f32 %v6619_v55, %v6619_v55  ;;  %v6574_v59 = vpop.f32.mrb[4].mxu0 }
 0x275   : > { %v5175_v12 = vadd.f32 %v5174_v41, %v5173_v3  ;;  %v6620_v30 = vadd.f32 %v6574_v59, %v6324_v51  ;;  %v4967_v47 = vpop.f32.mrb[5].mxu0  ;;  %v5277_v6 = vsel %vm5138_vm0, %v5243_v60, 0.0 }
 0x276   : > { %v5275_v9 = vsel %vm5138_vm0, %v5242_v1, 0.0  ;;  %v6621_v15 = vadd.f32 %v4967_v47, %v2921_v50 }
 0x277   : > { %v5276_v11 = vadd.f32 %v5275_v9, %v5274_v35  ;;  %5144 = vst.msk [vmem:[%s8959_s24 + $0x28] sm:$0xff] %vm5138_vm0, %v6620_v30  ;;  %v5177_v49 = vadd.f32 %v5176_v5, %v5175_v12  ;;  %v5245_v26 = vmul.f32 %v6620_v30, %v6620_v30  ;;  %v5180_v54 = vsel %vm5138_vm0, %v6620_v30, 0.0 }
 0x278   : > { %5143 = vst.msk [vmem:[%s8959_s24 + $0x20] sm:$0xff] %vm5138_vm0, %v6621_v15  ;;  %v5178_v27 = vsel %vm5138_vm0, %v6621_v15, 0.0  ;;  %v5244_v38 = vmul.f32 %v6621_v15, %v6621_v15  ;;  %v6577_v29 = vpop.f32.mrb[6].mxu0 }
 0x279   : > { %v5179_v25 = vadd.f32 %v5178_v27, %v5177_v49  ;;  %v5278_v63 = vadd.f32 %v5277_v6, %v5276_v11  ;;  %v6622_v39 = vadd.f32 %v6577_v29, %v6327_v20  ;;  %v4977_v8 = vpop.f32.mrb[7].mxu0  ;;  %v5281_v62 = vsel %vm5138_vm0, %v5245_v26, 0.0 }
 0x27a   : > { %v5279_v53 = vsel %vm5138_vm0, %v5244_v38, 0.0  ;;  %v6623_v37 = vadd.f32 %v4977_v8, %v2931_v45 }
 0x27b   : > { %v5280_v0 = vadd.f32 %v5279_v53, %v5278_v63  ;;  %5146 = vst.msk [vmem:[%s8959_s24 + $0x38] sm:$0xff] %vm5138_vm0, %v6622_v39  ;;  %v5181_v4 = vadd.f32 %v5180_v54, %v5179_v25  ;;  %v5247_v36 = vmul.f32 %v6622_v39, %v6622_v39  ;;  %v5184_v34 = vsel %vm5138_vm0, %v6622_v39, 0.0 }
 0x27c   : > { %5145 = vst.msk [vmem:[%s8959_s24 + $0x30] sm:$0xff] %vm5138_vm0, %v6623_v37  ;;  %v5182_v2 = vsel %vm5138_vm0, %v6623_v37, 0.0  ;;  %v5246_v40 = vmul.f32 %v6623_v37, %v6623_v37  ;;  %v6580_v57 = vpop.f32.mrb[8].mxu0 }
 0x27d   : > { %v5183_v7 = vadd.f32 %v5182_v2, %v5181_v4  ;;  %v5282_v21 = vadd.f32 %v5281_v62, %v5280_v0  ;;  %v6624_v58 = vadd.f32 %v6580_v57, %v8941_v52  ;;  %v4987_v43 = vpop.f32.mrb[9].mxu0  ;;  %v5285_v42 = vsel %vm5138_vm0, %v5247_v36, 0.0 }
 0x27e   : > { %v5283_v51 = vsel %vm5138_vm0, %v5246_v40, 0.0  ;;  %v6625_v50 = vadd.f32 %v4987_v43, %v8943_v31 }
 0x27f   : > { %v5284_v20 = vadd.f32 %v5283_v51, %v5282_v21  ;;  %5148 = vst.msk [vmem:[%s8959_s24 + $0x48] sm:$0xff] %vm5138_vm0, %v6624_v58  ;;  %v5185_v45 = vadd.f32 %v5184_v34, %v5183_v7  ;;  %v5249_v56 = vmul.f32 %v6624_v58, %v6624_v58  ;;  %v5188_v14 = vsel %vm5138_vm0, %v6624_v58, 0.0 }
 0x280   : > { %5147 = vst.msk [vmem:[%s8959_s24 + $0x40] sm:$0xff] %vm5138_vm0, %v6625_v50  ;;  %v5186_v52 = vsel %vm5138_vm0, %v6625_v50, 0.0  ;;  %v5248_v23 = vmul.f32 %v6625_v50, %v6625_v50  ;;  %v6583_v17 = vpop.f32.mrb[10].mxu0 }
 0x281   : > { %v5187_v33 = vadd.f32 %v5186_v52, %v5185_v45  ;;  %v5286_v44 = vadd.f32 %v5285_v42, %v5284_v20  ;;  %v6626_v46 = vadd.f32 %v6583_v17, %v8945_v61  ;;  %v4997_v31 = vpop.f32.mrb[11].mxu0  ;;  %v5289_v18 = vsel %vm5138_vm0, %v5249_v56, 0.0 }
 0x282   : > { %v5287_v28 = vsel %vm5138_vm0, %v5248_v23, 0.0  ;;  %v6627_v48 = vadd.f32 %v4997_v31, %v8947_v10 }
 0x283   : > { %v5288_v3 = vadd.f32 %v5287_v28, %v5286_v44  ;;  %5150 = vst.msk [vmem:[%s8959_s24 + $0x58] sm:$0xff] %vm5138_vm0, %v6626_v46  ;;  %v5189_v16 = vadd.f32 %v5188_v14, %v5187_v33  ;;  %v5251_v22 = vmul.f32 %v6626_v46, %v6626_v46  ;;  %v5192_v59 = vsel %vm5138_vm0, %v6626_v46, 0.0 }
 0x284   : > { %5149 = vst.msk [vmem:[%s8959_s24 + $0x50] sm:$0xff] %vm5138_vm0, %v6627_v48  ;;  %v5190_v61 = vsel %vm5138_vm0, %v6627_v48, 0.0  ;;  %v5250_v55 = vmul.f32 %v6627_v48, %v6627_v48  ;;  %v6586_v35 = vpop.f32.mrb[12].mxu0 }
 0x285   : > { %v5191_v60 = vadd.f32 %v5190_v61, %v5189_v16  ;;  %v5290_v41 = vadd.f32 %v5289_v18, %v5288_v3  ;;  %v6628_v1 = vadd.f32 %v6586_v35, %v8949_v13  ;;  %v5007_v10 = vpop.f32.mrb[13].mxu0  ;;  %v5293_v9 = vsel %vm5138_vm0, %v5251_v22, 0.0 }
 0x286   : > { %v5291_v12 = vsel %vm5138_vm0, %v5250_v55, 0.0  ;;  %v6629_v30 = vadd.f32 %v5007_v10, %v8951_v19 }
 0x287   : > { %v5292_v47 = vadd.f32 %v5291_v12, %v5290_v41  ;;  %5152 = vst.msk [vmem:[%s8959_s24 + $0x68] sm:$0xff] %vm5138_vm0, %v6628_v1  ;;  %v5193_v5 = vadd.f32 %v5192_v59, %v5191_v60  ;;  %v5253_v15 = vmul.f32 %v6628_v1, %v6628_v1  ;;  %v5196_v25 = vsel %vm5138_vm0, %v6628_v1, 0.0 }
 0x288   : > { %5151 = vst.msk [vmem:[%s8959_s24 + $0x60] sm:$0xff] %vm5138_vm0, %v6629_v30  ;;  %v5194_v11 = vsel %vm5138_vm0, %v6629_v30, 0.0  ;;  %v5252_v13 = vmul.f32 %v6629_v30, %v6629_v30  ;;  %v6392_v49 = vpop.f32.mrb[16].mxu1  ;;  %v6589_v6 = vpop.f32.mrb[14].mxu0 }
 0x289   : > { %v5195_v26 = vadd.f32 %v5194_v11, %v5193_v5  ;;  %v5294_v27 = vadd.f32 %v5293_v9, %v5292_v47  ;;  %v6630_v19 = vadd.f32 %v6589_v6, %v8953_v32  ;;  %v3371_v38 = vpop.f32.mrb[17].mxu1  ;;  %v5017_v29 = vpop.f32.mrb[15].mxu0  ;;  %v5297_v53 = vsel %vm5138_vm0, %v5253_v15, 0.0 }
 0x28a   : > { %v5295_v63 = vsel %vm5138_vm0, %v5252_v13, 0.0  ;;  %v6631_v39 = vadd.f32 %v5017_v29, %v8955_v24 }
 0x28b   : > { %v5296_v8 = vadd.f32 %v5295_v63, %v5294_v27  ;;  %5154 = vst.msk [vmem:[%s8959_s24 + $0x78] sm:$0xff] %vm5138_vm0, %v6630_v19  ;;  %v5197_v54 = vadd.f32 %v5196_v25, %v5195_v26  ;;  %v5255_v37 = vmul.f32 %v6630_v19, %v6630_v19  ;;  %v5200_v7 = vsel %vm5138_vm0, %v6630_v19, 0.0 }
 0x28c   : > { %5153 = vst.msk [vmem:[%s8959_s24 + $0x70] sm:$0xff] %vm5138_vm0, %v6631_v39  ;;  %v5198_v32 = vsel %vm5138_vm0, %v6631_v39, 0.0  ;;  %v5254_v0 = vmul.f32 %v6631_v39, %v6631_v39  ;;  %v6395_v4 = vpop.f32.mrb[18].mxu1  ;;  %v6592_v62 = vpop.f32.mrb[16].mxu0 }
 0x28d   : > { %v5199_v36 = vadd.f32 %v5198_v32, %v5197_v54  ;;  %v5298_v2 = vadd.f32 %v5297_v53, %v5296_v8  ;;  %v6632_v40 = vadd.f32 %v6592_v62, %v6392_v49  ;;  %v3381_v24 = vpop.f32.mrb[19].mxu1  ;;  %v5027_v57 = vpop.f32.mrb[17].mxu0  ;;  %v5301_v51 = vsel %vm5138_vm0, %v5255_v37, 0.0 }
 0x28e   : > { %v5299_v21 = vsel %vm5138_vm0, %v5254_v0, 0.0  ;;  %v6633_v58 = vadd.f32 %v5027_v57, %v3371_v38 }
 0x28f   : > { %v5300_v43 = vadd.f32 %v5299_v21, %v5298_v2  ;;  %5156 = vst.msk [vmem:[%s8959_s24 + $0x88] sm:$0xff] %vm5138_vm0, %v6632_v40  ;;  %v5201_v34 = vadd.f32 %v5200_v7, %v5199_v36  ;;  %v5257_v50 = vmul.f32 %v6632_v40, %v6632_v40  ;;  %v5204_v46 = vsel %vm5138_vm0, %v6632_v40, 0.0 }
 0x290   : > { %5155 = vst.msk [vmem:[%s8959_s24 + $0x80] sm:$0xff] %vm5138_vm0, %v6633_v58  ;;  %v5202_v20 = vsel %vm5138_vm0, %v6633_v58, 0.0  ;;  %v5256_v45 = vmul.f32 %v6633_v58, %v6633_v58  ;;  %v6398_v42 = vpop.f32.mrb[20].mxu1  ;;  %v6595_v56 = vpop.f32.mrb[18].mxu0 }
 0x291   : > { %v5203_v52 = vadd.f32 %v5202_v20, %v5201_v34  ;;  %v5302_v23 = vadd.f32 %v5301_v51, %v5300_v43  ;;  %v6634_v17 = vadd.f32 %v6595_v56, %v6395_v4  ;;  %v3391_v33 = vpop.f32.mrb[21].mxu1  ;;  %v5037_v44 = vpop.f32.mrb[19].mxu0  ;;  %v5305_v3 = vsel %vm5138_vm0, %v5257_v50, 0.0 }
 0x292   : > { %v5303_v31 = vsel %vm5138_vm0, %v5256_v45, 0.0  ;;  %v6635_v14 = vadd.f32 %v5037_v44, %v3381_v24 }
 0x293   : > { %v5304_v28 = vadd.f32 %v5303_v31, %v5302_v23  ;;  %5158 = vst.msk [vmem:[%s8959_s24 + $0x98] sm:$0xff] %vm5138_vm0, %v6634_v17  ;;  %v5205_v48 = vadd.f32 %v5204_v46, %v5203_v52  ;;  %v5259_v16 = vmul.f32 %v6634_v17, %v6634_v17  ;;  %v5208_v59 = vsel %vm5138_vm0, %v6634_v17, 0.0 }
 0x294   : > { %5157 = vst.msk [vmem:[%s8959_s24 + $0x90] sm:$0xff] %vm5138_vm0, %v6635_v14  ;;  %v5206_v18 = vsel %vm5138_vm0, %v6635_v14, 0.0  ;;  %v5258_v22 = vmul.f32 %v6635_v14, %v6635_v14  ;;  %v6401_v61 = vpop.f32.mrb[22].mxu1  ;;  %v6598_v55 = vpop.f32.mrb[20].mxu0 }
 0x295   : > { %v5207_v35 = vadd.f32 %v5206_v18, %v5205_v48  ;;  %v5306_v60 = vadd.f32 %v5305_v3, %v5304_v28  ;;  %v6636_v41 = vadd.f32 %v6598_v55, %v6398_v42  ;;  %v3401_v1 = vpop.f32.mrb[23].mxu1  ;;  %v5047_v10 = vpop.f32.mrb[21].mxu0  ;;  %v5309_v9 = vsel %vm5138_vm0, %v5259_v16, 0.0 }
 0x296   : > { %v5307_v12 = vsel %vm5138_vm0, %v5258_v22, 0.0  ;;  %v6637_v30 = vadd.f32 %v5047_v10, %v3391_v33 }
 0x297   : > { %v5308_v47 = vadd.f32 %v5307_v12, %v5306_v60  ;;  %5160 = vst.msk [vmem:[%s8959_s24 + $0xa8] sm:$0xff] %vm5138_vm0, %v6636_v41  ;;  %v5209_v5 = vadd.f32 %v5208_v59, %v5207_v35  ;;  %v5261_v15 = vmul.f32 %v6636_v41, %v6636_v41  ;;  %v5212_v25 = vsel %vm5138_vm0, %v6636_v41, 0.0 }
 0x298   : > { %5159 = vst.msk [vmem:[%s8959_s24 + $0xa0] sm:$0xff] %vm5138_vm0, %v6637_v30  ;;  %v5210_v11 = vsel %vm5138_vm0, %v6637_v30, 0.0  ;;  %v5260_v13 = vmul.f32 %v6637_v30, %v6637_v30  ;;  %v6404_v49 = vpop.f32.mrb[24].mxu1  ;;  %v6601_v6 = vpop.f32.mrb[22].mxu0 }
 0x299   : > { %v5211_v26 = vadd.f32 %v5210_v11, %v5209_v5  ;;  %v5310_v27 = vadd.f32 %v5309_v9, %v5308_v47  ;;  %v6638_v19 = vadd.f32 %v6601_v6, %v6401_v61  ;;  %v3411_v38 = vpop.f32.mrb[25].mxu1  ;;  %v5057_v29 = vpop.f32.mrb[23].mxu0  ;;  %v5313_v53 = vsel %vm5138_vm0, %v5261_v15, 0.0 }
 0x29a   : > { %v5311_v63 = vsel %vm5138_vm0, %v5260_v13, 0.0  ;;  %v6639_v39 = vadd.f32 %v5057_v29, %v3401_v1 }
 0x29b   : > { %v5312_v8 = vadd.f32 %v5311_v63, %v5310_v27  ;;  %5162 = vst.msk [vmem:[%s8959_s24 + $0xb8] sm:$0xff] %vm5138_vm0, %v6638_v19  ;;  %v5213_v54 = vadd.f32 %v5212_v25, %v5211_v26  ;;  %v5263_v37 = vmul.f32 %v6638_v19, %v6638_v19  ;;  %v5216_v7 = vsel %vm5138_vm0, %v6638_v19, 0.0 }
 0x29c   : > { %5161 = vst.msk [vmem:[%s8959_s24 + $0xb0] sm:$0xff] %vm5138_vm0, %v6639_v39  ;;  %v5214_v32 = vsel %vm5138_vm0, %v6639_v39, 0.0  ;;  %v5262_v0 = vmul.f32 %v6639_v39, %v6639_v39  ;;  %v6407_v4 = vpop.f32.mrb[26].mxu1  ;;  %v6604_v62 = vpop.f32.mrb[24].mxu0 }
 0x29d   : > { %v5215_v36 = vadd.f32 %v5214_v32, %v5213_v54  ;;  %v5314_v2 = vadd.f32 %v5313_v53, %v5312_v8  ;;  %v6640_v40 = vadd.f32 %v6604_v62, %v6404_v49  ;;  %v3421_v24 = vpop.f32.mrb[27].mxu1  ;;  %v5067_v57 = vpop.f32.mrb[25].mxu0  ;;  %v5317_v51 = vsel %vm5138_vm0, %v5263_v37, 0.0 }
 0x29e   : > { %v5315_v21 = vsel %vm5138_vm0, %v5262_v0, 0.0  ;;  %v6641_v58 = vadd.f32 %v5067_v57, %v3411_v38 }
 0x29f   : > { %v5316_v43 = vadd.f32 %v5315_v21, %v5314_v2  ;;  %5164 = vst.msk [vmem:[%s8959_s24 + $0xc8] sm:$0xff] %vm5138_vm0, %v6640_v40  ;;  %v5217_v34 = vadd.f32 %v5216_v7, %v5215_v36  ;;  %v5265_v50 = vmul.f32 %v6640_v40, %v6640_v40  ;;  %v5220_v46 = vsel %vm5138_vm0, %v6640_v40, 0.0 }
 0x2a0   : > { %5163 = vst.msk [vmem:[%s8959_s24 + $0xc0] sm:$0xff] %vm5138_vm0, %v6641_v58  ;;  %v5218_v20 = vsel %vm5138_vm0, %v6641_v58, 0.0  ;;  %v5264_v45 = vmul.f32 %v6641_v58, %v6641_v58  ;;  %v6410_v42 = vpop.f32.mrb[28].mxu1  ;;  %v6607_v56 = vpop.f32.mrb[26].mxu0 }
 0x2a1   : > { %v5219_v52 = vadd.f32 %v5218_v20, %v5217_v34  ;;  %v5318_v23 = vadd.f32 %v5317_v51, %v5316_v43  ;;  %v6642_v17 = vadd.f32 %v6607_v56, %v6407_v4  ;;  %v3431_v33 = vpop.f32.mrb[29].mxu1  ;;  %v5077_v44 = vpop.f32.mrb[27].mxu0  ;;  %v5321_v3 = vsel %vm5138_vm0, %v5265_v50, 0.0 }
 0x2a2   : > { %v5319_v31 = vsel %vm5138_vm0, %v5264_v45, 0.0  ;;  %v6643_v14 = vadd.f32 %v5077_v44, %v3421_v24 }
 0x2a3   : > { %v5320_v28 = vadd.f32 %v5319_v31, %v5318_v23  ;;  %5166 = vst.msk [vmem:[%s8959_s24 + $0xd8] sm:$0xff] %vm5138_vm0, %v6642_v17  ;;  %v5221_v48 = vadd.f32 %v5220_v46, %v5219_v52  ;;  %v5267_v16 = vmul.f32 %v6642_v17, %v6642_v17  ;;  %v5224_v59 = vsel %vm5138_vm0, %v6642_v17, 0.0 }
 0x2a4   : > { %5165 = vst.msk [vmem:[%s8959_s24 + $0xd0] sm:$0xff] %vm5138_vm0, %v6643_v14  ;;  %v5222_v18 = vsel %vm5138_vm0, %v6643_v14, 0.0  ;;  %v5266_v22 = vmul.f32 %v6643_v14, %v6643_v14  ;;  %v6413_v61 = vpop.f32.mrb[30].mxu1  ;;  %v6610_v55 = vpop.f32.mrb[28].mxu0 }
 0x2a5   : > { %v5223_v35 = vadd.f32 %v5222_v18, %v5221_v48  ;;  %v5322_v60 = vadd.f32 %v5321_v3, %v5320_v28  ;;  %v6644_v41 = vadd.f32 %v6610_v55, %v6410_v42  ;;  %v3441_v1 = vpop.f32.mrb[31].mxu1  ;;  %v5087_v10 = vpop.f32.mrb[29].mxu0  ;;  %v5325_v9 = vsel %vm5138_vm0, %v5267_v16, 0.0 }
 0x2a6   : > { %v5323_v12 = vsel %vm5138_vm0, %v5266_v22, 0.0  ;;  %v6645_v30 = vadd.f32 %v5087_v10, %v3431_v33 }
 0x2a7   : > { %v5324_v47 = vadd.f32 %v5323_v12, %v5322_v60  ;;  %5168 = vst.msk [vmem:[%s8959_s24 + $0xe8] sm:$0xff] %vm5138_vm0, %v6644_v41  ;;  %v5225_v5 = vadd.f32 %v5224_v59, %v5223_v35  ;;  %v5269_v15 = vmul.f32 %v6644_v41, %v6644_v41  ;;  %v5228_v38 = vsel %vm5138_vm0, %v6644_v41, 0.0 }
 0x2a8   : > { %5167 = vst.msk [vmem:[%s8959_s24 + $0xe0] sm:$0xff] %vm5138_vm0, %v6645_v30  ;;  %v5226_v11 = vsel %vm5138_vm0, %v6645_v30, 0.0  ;;  %v5268_v13 = vmul.f32 %v6645_v30, %v6645_v30  ;;  %v6613_v49 = vpop.f32.mrb[30].mxu0 }
 0x2a9   : > { %v5227_v6 = vadd.f32 %v5226_v11, %v5225_v5  ;;  %v5326_v26 = vadd.f32 %v5325_v9, %v5324_v47  ;;  %v6646_v27 = vadd.f32 %v6613_v49, %v6413_v61  ;;  %v5097_v19 = vpop.f32.mrb[31].mxu0  ;;  %v5329_v53 = vsel %vm5138_vm0, %v5269_v15, 0.0 }
 0x2aa   : > { %v5327_v29 = vsel %vm5138_vm0, %v5268_v13, 0.0  ;;  %v6647_v25 = vadd.f32 %v5097_v19, %v3441_v1 }
 0x2ab   : > { %v5328_v63 = vadd.f32 %v5327_v29, %v5326_v26  ;;  %5170 = vst.msk [vmem:[%s8959_s24 + $0xf8] sm:$0xff] %vm5138_vm0, %v6646_v27  ;;  %v5232_v39 = vsel %vm5138_vm0, %v6646_v27, 0.0  ;;  %v5271_v8 = vmul.f32 %v6646_v27, %v6646_v27  ;;  %v5229_v54 = vadd.f32 %v5228_v38, %v5227_v6 }
 0x2ac   : > { %5169 = vst.msk [vmem:[%s8959_s24 + $0xf0] sm:$0xff] %vm5138_vm0, %v6647_v25  ;;  %v5230_v37 = vsel %vm5138_vm0, %v6647_v25, 0.0  ;;  %v5270_v32 = vmul.f32 %v6647_v25, %v6647_v25 }
 0x2ad   : > { %v5333_v0 = vsel %vm5138_vm0, %v5271_v8, 0.0  ;;  %v5231_v4 = vadd.f32 %v5230_v37, %v5229_v54  ;;  %v5330_v62 = vadd.f32 %v5329_v53, %v5328_v63 }
 0x2ae   : > { %7217 = shalt.err (!%p7214_p13)
}
 0x2af   : > { %s7218_s28 = scalar_lea.hbm %s9091_s14, 4096  ;;  %s7222_s8 = scalar_lea.hbm %s9183_s4, 8192 }
 0x2b0   : > { %p7219_p0 = scmp.ne.s32.totalorder %s9091_s14, %s7218_s28  ;;  %p7223_p9 = scmp.lt.u32.totalorder %s9091_s14, %s9183_s4 }
 0x2b1   : > { %p7224_p12 = scmp.lt.u32.totalorder %s7222_s8, %s7218_s28  ;;  %p7226_p1 = scmp.lt.u32.totalorder %s7218_s28, %s9091_s14 }
 0x2b2   : > { %p7220_p5 = pnand %p7219_p0, %p7498_p6 }
 0x2b3   : > { %p7225_p2 = por %p7224_p12, %p7223_p9 }
 0x2b4   : > { %p7221_p11 = pneg %p7220_p5 }
 0x2b5   : > { %p7227_p4 = por %p7226_p1, %p7225_p2 }
 0x2b7   : > { %p7228_p8 = pnand %p7227_p4, %p7221_p11 }
 0x2b9   : > { %7231 = shalt.err (!%p7228_p8)
}
 0x2ba   : > { %s7322_s30 = smov 128   ;;  %s7323_s13 = smov 8   ;;  %v5331_v36 = vsel %vm5138_vm0, %v5270_v32, 0.0  ;;  %v5233_v2 = vadd.f32 %v5232_v39, %v5231_v4  ;;  %vm5341_vm4 = vcmask 1040384   ;;  %vm5343_vm6 = vcmask 25600  }
 0x2bb   : > { %6886 = dma.vmem_to_hbm [thread:$0]  (%p7498_p6), %s9093_s11, 4096, %s9091_s14, %s5346_s6, %s7322_s30, %s7322_s30, %s7323_s13   ;;  %v5332_v40 = vadd.f32 %v5331_v36, %v5330_v62 }
 0x2bc   : > { %v5234_v24 = vrot.slane %v5233_v2, 4  ;;  %s5526_s9 = sshll.u32 %s7546_s17, 1  ;;  %s5862_s11 = sshll.u32 %s7376_s22, 5 }
 0x2bd   : > { %v5334_v57 = vadd.f32 %v5333_v0, %v5332_v40  ;;  %s293_s14 = scalar_lea.vmem [#allocation12], %s5526_s9  ;;  %s9135_s15 = scalar_lea.hbm %s9184_s5, %s5862_s11 }
 0x2be   : > { %v5235_v7 = vadd.f32 %v5234_v24, %v5233_v2  ;;  %s5380_s6 = sshll.u32 %s293_s14, 4  ;;  %s5351_s28 = scalar_lea.sflag [#allocation13], %s7546_s17  ;;  %s9137_s6 = int_to_ptr.vmem [resolvable:$true] %s5380_s6 }
 0x2bf   : > { %v5335_v21 = vrot.slane %v5334_v57, 4  ;;  %s7232_s22 = scalar_lea.vmem %s9137_s6, 32  ;;  %s7324_s23 = smov [#allocation12]  }
 0x2c0   : > { %v5236_v58 = vrot.slane %v5235_v7, 2  ;;  %p7233_p3 = scmp.ne.s32.totalorder %s9137_s6, %s7232_s22  ;;  %s7236_s7 = sshll.u32 %s7324_s23, 4  ;;  %s7237_s7 = int_to_ptr.vmem [resolvable:$false] %s7236_s7 }
 0x2c1   : > { %v5336_v43 = vadd.f32 %v5335_v21, %v5334_v57  ;;  %s7238_s8 = scalar_lea.vmem %s7237_s7, 64  ;;  %p7239_p13 = scmp.lt.s32.totalorder %s9137_s6, %s7237_s7 }
 0x2c2   : > { %v5237_v34 = vadd.f32 %v5236_v58, %v5235_v7  ;;  %p7234_p7 = pnand %p7233_p3, %p7498_p6  ;;  %p7240_p0 = scmp.lt.s32.totalorder %s7238_s8, %s7232_s22 }
 0x2c3   : > { %v5337_v51 = vrot.slane %v5336_v43, 2 }
 0x2c4   : > { %v5238_v50 = vrot.slane %v5237_v34, 1  ;;  %p7235_p10 = pneg %p7234_p7  ;;  %p7241_p5 = por %p7240_p0, %p7239_p13 }
 0x2c5   : > { %v5338_v20 = vadd.f32 %v5337_v51, %v5336_v43 }
 0x2c6   : > { %v5239_v42 = vadd.f32 %v5238_v50, %v5237_v34  ;;  %p7242_p11 = pnand %p7241_p5, %p7235_p10 }
 0x2c7   : > { %v5339_v45 = vrot.slane %v5338_v20, 1 }
 0x2c9   : > { %v5340_v56 = vadd.f32 %v5339_v45, %v5338_v20 }
 0x2cb   : > { %v5342_v52 = vsel %vm5341_vm4, %v5239_v42, %v5340_v56 }
 0x2cc   : > { %5344 = vst.msk [vmem:[%s293_s14] sm:$0x3] %vm5343_vm6, %v5342_v52 }
 0x2cd   : > { %7245 = shalt.err (!%p7242_p11)
}
 0x2ce   : > { %s7246_s17 = scalar_lea.hbm %s9135_s15, 32  ;;  %s7250_s30 = scalar_lea.hbm %s9184_s5, 64 }
 0x2cf   : > { %p7247_p9 = scmp.ne.s32.totalorder %s9135_s15, %s7246_s17  ;;  %p7251_p1 = scmp.lt.u32.totalorder %s9135_s15, %s9184_s5 }
 0x2d0   : > { %p7252_p4 = scmp.lt.u32.totalorder %s7250_s30, %s7246_s17  ;;  %p7254_p3 = scmp.lt.u32.totalorder %s7246_s17, %s9135_s15 }
 0x2d1   : > { %p7248_p12 = pnand %p7247_p9, %p7498_p6 }
 0x2d2   : > { %p7253_p8 = por %p7252_p4, %p7251_p1 }
 0x2d3   : > { %p7249_p2 = pneg %p7248_p12 }
 0x2d4   : > { %p7255_p7 = por %p7254_p3, %p7253_p8 }
 0x2d6   : > { %p7256_p10 = pnand %p7255_p7, %p7249_p2 }
 0x2d8   : > { %7259 = shalt.err (!%p7256_p10)
}
 0x2d9   : > { %6887 = dma.vmem_to_hbm [thread:$0]  (%p7498_p6), %s9137_s6, 32, %s9135_s15, %s5351_s28  }
 0x2da PF: > { %s5392_s11 = sand.u32 1, %s7298_s18   ;;  %p9354_p13 = scmp.ne.s32.totalorder %s9236_s25, 0 }
 0x2db   : > { %p9355_p0 = scmp.ge.s32.totalorder %s7310_s21, 2  ;;  %s5393_s14 = scalar_lea.sflag [#allocation5], %s5392_s11 }
 0x2dd   : > { %p6905_p5 = pnand %p9355_p0, %p9354_p13 }
 0x2df   : > { %7289 = dma.done.wait (!%p6905_p5), %s5393_s14, 4096  }
 0x2e0   : > { %7291 = vsyncadd (!%p6905_p5), %s5393_s14, 4294963200  ;;  %s5402_s10 = scalar_lea.sflag [#allocation13], %s5392_s11 }
 0x2e1   : > { %7293 = dma.done.wait (!%p6905_p5), %s5402_s10, 32  }
 0x2e2   : > { %7295 = vsyncadd (!%p6905_p5), %s5402_s10, 4294967264  ;;  %p24_p6 = scmp.ge.s32.totalorder %s7484_s16, 4   ;;  %s9356_s18 = smov %s7302_s19 }
 0x2e3   : > { %s9357_s19 = smov %s7306_s20  ;;  %s9358_s20 = smov %s7494_s27 }
 0x2e4   : > { %s9359_s21 = smov %s7484_s16  ;;  %26 = sbr.rel (!%p24_p6) target bundleno = 9 (0x9), region = 118 }
 0x2eb   :  { %5407 = vsyncpa [#allocation4], 1 }
 0x2ec   :  { %5409 = vsyncpa [#allocation4 + $0x1], 1 }
 0x2ed   :  { %5410 = vsyncpa [#allocation7], 1 }
 0x2ee   :  { %5411 = vsyncpa [#allocation10], 1 }
 0x2ef   :  { %5412 = vsyncpa [#allocation5], 1 }
 0x2f0   :  { %5414 = vsyncpa [#allocation5 + $0x1], 1 }
 0x2f1   :  { %5415 = vsyncpa [#allocation13], 1 }
 0x2f2   :  { %5417 = vsyncpa [#allocation13 + $0x1], 1 }

</bundles_post_ra>
